<compile_context>
chip_gen: v7x
topology: tpu7x:2x2x1
jax: 0.10.0
libtpu: 0.0.40
codegen_flags: <defaults>
</compile_context>

<pallas_src>
import math
import jax
import jax.numpy as jnp
from jax import lax
from jax.experimental import pallas as pl
from jax.experimental.pallas import tpu as pltpu


def _make_decoder_kernel(nhead, d_model, d_ff, bb, st, sm, eps=1e-5):
    assert d_model % nhead == 0
    D = d_model
    dh = D // nhead
    scale = 1.0 / math.sqrt(dh)
    Mq = bb * st          # flattened query rows per grid step
    bf16 = jnp.bfloat16
    f32 = jnp.float32

    def kernel(tgt_ref, mem_ref, kbias_ref, mbias_ref,
               sa_w_ref, sa_b_ref, sa_ow_ref, sa_ob_ref,
               ca_w_ref, ca_b_ref, ca_ow_ref, ca_ob_ref,
               w1_ref, b1_ref, w2_ref, b2_ref,
               ln_g_ref, ln_b_ref,
               out_ref, bias_scratch):
        l = pl.program_id(1)

        @pl.when(l == 0)
        def _():
            # Activation carry lives in the layer-constant out_ref block (f32).
            out_ref[...] = tgt_ref[...].astype(out_ref.dtype)
            # Cross-attention additive bias, built once per batch block:
            # (bb,1,Sm) key-padding bias + (St,Sm) memory-mask bias -> (bb,St,Sm)
            bias_scratch[...] = kbias_ref[...] + mbias_ref[...]

        x = out_ref[...].reshape(Mq, D)             # (Mq, D) f32 carry
        mem2d = mem_ref[...].reshape(bb * sm, D)    # (bb*Sm, D) bf16
        cross_bias = bias_scratch[...]              # (bb, St, Sm) f32

        def layer_norm(v, idx):
            g = ln_g_ref[idx:idx + 1, :]            # (1, D) f32
            b = ln_b_ref[idx:idx + 1, :]            # (1, D) f32
            mu = jnp.mean(v, axis=-1, keepdims=True)
            ms = jnp.mean(v * v, axis=-1, keepdims=True)
            var = ms - mu * mu                      # single-pass variance
            return (v - mu) * lax.rsqrt(var + eps) * g + b

        def attention(x_q, kv2d, n_q, n_kv, in_w_ref, in_b_ref,
                      ow_ref, ob_ref, bias, fused_qkv):
            """Multi-head attention.
            x_q : (bb*n_q, D) f32 query-side activation.
            kv2d: (bb*n_kv, D) bf16 key/value-side activation (ignored if fused).
            """
            xq_b = x_q.astype(bf16)
            if fused_qkv:
                # one fused (Mq, D) @ (D, 3D) matmul for Q/K/V, cast bf16 once
                qkv = (jnp.dot(xq_b, in_w_ref[...],
                               preferred_element_type=f32)
                       + in_b_ref[...]).astype(bf16)             # (Mq, 3D)
                q = qkv[:, 0:D].reshape(bb, n_q, D)
                k = qkv[:, D:2 * D].reshape(bb, n_kv, D)
                v = qkv[:, 2 * D:3 * D].reshape(bb, n_kv, D)
            else:
                # Q from the query stream, K/V fused from the memory stream.
                q = (jnp.dot(xq_b, in_w_ref[:, 0:D],
                             preferred_element_type=f32)
                     + in_b_ref[:, 0:D]).astype(bf16).reshape(bb, n_q, D)
                kv = (jnp.dot(kv2d, in_w_ref[:, D:3 * D],
                              preferred_element_type=f32)
                      + in_b_ref[:, D:3 * D]).astype(bf16)       # (bb*n_kv, 2D)
                k = kv[:, 0:D].reshape(bb, n_kv, D)
                v = kv[:, D:2 * D].reshape(bb, n_kv, D)

            # Per-head, batch-batched attention; the head concat is folded into
            # the output projection by accumulating against out_w row slices.
            proj = None
            for h in range(nhead):
                lo, hi = h * dh, (h + 1) * dh
                s = jnp.einsum('bqd,bkd->bqk', q[:, :, lo:hi], k[:, :, lo:hi],
                               preferred_element_type=f32) * scale
                if bias is not None:
                    s = s + bias                                  # (bb, n_q, n_kv)
                s = s - jnp.max(s, axis=-1, keepdims=True)
                p = jnp.exp(s)
                p = p * pl.reciprocal(jnp.sum(p, axis=-1, keepdims=True),
                                      approx=True)
                o_h = jnp.einsum('bqk,bkd->bqd', p.astype(bf16), v[:, :, lo:hi],
                                 preferred_element_type=f32)      # (bb, n_q, dh)
                contrib = jnp.dot(o_h.reshape(bb * n_q, dh).astype(bf16),
                                  ow_ref[lo:hi, :],
                                  preferred_element_type=f32)     # (bb*n_q, D)
                proj = contrib if proj is None else proj + contrib
            return proj + ob_ref[...]

        # ---- self-attention block (no tgt mask in relTransformerDecoder) -----
        sa = attention(x, None, st, st, sa_w_ref, sa_b_ref, sa_ow_ref, sa_ob_ref,
                       bias=None, fused_qkv=True)
        x = layer_norm(x + sa, 0)

        # ---- cross-attention block (shared memory + additive masks) ----------
        ca = attention(x, mem2d, st, sm, ca_w_ref, ca_b_ref, ca_ow_ref, ca_ob_ref,
                       bias=cross_bias, fused_qkv=False)
        x = layer_norm(x + ca, 1)

        # ---- feed-forward block ----------------------------------------------
        h1 = jnp.maximum(
            jnp.dot(x.astype(bf16), w1_ref[...],
                    preferred_element_type=f32) + b1_ref[...], 0.0)
        ff = jnp.dot(h1.astype(bf16), w2_ref[...],
                     preferred_element_type=f32) + b2_ref[...]
        x = layer_norm(x + ff, 2)

        # carry the activation for the next layer (HBM writeback happens only
        # when the batch-block grid index changes / at the end of the sweep)
        out_ref[...] = x.reshape(bb, st, D).astype(out_ref.dtype)

    return kernel


def rel_transformer_decoder_forward(tgt, memory, layer_params, nhead,
                                    memory_mask=None,
                                    memory_key_padding_mask=None,
                                    block_b=None):
    """Forward of relTransformerDecoder: the same memory is fed to every layer."""
    B, St, D = tgt.shape
    Sm = memory.shape[1]
    L = len(layer_params)
    Dff = layer_params[0]["w1"].shape[-1]

    if block_b is None:
        # Largest batch block that still leaves >= 2 "parallel" grid steps
        # (so v7x can shard the batch axis across its two TensorCores).
        # For real model sizes, additionally ensure block_b*St clears the
        # weight-streaming roofline (~240/680/310 rows on v5e/v6e/v7x).
        block_b = B if B < 2 else max(
            bbv for bbv in range(1, B + 1) if B % bbv == 0 and B // bbv >= 2)
    assert B % block_b == 0, "block_b must divide the batch size"

    bf16 = jnp.bfloat16
    f32 = jnp.float32

    def stack(name, dtype):
        return jnp.stack([p[name] for p in layer_params]).astype(dtype)

    # Stacked per-layer parameters: weights bf16, biases / LayerNorm params f32.
    sa_in_w = stack("sa_in_w", bf16); sa_in_b = stack("sa_in_b", f32)
    sa_out_w = stack("sa_out_w", bf16); sa_out_b = stack("sa_out_b", f32)
    ca_in_w = stack("ca_in_w", bf16); ca_in_b = stack("ca_in_b", f32)
    ca_out_w = stack("ca_out_w", bf16); ca_out_b = stack("ca_out_b", f32)
    w1 = stack("w1", bf16); b1 = stack("b1", f32)
    w2 = stack("w2", bf16); b2 = stack("b2", f32)
    ln_g = stack("ln_g", f32); ln_b = stack("ln_b", f32)

    # Compact additive attention biases (no (B, St, Sm) tensor in HBM).
    if memory_key_padding_mask is not None:
        if memory_key_padding_mask.dtype == jnp.bool_:
            kbias = jnp.where(memory_key_padding_mask, -1e9, 0.0).astype(f32)
        else:
            kbias = memory_key_padding_mask.astype(f32)
    else:
        kbias = jnp.zeros((B, Sm), f32)
    kbias = kbias.reshape(B, 1, Sm)

    if memory_mask is not None:
        if memory_mask.dtype == jnp.bool_:
            # PyTorch-style boolean mask: True = disallowed position.
            mbias = jnp.where(memory_mask, -1e9, 0.0).astype(f32)
        else:
            mbias = memory_mask.astype(f32)        # already an additive mask
    else:
        mbias = jnp.zeros((St, Sm), f32)

    kernel = _make_decoder_kernel(nhead=nhead, d_model=D, d_ff=Dff,
                                  bb=block_b, st=St, sm=Sm)

    def wspec(shape):
        # stacked per-layer parameter: squeeze the layer dim, index by l
        return pl.BlockSpec((None,) + shape,
                            lambda b, l, _n=len(shape): (l,) + (0,) * _n)

    in_specs = [
        pl.BlockSpec((block_b, St, D), lambda b, l: (b, 0, 0)),    # tgt (f32)
        pl.BlockSpec((block_b, Sm, D), lambda b, l: (b, 0, 0)),    # memory (bf16)
        pl.BlockSpec((block_b, 1, Sm), lambda b, l: (b, 0, 0)),    # key-pad bias
        pl.BlockSpec((St, Sm), lambda b, l: (0, 0)),               # memory-mask bias
        wspec((D, 3 * D)), wspec((1, 3 * D)), wspec((D, D)), wspec((1, D)),  # self-attn
        wspec((D, 3 * D)), wspec((1, 3 * D)), wspec((D, D)), wspec((1, D)),  # cross-attn
        wspec((D, Dff)), wspec((1, Dff)), wspec((Dff, D)), wspec((1, D)),    # FFN
        wspec((3, D)), wspec((3, D)),                                        # LN params
    ]
    out_spec = pl.BlockSpec((block_b, St, D), lambda b, l: (b, 0, 0))

    # Generation-aware VMEM budget (v5e/v6e: 128 MiB, v7x: 64 MiB per TC).
    try:
        vmem_cap = int(getattr(pltpu.get_tpu_info(), "vmem_capacity_bytes",
                               128 * 1024 * 1024))
    except Exception:
        vmem_cap = 128 * 1024 * 1024
    vmem_limit = min(vmem_cap * 3 // 4, 112 * 1024 * 1024)

    out_f32 = pl.pallas_call(
        kernel,
        out_shape=jax.ShapeDtypeStruct((B, St, D), jnp.float32),
        grid_spec=pltpu.PrefetchScalarGridSpec(
            num_scalar_prefetch=0,
            grid=(B // block_b, L),      # batch blocks (parallel), layers (arbitrary, innermost)
            in_specs=in_specs,
            out_specs=out_spec,
            scratch_shapes=[pltpu.VMEM((block_b, St, Sm), jnp.float32)],
        ),
        compiler_params=pltpu.CompilerParams(
            dimension_semantics=("parallel", "arbitrary"),
            vmem_limit_bytes=int(vmem_limit),
        ),
    )(tgt.astype(f32), memory.astype(bf16), kbias, mbias,
      sa_in_w, sa_in_b, sa_out_w, sa_out_b,
      ca_in_w, ca_in_b, ca_out_w, ca_out_b,
      w1, b1, w2, b2, ln_g, ln_b)
    return out_f32.astype(tgt.dtype)


def init_layer_params(key, D, Dff):
    ks = jax.random.split(key, 6)
    s = 0.05
    return dict(
        # weights stored pre-transposed so the kernel computes y = x @ W + b
        sa_in_w=jax.random.normal(ks[0], (D, 3 * D), jnp.float32) * s,
        sa_in_b=jnp.zeros((1, 3 * D), jnp.float32),
        sa_out_w=jax.random.normal(ks[1], (D, D), jnp.float32) * s,
        sa_out_b=jnp.zeros((1, D), jnp.float32),
        ca_in_w=jax.random.normal(ks[2], (D, 3 * D), jnp.float32) * s,
        ca_in_b=jnp.zeros((1, 3 * D), jnp.float32),
        ca_out_w=jax.random.normal(ks[3], (D, D), jnp.float32) * s,
        ca_out_b=jnp.zeros((1, D), jnp.float32),
        w1=jax.random.normal(ks[4], (D, Dff), jnp.float32) * s,
        b1=jnp.zeros((1, Dff), jnp.float32),
        w2=jax.random.normal(ks[5], (Dff, D), jnp.float32) * s,
        b2=jnp.zeros((1, D), jnp.float32),
        ln_g=jnp.ones((3, D), jnp.float32),
        ln_b=jnp.zeros((3, D), jnp.float32),
    )


if __name__ == "__main__":
    B, St, Sm, D, H, Dff, L = 4, 8, 8, 32, 4, 64, 2

    key = jax.random.PRNGKey(0)
    k_tgt, k_mem, *k_layers = jax.random.split(key, 2 + L)

    tgt = jax.random.normal(k_tgt, (B, St, D), jnp.float32)
    memory = jax.random.normal(k_mem, (B, Sm, D), jnp.float32)
    # memory_key_padding_mask: True = masked-out memory position
    memory_key_padding_mask = jnp.zeros((B, Sm), jnp.bool_).at[1, -2:].set(True)
    memory_mask = None

    params = [init_layer_params(k_layers[i], D, Dff) for i in range(L)]

    out = rel_transformer_decoder_forward(
        tgt, memory, params, H,
        memory_mask=memory_mask,
        memory_key_padding_mask=memory_key_padding_mask)
    jax.block_until_ready(out)
    assert out.shape == (B, St, D)
    assert bool(jnp.all(jnp.isfinite(out)))
    print("KERNEL_OK")
</pallas_src>

<mosaic_0001>
module attributes {stable_mosaic.version = 11 : i64} {
  func.func @kernel(%arg0: i32, %arg1: i32, %arg2: memref<2x8x32xf32, #tpu.memory_space<vmem>>, %arg3: memref<2x8x32xbf16, #tpu.memory_space<vmem>>, %arg4: memref<2x1x8xf32, #tpu.memory_space<vmem>>, %arg5: memref<8x8xf32, #tpu.memory_space<vmem>>, %arg6: memref<1x32x96xbf16, #tpu.memory_space<vmem>>, %arg7: memref<1x1x96xf32, #tpu.memory_space<vmem>>, %arg8: memref<1x32x32xbf16, #tpu.memory_space<vmem>>, %arg9: memref<1x1x32xf32, #tpu.memory_space<vmem>>, %arg10: memref<1x32x96xbf16, #tpu.memory_space<vmem>>, %arg11: memref<1x1x96xf32, #tpu.memory_space<vmem>>, %arg12: memref<1x32x32xbf16, #tpu.memory_space<vmem>>, %arg13: memref<1x1x32xf32, #tpu.memory_space<vmem>>, %arg14: memref<1x32x64xbf16, #tpu.memory_space<vmem>>, %arg15: memref<1x1x64xf32, #tpu.memory_space<vmem>>, %arg16: memref<1x64x32xbf16, #tpu.memory_space<vmem>>, %arg17: memref<1x1x32xf32, #tpu.memory_space<vmem>>, %arg18: memref<1x3x32xf32, #tpu.memory_space<vmem>>, %arg19: memref<1x3x32xf32, #tpu.memory_space<vmem>>, %arg20: memref<2x8x32xf32, #tpu.memory_space<vmem>>, %arg21: memref<2x8x8xf32, #tpu.memory_space<vmem>>) attributes {dimension_semantics = [#tpu.dimension_semantics<parallel>, #tpu.dimension_semantics<arbitrary>], iteration_bounds = array<i64: 2, 2>, scalar_prefetch = 0 : i64, scratch_operands = 1 : i64, tpu.core_type = #tpu.core_type<tc>, window_params = [{transform_indices = @transform_0, window_bounds = array<i64: 2, 8, 32>}, {transform_indices = @transform_1, window_bounds = array<i64: 2, 8, 32>}, {transform_indices = @transform_2, window_bounds = array<i64: 2, 1, 8>}, {pipeline_mode = #tpu.pipeline_mode<synchronous>, transform_indices = @transform_3, window_bounds = array<i64: 8, 8>}, {transform_indices = @transform_4, window_bounds = array<i64: 1, 32, 96>}, {transform_indices = @transform_5, window_bounds = array<i64: 1, 1, 96>}, {transform_indices = @transform_6, window_bounds = array<i64: 1, 32, 32>}, {transform_indices = @transform_7, window_bounds = array<i64: 1, 1, 32>}, {transform_indices = @transform_8, window_bounds = array<i64: 1, 32, 96>}, {transform_indices = @transform_9, window_bounds = array<i64: 1, 1, 96>}, {transform_indices = @transform_10, window_bounds = array<i64: 1, 32, 32>}, {transform_indices = @transform_11, window_bounds = array<i64: 1, 1, 32>}, {transform_indices = @transform_12, window_bounds = array<i64: 1, 32, 64>}, {transform_indices = @transform_13, window_bounds = array<i64: 1, 1, 64>}, {transform_indices = @transform_14, window_bounds = array<i64: 1, 64, 32>}, {transform_indices = @transform_15, window_bounds = array<i64: 1, 1, 32>}, {transform_indices = @transform_16, window_bounds = array<i64: 1, 3, 32>}, {transform_indices = @transform_17, window_bounds = array<i64: 1, 3, 32>}, {transform_indices = @transform_18, window_bounds = array<i64: 2, 8, 32>}]} {
    %c0_i32 = arith.constant 0 : i32
    %0 = arith.cmpi eq, %arg1, %c0_i32 : i32
    %1 = arith.extui %0 : i1 to i32
    %c0_i32_0 = arith.constant 0 : i32
    %2 = arith.cmpi ne, %1, %c0_i32_0 : i32
    scf.if %2 {
      %c0_152 = arith.constant 0 : index
      %c0_153 = arith.constant 0 : index
      %c0_154 = arith.constant 0 : index
      %348 = vector.load %arg2[%c0_152, %c0_153, %c0_154] : memref<2x8x32xf32, #tpu.memory_space<vmem>>, vector<2x8x32xf32>
      %c0_155 = arith.constant 0 : index
      %c0_156 = arith.constant 0 : index
      %c0_157 = arith.constant 0 : index
      %349 = vector.load %arg20[%c0_155, %c0_156, %c0_157] : memref<2x8x32xf32, #tpu.memory_space<vmem>>, vector<2x8x32xf32>
      tpu.vector_store %arg20[%c0_155, %c0_156, %c0_157], %348 {strides = array<i32>} : memref<2x8x32xf32, #tpu.memory_space<vmem>>, vector<2x8x32xf32>,
      %c0_158 = arith.constant 0 : index
      %c0_159 = arith.constant 0 : index
      %c0_160 = arith.constant 0 : index
      %350 = vector.load %arg4[%c0_158, %c0_159, %c0_160] : memref<2x1x8xf32, #tpu.memory_space<vmem>>, vector<2x1x8xf32>
      %c0_161 = arith.constant 0 : index
      %c0_162 = arith.constant 0 : index
      %351 = vector.load %arg5[%c0_161, %c0_162] : memref<8x8xf32, #tpu.memory_space<vmem>>, vector<8x8xf32>
      %352 = vector.shape_cast %351 : vector<8x8xf32> to vector<1x8x8xf32>
      %353 = vector.broadcast %350 : vector<2x1x8xf32> to vector<2x8x8xf32>
      %354 = vector.broadcast %352 : vector<1x8x8xf32> to vector<2x8x8xf32>
      %355 = arith.addf %353, %354 : vector<2x8x8xf32>
      %c0_163 = arith.constant 0 : index
      %c0_164 = arith.constant 0 : index
      %c0_165 = arith.constant 0 : index
      %356 = vector.load %arg21[%c0_163, %c0_164, %c0_165] : memref<2x8x8xf32, #tpu.memory_space<vmem>>, vector<2x8x8xf32>
      tpu.vector_store %arg21[%c0_163, %c0_164, %c0_165], %355 {strides = array<i32>} : memref<2x8x8xf32, #tpu.memory_space<vmem>>, vector<2x8x8xf32>,
    } else {
    }
    %c0 = arith.constant 0 : index
    %c0_1 = arith.constant 0 : index
    %c0_2 = arith.constant 0 : index
    %3 = vector.load %arg20[%c0, %c0_1, %c0_2] : memref<2x8x32xf32, #tpu.memory_space<vmem>>, vector<2x8x32xf32>
    %4 = vector.shape_cast %3 : vector<2x8x32xf32> to vector<16x32xf32>
    %c0_3 = arith.constant 0 : index
    %c0_4 = arith.constant 0 : index
    %c0_5 = arith.constant 0 : index
    %5 = vector.load %arg3[%c0_3, %c0_4, %c0_5] : memref<2x8x32xbf16, #tpu.memory_space<vmem>>, vector<2x8x32xbf16>
    %6 = vector.shape_cast %5 : vector<2x8x32xbf16> to vector<16x32xbf16>
    %c0_6 = arith.constant 0 : index
    %c0_7 = arith.constant 0 : index
    %c0_8 = arith.constant 0 : index
    %7 = vector.load %arg21[%c0_6, %c0_7, %c0_8] : memref<2x8x8xf32, #tpu.memory_space<vmem>>, vector<2x8x8xf32>
    %8 = arith.truncf %4 : vector<16x32xf32> to vector<16x32xbf16>
    %c0_9 = arith.constant 0 : index
    %c0_10 = arith.constant 0 : index
    %c0_11 = arith.constant 0 : index
    %9 = vector.load %arg6[%c0_9, %c0_10, %c0_11] : memref<1x32x96xbf16, #tpu.memory_space<vmem>>, vector<1x32x96xbf16>
    %10 = vector.shape_cast %9 : vector<1x32x96xbf16> to vector<32x96xbf16>
    %cst = arith.constant dense<0.000000e+00> : vector<16x96xf32>
    %11 = tpu.matmul %8, %10, %cst {dimension_numbers = #tpu.dot_dimension_numbers<[1], [0], [0], [1], [0, 0, 1, 1], [], []>} : vector<16x32xbf16>, vector<32x96xbf16>, vector<16x96xf32> -> vector<16x96xf32>
    %c0_12 = arith.constant 0 : index
    %c0_13 = arith.constant 0 : index
    %c0_14 = arith.constant 0 : index
    %12 = vector.load %arg7[%c0_12, %c0_13, %c0_14] : memref<1x1x96xf32, #tpu.memory_space<vmem>>, vector<1x1x96xf32>
    %13 = vector.shape_cast %12 : vector<1x1x96xf32> to vector<1x96xf32>
    %14 = vector.broadcast %13 : vector<1x96xf32> to vector<16x96xf32>
    %15 = arith.addf %11, %14 : vector<16x96xf32>
    %16 = arith.truncf %15 : vector<16x96xf32> to vector<16x96xbf16>
    %17 = vector.extract_strided_slice %16 {offsets = [0, 0], sizes = [16, 32], strides = [1, 1]} : vector<16x96xbf16> to vector<16x32xbf16>
    %18 = vector.shape_cast %17 : vector<16x32xbf16> to vector<2x8x32xbf16>
    %19 = vector.extract_strided_slice %16 {offsets = [0, 32], sizes = [16, 32], strides = [1, 1]} : vector<16x96xbf16> to vector<16x32xbf16>
    %20 = vector.shape_cast %19 : vector<16x32xbf16> to vector<2x8x32xbf16>
    %21 = vector.extract_strided_slice %16 {offsets = [0, 64], sizes = [16, 32], strides = [1, 1]} : vector<16x96xbf16> to vector<16x32xbf16>
    %22 = vector.shape_cast %21 : vector<16x32xbf16> to vector<2x8x32xbf16>
    %23 = vector.extract_strided_slice %18 {offsets = [0, 0, 0], sizes = [2, 8, 8], strides = [1, 1, 1]} : vector<2x8x32xbf16> to vector<2x8x8xbf16>
    %24 = vector.extract_strided_slice %20 {offsets = [0, 0, 0], sizes = [2, 8, 8], strides = [1, 1, 1]} : vector<2x8x32xbf16> to vector<2x8x8xbf16>
    "tpu.trace_start"() <{level = 10 : i32, message = "bqd,bkd->bqk"}> : () -> ()
    %cst_15 = arith.constant dense<0.000000e+00> : vector<2x8x8xf32>
    %25 = tpu.matmul %23, %24, %cst_15 {dimension_numbers = #tpu.dot_dimension_numbers<[2], [2], [1], [1], [0, 0, 0, 1, 1, 1], [0], [0]>} : vector<2x8x8xbf16>, vector<2x8x8xbf16>, vector<2x8x8xf32> -> vector<2x8x8xf32>
    "tpu.trace_stop"() : () -> ()
    %cst_16 = arith.constant 0.353553385 : f32
    %26 = vector.broadcast %cst_16 : f32 to vector<2x8x8xf32>
    %27 = arith.mulf %25, %26 : vector<2x8x8xf32>
    %cst_17 = arith.constant dense<0xFF800000> : vector<2x8xf32>
    %28 = vector.multi_reduction <maximumf>, %27, %cst_17 [2] : vector<2x8x8xf32> to vector<2x8xf32>
    %29 = vector.shape_cast %28 : vector<2x8xf32> to vector<2x8x1xf32>
    %30 = vector.broadcast %29 : vector<2x8x1xf32> to vector<2x8x8xf32>
    %31 = arith.subf %27, %30 : vector<2x8x8xf32>
    %32 = math.exp %31 : vector<2x8x8xf32>
    %cst_18 = arith.constant dense<0.000000e+00> : vector<2x8xf32>
    %33 = vector.multi_reduction <add>, %32, %cst_18 [2] : vector<2x8x8xf32> to vector<2x8xf32>
    %34 = vector.shape_cast %33 : vector<2x8xf32> to vector<2x8x1xf32>
    %35 = tpu.reciprocal %34 {approx = true} : vector<2x8x1xf32> -> vector<2x8x1xf32>
    %36 = vector.broadcast %35 : vector<2x8x1xf32> to vector<2x8x8xf32>
    %37 = arith.mulf %32, %36 : vector<2x8x8xf32>
    %38 = arith.truncf %37 : vector<2x8x8xf32> to vector<2x8x8xbf16>
    %39 = vector.extract_strided_slice %22 {offsets = [0, 0, 0], sizes = [2, 8, 8], strides = [1, 1, 1]} : vector<2x8x32xbf16> to vector<2x8x8xbf16>
    "tpu.trace_start"() <{level = 10 : i32, message = "bqk,bkd->bqd"}> : () -> ()
    %cst_19 = arith.constant dense<0.000000e+00> : vector<2x8x8xf32>
    %40 = tpu.matmul %38, %39, %cst_19 {dimension_numbers = #tpu.dot_dimension_numbers<[2], [1], [1], [2], [0, 0, 0, 1, 1, 2], [0], [0]>} : vector<2x8x8xbf16>, vector<2x8x8xbf16>, vector<2x8x8xf32> -> vector<2x8x8xf32>
    "tpu.trace_stop"() : () -> ()
    %41 = vector.shape_cast %40 : vector<2x8x8xf32> to vector<16x8xf32>
    %42 = arith.truncf %41 : vector<16x8xf32> to vector<16x8xbf16>
    %c0_20 = arith.constant 0 : index
    %c0_21 = arith.constant 0 : index
    %c0_22 = arith.constant 0 : index
    %43 = vector.load %arg8[%c0_20, %c0_21, %c0_22] : memref<1x32x32xbf16, #tpu.memory_space<vmem>>, vector<1x8x32xbf16>
    %44 = vector.shape_cast %43 : vector<1x8x32xbf16> to vector<8x32xbf16>
    %cst_23 = arith.constant dense<0.000000e+00> : vector<16x32xf32>
    %45 = tpu.matmul %42, %44, %cst_23 {dimension_numbers = #tpu.dot_dimension_numbers<[1], [0], [0], [1], [0, 0, 1, 1], [], []>} : vector<16x8xbf16>, vector<8x32xbf16>, vector<16x32xf32> -> vector<16x32xf32>
    %46 = vector.extract_strided_slice %18 {offsets = [0, 0, 8], sizes = [2, 8, 8], strides = [1, 1, 1]} : vector<2x8x32xbf16> to vector<2x8x8xbf16>
    %47 = vector.extract_strided_slice %20 {offsets = [0, 0, 8], sizes = [2, 8, 8], strides = [1, 1, 1]} : vector<2x8x32xbf16> to vector<2x8x8xbf16>
    "tpu.trace_start"() <{level = 10 : i32, message = "bqd,bkd->bqk"}> : () -> ()
    %cst_24 = arith.constant dense<0.000000e+00> : vector<2x8x8xf32>
    %48 = tpu.matmul %46, %47, %cst_24 {dimension_numbers = #tpu.dot_dimension_numbers<[2], [2], [1], [1], [0, 0, 0, 1, 1, 1], [0], [0]>} : vector<2x8x8xbf16>, vector<2x8x8xbf16>, vector<2x8x8xf32> -> vector<2x8x8xf32>
    "tpu.trace_stop"() : () -> ()
    %cst_25 = arith.constant 0.353553385 : f32
    %49 = vector.broadcast %cst_25 : f32 to vector<2x8x8xf32>
    %50 = arith.mulf %48, %49 : vector<2x8x8xf32>
    %cst_26 = arith.constant dense<0xFF800000> : vector<2x8xf32>
    %51 = vector.multi_reduction <maximumf>, %50, %cst_26 [2] : vector<2x8x8xf32> to vector<2x8xf32>
    %52 = vector.shape_cast %51 : vector<2x8xf32> to vector<2x8x1xf32>
    %53 = vector.broadcast %52 : vector<2x8x1xf32> to vector<2x8x8xf32>
    %54 = arith.subf %50, %53 : vector<2x8x8xf32>
    %55 = math.exp %54 : vector<2x8x8xf32>
    %cst_27 = arith.constant dense<0.000000e+00> : vector<2x8xf32>
    %56 = vector.multi_reduction <add>, %55, %cst_27 [2] : vector<2x8x8xf32> to vector<2x8xf32>
    %57 = vector.shape_cast %56 : vector<2x8xf32> to vector<2x8x1xf32>
    %58 = tpu.reciprocal %57 {approx = true} : vector<2x8x1xf32> -> vector<2x8x1xf32>
    %59 = vector.broadcast %58 : vector<2x8x1xf32> to vector<2x8x8xf32>
    %60 = arith.mulf %55, %59 : vector<2x8x8xf32>
    %61 = arith.truncf %60 : vector<2x8x8xf32> to vector<2x8x8xbf16>
    %62 = vector.extract_strided_slice %22 {offsets = [0, 0, 8], sizes = [2, 8, 8], strides = [1, 1, 1]} : vector<2x8x32xbf16> to vector<2x8x8xbf16>
    "tpu.trace_start"() <{level = 10 : i32, message = "bqk,bkd->bqd"}> : () -> ()
    %cst_28 = arith.constant dense<0.000000e+00> : vector<2x8x8xf32>
    %63 = tpu.matmul %61, %62, %cst_28 {dimension_numbers = #tpu.dot_dimension_numbers<[2], [1], [1], [2], [0, 0, 0, 1, 1, 2], [0], [0]>} : vector<2x8x8xbf16>, vector<2x8x8xbf16>, vector<2x8x8xf32> -> vector<2x8x8xf32>
    "tpu.trace_stop"() : () -> ()
    %64 = vector.shape_cast %63 : vector<2x8x8xf32> to vector<16x8xf32>
    %65 = arith.truncf %64 : vector<16x8xf32> to vector<16x8xbf16>
    %c0_29 = arith.constant 0 : index
    %c8 = arith.constant 8 : index
    %c0_30 = arith.constant 0 : index
    %66 = vector.load %arg8[%c0_29, %c8, %c0_30] : memref<1x32x32xbf16, #tpu.memory_space<vmem>>, vector<1x8x32xbf16>
    %67 = vector.shape_cast %66 : vector<1x8x32xbf16> to vector<8x32xbf16>
    %cst_31 = arith.constant dense<0.000000e+00> : vector<16x32xf32>
    %68 = tpu.matmul %65, %67, %cst_31 {dimension_numbers = #tpu.dot_dimension_numbers<[1], [0], [0], [1], [0, 0, 1, 1], [], []>} : vector<16x8xbf16>, vector<8x32xbf16>, vector<16x32xf32> -> vector<16x32xf32>
    %69 = arith.addf %45, %68 : vector<16x32xf32>
    %70 = vector.extract_strided_slice %18 {offsets = [0, 0, 16], sizes = [2, 8, 8], strides = [1, 1, 1]} : vector<2x8x32xbf16> to vector<2x8x8xbf16>
    %71 = vector.extract_strided_slice %20 {offsets = [0, 0, 16], sizes = [2, 8, 8], strides = [1, 1, 1]} : vector<2x8x32xbf16> to vector<2x8x8xbf16>
    "tpu.trace_start"() <{level = 10 : i32, message = "bqd,bkd->bqk"}> : () -> ()
    %cst_32 = arith.constant dense<0.000000e+00> : vector<2x8x8xf32>
    %72 = tpu.matmul %70, %71, %cst_32 {dimension_numbers = #tpu.dot_dimension_numbers<[2], [2], [1], [1], [0, 0, 0, 1, 1, 1], [0], [0]>} : vector<2x8x8xbf16>, vector<2x8x8xbf16>, vector<2x8x8xf32> -> vector<2x8x8xf32>
    "tpu.trace_stop"() : () -> ()
    %cst_33 = arith.constant 0.353553385 : f32
    %73 = vector.broadcast %cst_33 : f32 to vector<2x8x8xf32>
    %74 = arith.mulf %72, %73 : vector<2x8x8xf32>
    %cst_34 = arith.constant dense<0xFF800000> : vector<2x8xf32>
    %75 = vector.multi_reduction <maximumf>, %74, %cst_34 [2] : vector<2x8x8xf32> to vector<2x8xf32>
    %76 = vector.shape_cast %75 : vector<2x8xf32> to vector<2x8x1xf32>
    %77 = vector.broadcast %76 : vector<2x8x1xf32> to vector<2x8x8xf32>
    %78 = arith.subf %74, %77 : vector<2x8x8xf32>
    %79 = math.exp %78 : vector<2x8x8xf32>
    %cst_35 = arith.constant dense<0.000000e+00> : vector<2x8xf32>
    %80 = vector.multi_reduction <add>, %79, %cst_35 [2] : vector<2x8x8xf32> to vector<2x8xf32>
    %81 = vector.shape_cast %80 : vector<2x8xf32> to vector<2x8x1xf32>
    %82 = tpu.reciprocal %81 {approx = true} : vector<2x8x1xf32> -> vector<2x8x1xf32>
    %83 = vector.broadcast %82 : vector<2x8x1xf32> to vector<2x8x8xf32>
    %84 = arith.mulf %79, %83 : vector<2x8x8xf32>
    %85 = arith.truncf %84 : vector<2x8x8xf32> to vector<2x8x8xbf16>
    %86 = vector.extract_strided_slice %22 {offsets = [0, 0, 16], sizes = [2, 8, 8], strides = [1, 1, 1]} : vector<2x8x32xbf16> to vector<2x8x8xbf16>
    "tpu.trace_start"() <{level = 10 : i32, message = "bqk,bkd->bqd"}> : () -> ()
    %cst_36 = arith.constant dense<0.000000e+00> : vector<2x8x8xf32>
    %87 = tpu.matmul %85, %86, %cst_36 {dimension_numbers = #tpu.dot_dimension_numbers<[2], [1], [1], [2], [0, 0, 0, 1, 1, 2], [0], [0]>} : vector<2x8x8xbf16>, vector<2x8x8xbf16>, vector<2x8x8xf32> -> vector<2x8x8xf32>
    "tpu.trace_stop"() : () -> ()
    %88 = vector.shape_cast %87 : vector<2x8x8xf32> to vector<16x8xf32>
    %89 = arith.truncf %88 : vector<16x8xf32> to vector<16x8xbf16>
    %c0_37 = arith.constant 0 : index
    %c16 = arith.constant 16 : index
    %c0_38 = arith.constant 0 : index
    %90 = vector.load %arg8[%c0_37, %c16, %c0_38] : memref<1x32x32xbf16, #tpu.memory_space<vmem>>, vector<1x8x32xbf16>
    %91 = vector.shape_cast %90 : vector<1x8x32xbf16> to vector<8x32xbf16>
    %cst_39 = arith.constant dense<0.000000e+00> : vector<16x32xf32>
    %92 = tpu.matmul %89, %91, %cst_39 {dimension_numbers = #tpu.dot_dimension_numbers<[1], [0], [0], [1], [0, 0, 1, 1], [], []>} : vector<16x8xbf16>, vector<8x32xbf16>, vector<16x32xf32> -> vector<16x32xf32>
    %93 = arith.addf %69, %92 : vector<16x32xf32>
    %94 = vector.extract_strided_slice %18 {offsets = [0, 0, 24], sizes = [2, 8, 8], strides = [1, 1, 1]} : vector<2x8x32xbf16> to vector<2x8x8xbf16>
    %95 = vector.extract_strided_slice %20 {offsets = [0, 0, 24], sizes = [2, 8, 8], strides = [1, 1, 1]} : vector<2x8x32xbf16> to vector<2x8x8xbf16>
    "tpu.trace_start"() <{level = 10 : i32, message = "bqd,bkd->bqk"}> : () -> ()
    %cst_40 = arith.constant dense<0.000000e+00> : vector<2x8x8xf32>
    %96 = tpu.matmul %94, %95, %cst_40 {dimension_numbers = #tpu.dot_dimension_numbers<[2], [2], [1], [1], [0, 0, 0, 1, 1, 1], [0], [0]>} : vector<2x8x8xbf16>, vector<2x8x8xbf16>, vector<2x8x8xf32> -> vector<2x8x8xf32>
    "tpu.trace_stop"() : () -> ()
    %cst_41 = arith.constant 0.353553385 : f32
    %97 = vector.broadcast %cst_41 : f32 to vector<2x8x8xf32>
    %98 = arith.mulf %96, %97 : vector<2x8x8xf32>
    %cst_42 = arith.constant dense<0xFF800000> : vector<2x8xf32>
    %99 = vector.multi_reduction <maximumf>, %98, %cst_42 [2] : vector<2x8x8xf32> to vector<2x8xf32>
    %100 = vector.shape_cast %99 : vector<2x8xf32> to vector<2x8x1xf32>
    %101 = vector.broadcast %100 : vector<2x8x1xf32> to vector<2x8x8xf32>
    %102 = arith.subf %98, %101 : vector<2x8x8xf32>
    %103 = math.exp %102 : vector<2x8x8xf32>
    %cst_43 = arith.constant dense<0.000000e+00> : vector<2x8xf32>
    %104 = vector.multi_reduction <add>, %103, %cst_43 [2] : vector<2x8x8xf32> to vector<2x8xf32>
    %105 = vector.shape_cast %104 : vector<2x8xf32> to vector<2x8x1xf32>
    %106 = tpu.reciprocal %105 {approx = true} : vector<2x8x1xf32> -> vector<2x8x1xf32>
    %107 = vector.broadcast %106 : vector<2x8x1xf32> to vector<2x8x8xf32>
    %108 = arith.mulf %103, %107 : vector<2x8x8xf32>
    %109 = arith.truncf %108 : vector<2x8x8xf32> to vector<2x8x8xbf16>
    %110 = vector.extract_strided_slice %22 {offsets = [0, 0, 24], sizes = [2, 8, 8], strides = [1, 1, 1]} : vector<2x8x32xbf16> to vector<2x8x8xbf16>
    "tpu.trace_start"() <{level = 10 : i32, message = "bqk,bkd->bqd"}> : () -> ()
    %cst_44 = arith.constant dense<0.000000e+00> : vector<2x8x8xf32>
    %111 = tpu.matmul %109, %110, %cst_44 {dimension_numbers = #tpu.dot_dimension_numbers<[2], [1], [1], [2], [0, 0, 0, 1, 1, 2], [0], [0]>} : vector<2x8x8xbf16>, vector<2x8x8xbf16>, vector<2x8x8xf32> -> vector<2x8x8xf32>
    "tpu.trace_stop"() : () -> ()
    %112 = vector.shape_cast %111 : vector<2x8x8xf32> to vector<16x8xf32>
    %113 = arith.truncf %112 : vector<16x8xf32> to vector<16x8xbf16>
    %c0_45 = arith.constant 0 : index
    %c24 = arith.constant 24 : index
    %c0_46 = arith.constant 0 : index
    %114 = vector.load %arg8[%c0_45, %c24, %c0_46] : memref<1x32x32xbf16, #tpu.memory_space<vmem>>, vector<1x8x32xbf16>
    %115 = vector.shape_cast %114 : vector<1x8x32xbf16> to vector<8x32xbf16>
    %cst_47 = arith.constant dense<0.000000e+00> : vector<16x32xf32>
    %116 = tpu.matmul %113, %115, %cst_47 {dimension_numbers = #tpu.dot_dimension_numbers<[1], [0], [0], [1], [0, 0, 1, 1], [], []>} : vector<16x8xbf16>, vector<8x32xbf16>, vector<16x32xf32> -> vector<16x32xf32>
    %117 = arith.addf %93, %116 : vector<16x32xf32>
    %c0_48 = arith.constant 0 : index
    %c0_49 = arith.constant 0 : index
    %c0_50 = arith.constant 0 : index
    %118 = vector.load %arg9[%c0_48, %c0_49, %c0_50] : memref<1x1x32xf32, #tpu.memory_space<vmem>>, vector<1x1x32xf32>
    %119 = vector.shape_cast %118 : vector<1x1x32xf32> to vector<1x32xf32>
    %120 = vector.broadcast %119 : vector<1x32xf32> to vector<16x32xf32>
    %121 = arith.addf %117, %120 : vector<16x32xf32>
    %122 = arith.addf %4, %121 : vector<16x32xf32>
    %c0_51 = arith.constant 0 : index
    %c0_52 = arith.constant 0 : index
    %c0_53 = arith.constant 0 : index
    %123 = vector.load %arg18[%c0_51, %c0_52, %c0_53] : memref<1x3x32xf32, #tpu.memory_space<vmem>>, vector<1x1x32xf32>
    %124 = vector.shape_cast %123 : vector<1x1x32xf32> to vector<1x32xf32>
    %c0_54 = arith.constant 0 : index
    %c0_55 = arith.constant 0 : index
    %c0_56 = arith.constant 0 : index
    %125 = vector.load %arg19[%c0_54, %c0_55, %c0_56] : memref<1x3x32xf32, #tpu.memory_space<vmem>>, vector<1x1x32xf32>
    %126 = vector.shape_cast %125 : vector<1x1x32xf32> to vector<1x32xf32>
    %cst_57 = arith.constant dense<0.000000e+00> : vector<16xf32>
    %127 = vector.multi_reduction <add>, %122, %cst_57 [1] : vector<16x32xf32> to vector<16xf32>
    %128 = vector.shape_cast %127 : vector<16xf32> to vector<16x1xf32>
    %cst_58 = arith.constant 3.200000e+01 : f32
    %129 = vector.broadcast %cst_58 : f32 to vector<16x1xf32>
    %130 = arith.divf %128, %129 : vector<16x1xf32>
    %131 = arith.mulf %122, %122 : vector<16x32xf32>
    %cst_59 = arith.constant dense<0.000000e+00> : vector<16xf32>
    %132 = vector.multi_reduction <add>, %131, %cst_59 [1] : vector<16x32xf32> to vector<16xf32>
    %133 = vector.shape_cast %132 : vector<16xf32> to vector<16x1xf32>
    %cst_60 = arith.constant 3.200000e+01 : f32
    %134 = vector.broadcast %cst_60 : f32 to vector<16x1xf32>
    %135 = arith.divf %133, %134 : vector<16x1xf32>
    %136 = arith.mulf %130, %130 : vector<16x1xf32>
    %137 = arith.subf %135, %136 : vector<16x1xf32>
    %138 = vector.broadcast %130 : vector<16x1xf32> to vector<16x32xf32>
    %139 = arith.subf %122, %138 : vector<16x32xf32>
    %cst_61 = arith.constant 9.99999974E-6 : f32
    %140 = vector.broadcast %cst_61 : f32 to vector<16x1xf32>
    %141 = arith.addf %137, %140 : vector<16x1xf32>
    %142 = math.rsqrt %141 : vector<16x1xf32>
    %143 = vector.broadcast %142 : vector<16x1xf32> to vector<16x32xf32>
    %144 = arith.mulf %139, %143 : vector<16x32xf32>
    %145 = vector.broadcast %124 : vector<1x32xf32> to vector<16x32xf32>
    %146 = arith.mulf %144, %145 : vector<16x32xf32>
    %147 = vector.broadcast %126 : vector<1x32xf32> to vector<16x32xf32>
    %148 = arith.addf %146, %147 : vector<16x32xf32>
    %149 = arith.truncf %148 : vector<16x32xf32> to vector<16x32xbf16>
    %c0_62 = arith.constant 0 : index
    %c0_63 = arith.constant 0 : index
    %c0_64 = arith.constant 0 : index
    %150 = vector.load %arg10[%c0_62, %c0_63, %c0_64] : memref<1x32x96xbf16, #tpu.memory_space<vmem>>, vector<1x32x32xbf16>
    %151 = vector.shape_cast %150 : vector<1x32x32xbf16> to vector<32x32xbf16>
    %cst_65 = arith.constant dense<0.000000e+00> : vector<16x32xf32>
    %152 = tpu.matmul %149, %151, %cst_65 {dimension_numbers = #tpu.dot_dimension_numbers<[1], [0], [0], [1], [0, 0, 1, 1], [], []>} : vector<16x32xbf16>, vector<32x32xbf16>, vector<16x32xf32> -> vector<16x32xf32>
    %c0_66 = arith.constant 0 : index
    %c0_67 = arith.constant 0 : index
    %c0_68 = arith.constant 0 : index
    %153 = vector.load %arg11[%c0_66, %c0_67, %c0_68] : memref<1x1x96xf32, #tpu.memory_space<vmem>>, vector<1x1x32xf32>
    %154 = vector.shape_cast %153 : vector<1x1x32xf32> to vector<1x32xf32>
    %155 = vector.broadcast %154 : vector<1x32xf32> to vector<16x32xf32>
    %156 = arith.addf %152, %155 : vector<16x32xf32>
    %157 = arith.truncf %156 : vector<16x32xf32> to vector<16x32xbf16>
    %158 = vector.shape_cast %157 : vector<16x32xbf16> to vector<2x8x32xbf16>
    %c0_69 = arith.constant 0 : index
    %c0_70 = arith.constant 0 : index
    %c32 = arith.constant 32 : index
    %159 = vector.load %arg10[%c0_69, %c0_70, %c32] : memref<1x32x96xbf16, #tpu.memory_space<vmem>>, vector<1x32x64xbf16>
    %160 = vector.shape_cast %159 : vector<1x32x64xbf16> to vector<32x64xbf16>
    %cst_71 = arith.constant dense<0.000000e+00> : vector<16x64xf32>
    %161 = tpu.matmul %6, %160, %cst_71 {dimension_numbers = #tpu.dot_dimension_numbers<[1], [0], [0], [1], [0, 0, 1, 1], [], []>} : vector<16x32xbf16>, vector<32x64xbf16>, vector<16x64xf32> -> vector<16x64xf32>
    %c0_72 = arith.constant 0 : index
    %c0_73 = arith.constant 0 : index
    %c32_74 = arith.constant 32 : index
    %162 = vector.load %arg11[%c0_72, %c0_73, %c32_74] : memref<1x1x96xf32, #tpu.memory_space<vmem>>, vector<1x1x64xf32>
    %163 = vector.shape_cast %162 : vector<1x1x64xf32> to vector<1x64xf32>
    %164 = vector.broadcast %163 : vector<1x64xf32> to vector<16x64xf32>
    %165 = arith.addf %161, %164 : vector<16x64xf32>
    %166 = arith.truncf %165 : vector<16x64xf32> to vector<16x64xbf16>
    %167 = vector.extract_strided_slice %166 {offsets = [0, 0], sizes = [16, 32], strides = [1, 1]} : vector<16x64xbf16> to vector<16x32xbf16>
    %168 = vector.shape_cast %167 : vector<16x32xbf16> to vector<2x8x32xbf16>
    %169 = vector.extract_strided_slice %166 {offsets = [0, 32], sizes = [16, 32], strides = [1, 1]} : vector<16x64xbf16> to vector<16x32xbf16>
    %170 = vector.shape_cast %169 : vector<16x32xbf16> to vector<2x8x32xbf16>
    %171 = vector.extract_strided_slice %158 {offsets = [0, 0, 0], sizes = [2, 8, 8], strides = [1, 1, 1]} : vector<2x8x32xbf16> to vector<2x8x8xbf16>
    %172 = vector.extract_strided_slice %168 {offsets = [0, 0, 0], sizes = [2, 8, 8], strides = [1, 1, 1]} : vector<2x8x32xbf16> to vector<2x8x8xbf16>
    "tpu.trace_start"() <{level = 10 : i32, message = "bqd,bkd->bqk"}> : () -> ()
    %cst_75 = arith.constant dense<0.000000e+00> : vector<2x8x8xf32>
    %173 = tpu.matmul %171, %172, %cst_75 {dimension_numbers = #tpu.dot_dimension_numbers<[2], [2], [1], [1], [0, 0, 0, 1, 1, 1], [0], [0]>} : vector<2x8x8xbf16>, vector<2x8x8xbf16>, vector<2x8x8xf32> -> vector<2x8x8xf32>
    "tpu.trace_stop"() : () -> ()
    %cst_76 = arith.constant 0.353553385 : f32
    %174 = vector.broadcast %cst_76 : f32 to vector<2x8x8xf32>
    %175 = arith.mulf %173, %174 : vector<2x8x8xf32>
    %176 = arith.addf %175, %7 : vector<2x8x8xf32>
    %cst_77 = arith.constant dense<0xFF800000> : vector<2x8xf32>
    %177 = vector.multi_reduction <maximumf>, %176, %cst_77 [2] : vector<2x8x8xf32> to vector<2x8xf32>
    %178 = vector.shape_cast %177 : vector<2x8xf32> to vector<2x8x1xf32>
    %179 = vector.broadcast %178 : vector<2x8x1xf32> to vector<2x8x8xf32>
    %180 = arith.subf %176, %179 : vector<2x8x8xf32>
    %181 = math.exp %180 : vector<2x8x8xf32>
    %cst_78 = arith.constant dense<0.000000e+00> : vector<2x8xf32>
    %182 = vector.multi_reduction <add>, %181, %cst_78 [2] : vector<2x8x8xf32> to vector<2x8xf32>
    %183 = vector.shape_cast %182 : vector<2x8xf32> to vector<2x8x1xf32>
    %184 = tpu.reciprocal %183 {approx = true} : vector<2x8x1xf32> -> vector<2x8x1xf32>
    %185 = vector.broadcast %184 : vector<2x8x1xf32> to vector<2x8x8xf32>
    %186 = arith.mulf %181, %185 : vector<2x8x8xf32>
    %187 = arith.truncf %186 : vector<2x8x8xf32> to vector<2x8x8xbf16>
    %188 = vector.extract_strided_slice %170 {offsets = [0, 0, 0], sizes = [2, 8, 8], strides = [1, 1, 1]} : vector<2x8x32xbf16> to vector<2x8x8xbf16>
    "tpu.trace_start"() <{level = 10 : i32, message = "bqk,bkd->bqd"}> : () -> ()
    %cst_79 = arith.constant dense<0.000000e+00> : vector<2x8x8xf32>
    %189 = tpu.matmul %187, %188, %cst_79 {dimension_numbers = #tpu.dot_dimension_numbers<[2], [1], [1], [2], [0, 0, 0, 1, 1, 2], [0], [0]>} : vector<2x8x8xbf16>, vector<2x8x8xbf16>, vector<2x8x8xf32> -> vector<2x8x8xf32>
    "tpu.trace_stop"() : () -> ()
    %190 = vector.shape_cast %189 : vector<2x8x8xf32> to vector<16x8xf32>
    %191 = arith.truncf %190 : vector<16x8xf32> to vector<16x8xbf16>
    %c0_80 = arith.constant 0 : index
    %c0_81 = arith.constant 0 : index
    %c0_82 = arith.constant 0 : index
    %192 = vector.load %arg12[%c0_80, %c0_81, %c0_82] : memref<1x32x32xbf16, #tpu.memory_space<vmem>>, vector<1x8x32xbf16>
    %193 = vector.shape_cast %192 : vector<1x8x32xbf16> to vector<8x32xbf16>
    %cst_83 = arith.constant dense<0.000000e+00> : vector<16x32xf32>
    %194 = tpu.matmul %191, %193, %cst_83 {dimension_numbers = #tpu.dot_dimension_numbers<[1], [0], [0], [1], [0, 0, 1, 1], [], []>} : vector<16x8xbf16>, vector<8x32xbf16>, vector<16x32xf32> -> vector<16x32xf32>
    %195 = vector.extract_strided_slice %158 {offsets = [0, 0, 8], sizes = [2, 8, 8], strides = [1, 1, 1]} : vector<2x8x32xbf16> to vector<2x8x8xbf16>
    %196 = vector.extract_strided_slice %168 {offsets = [0, 0, 8], sizes = [2, 8, 8], strides = [1, 1, 1]} : vector<2x8x32xbf16> to vector<2x8x8xbf16>
    "tpu.trace_start"() <{level = 10 : i32, message = "bqd,bkd->bqk"}> : () -> ()
    %cst_84 = arith.constant dense<0.000000e+00> : vector<2x8x8xf32>
    %197 = tpu.matmul %195, %196, %cst_84 {dimension_numbers = #tpu.dot_dimension_numbers<[2], [2], [1], [1], [0, 0, 0, 1, 1, 1], [0], [0]>} : vector<2x8x8xbf16>, vector<2x8x8xbf16>, vector<2x8x8xf32> -> vector<2x8x8xf32>
    "tpu.trace_stop"() : () -> ()
    %cst_85 = arith.constant 0.353553385 : f32
    %198 = vector.broadcast %cst_85 : f32 to vector<2x8x8xf32>
    %199 = arith.mulf %197, %198 : vector<2x8x8xf32>
    %200 = arith.addf %199, %7 : vector<2x8x8xf32>
    %cst_86 = arith.constant dense<0xFF800000> : vector<2x8xf32>
    %201 = vector.multi_reduction <maximumf>, %200, %cst_86 [2] : vector<2x8x8xf32> to vector<2x8xf32>
    %202 = vector.shape_cast %201 : vector<2x8xf32> to vector<2x8x1xf32>
    %203 = vector.broadcast %202 : vector<2x8x1xf32> to vector<2x8x8xf32>
    %204 = arith.subf %200, %203 : vector<2x8x8xf32>
    %205 = math.exp %204 : vector<2x8x8xf32>
    %cst_87 = arith.constant dense<0.000000e+00> : vector<2x8xf32>
    %206 = vector.multi_reduction <add>, %205, %cst_87 [2] : vector<2x8x8xf32> to vector<2x8xf32>
    %207 = vector.shape_cast %206 : vector<2x8xf32> to vector<2x8x1xf32>
    %208 = tpu.reciprocal %207 {approx = true} : vector<2x8x1xf32> -> vector<2x8x1xf32>
    %209 = vector.broadcast %208 : vector<2x8x1xf32> to vector<2x8x8xf32>
    %210 = arith.mulf %205, %209 : vector<2x8x8xf32>
    %211 = arith.truncf %210 : vector<2x8x8xf32> to vector<2x8x8xbf16>
    %212 = vector.extract_strided_slice %170 {offsets = [0, 0, 8], sizes = [2, 8, 8], strides = [1, 1, 1]} : vector<2x8x32xbf16> to vector<2x8x8xbf16>
    "tpu.trace_start"() <{level = 10 : i32, message = "bqk,bkd->bqd"}> : () -> ()
    %cst_88 = arith.constant dense<0.000000e+00> : vector<2x8x8xf32>
    %213 = tpu.matmul %211, %212, %cst_88 {dimension_numbers = #tpu.dot_dimension_numbers<[2], [1], [1], [2], [0, 0, 0, 1, 1, 2], [0], [0]>} : vector<2x8x8xbf16>, vector<2x8x8xbf16>, vector<2x8x8xf32> -> vector<2x8x8xf32>
    "tpu.trace_stop"() : () -> ()
    %214 = vector.shape_cast %213 : vector<2x8x8xf32> to vector<16x8xf32>
    %215 = arith.truncf %214 : vector<16x8xf32> to vector<16x8xbf16>
    %c0_89 = arith.constant 0 : index
    %c8_90 = arith.constant 8 : index
    %c0_91 = arith.constant 0 : index
    %216 = vector.load %arg12[%c0_89, %c8_90, %c0_91] : memref<1x32x32xbf16, #tpu.memory_space<vmem>>, vector<1x8x32xbf16>
    %217 = vector.shape_cast %216 : vector<1x8x32xbf16> to vector<8x32xbf16>
    %cst_92 = arith.constant dense<0.000000e+00> : vector<16x32xf32>
    %218 = tpu.matmul %215, %217, %cst_92 {dimension_numbers = #tpu.dot_dimension_numbers<[1], [0], [0], [1], [0, 0, 1, 1], [], []>} : vector<16x8xbf16>, vector<8x32xbf16>, vector<16x32xf32> -> vector<16x32xf32>
    %219 = arith.addf %194, %218 : vector<16x32xf32>
    %220 = vector.extract_strided_slice %158 {offsets = [0, 0, 16], sizes = [2, 8, 8], strides = [1, 1, 1]} : vector<2x8x32xbf16> to vector<2x8x8xbf16>
    %221 = vector.extract_strided_slice %168 {offsets = [0, 0, 16], sizes = [2, 8, 8], strides = [1, 1, 1]} : vector<2x8x32xbf16> to vector<2x8x8xbf16>
    "tpu.trace_start"() <{level = 10 : i32, message = "bqd,bkd->bqk"}> : () -> ()
    %cst_93 = arith.constant dense<0.000000e+00> : vector<2x8x8xf32>
    %222 = tpu.matmul %220, %221, %cst_93 {dimension_numbers = #tpu.dot_dimension_numbers<[2], [2], [1], [1], [0, 0, 0, 1, 1, 1], [0], [0]>} : vector<2x8x8xbf16>, vector<2x8x8xbf16>, vector<2x8x8xf32> -> vector<2x8x8xf32>
    "tpu.trace_stop"() : () -> ()
    %cst_94 = arith.constant 0.353553385 : f32
    %223 = vector.broadcast %cst_94 : f32 to vector<2x8x8xf32>
    %224 = arith.mulf %222, %223 : vector<2x8x8xf32>
    %225 = arith.addf %224, %7 : vector<2x8x8xf32>
    %cst_95 = arith.constant dense<0xFF800000> : vector<2x8xf32>
    %226 = vector.multi_reduction <maximumf>, %225, %cst_95 [2] : vector<2x8x8xf32> to vector<2x8xf32>
    %227 = vector.shape_cast %226 : vector<2x8xf32> to vector<2x8x1xf32>
    %228 = vector.broadcast %227 : vector<2x8x1xf32> to vector<2x8x8xf32>
    %229 = arith.subf %225, %228 : vector<2x8x8xf32>
    %230 = math.exp %229 : vector<2x8x8xf32>
    %cst_96 = arith.constant dense<0.000000e+00> : vector<2x8xf32>
    %231 = vector.multi_reduction <add>, %230, %cst_96 [2] : vector<2x8x8xf32> to vector<2x8xf32>
    %232 = vector.shape_cast %231 : vector<2x8xf32> to vector<2x8x1xf32>
    %233 = tpu.reciprocal %232 {approx = true} : vector<2x8x1xf32> -> vector<2x8x1xf32>
    %234 = vector.broadcast %233 : vector<2x8x1xf32> to vector<2x8x8xf32>
    %235 = arith.mulf %230, %234 : vector<2x8x8xf32>
    %236 = arith.truncf %235 : vector<2x8x8xf32> to vector<2x8x8xbf16>
    %237 = vector.extract_strided_slice %170 {offsets = [0, 0, 16], sizes = [2, 8, 8], strides = [1, 1, 1]} : vector<2x8x32xbf16> to vector<2x8x8xbf16>
    "tpu.trace_start"() <{level = 10 : i32, message = "bqk,bkd->bqd"}> : () -> ()
    %cst_97 = arith.constant dense<0.000000e+00> : vector<2x8x8xf32>
    %238 = tpu.matmul %236, %237, %cst_97 {dimension_numbers = #tpu.dot_dimension_numbers<[2], [1], [1], [2], [0, 0, 0, 1, 1, 2], [0], [0]>} : vector<2x8x8xbf16>, vector<2x8x8xbf16>, vector<2x8x8xf32> -> vector<2x8x8xf32>
    "tpu.trace_stop"() : () -> ()
    %239 = vector.shape_cast %238 : vector<2x8x8xf32> to vector<16x8xf32>
    %240 = arith.truncf %239 : vector<16x8xf32> to vector<16x8xbf16>
    %c0_98 = arith.constant 0 : index
    %c16_99 = arith.constant 16 : index
    %c0_100 = arith.constant 0 : index
    %241 = vector.load %arg12[%c0_98, %c16_99, %c0_100] : memref<1x32x32xbf16, #tpu.memory_space<vmem>>, vector<1x8x32xbf16>
    %242 = vector.shape_cast %241 : vector<1x8x32xbf16> to vector<8x32xbf16>
    %cst_101 = arith.constant dense<0.000000e+00> : vector<16x32xf32>
    %243 = tpu.matmul %240, %242, %cst_101 {dimension_numbers = #tpu.dot_dimension_numbers<[1], [0], [0], [1], [0, 0, 1, 1], [], []>} : vector<16x8xbf16>, vector<8x32xbf16>, vector<16x32xf32> -> vector<16x32xf32>
    %244 = arith.addf %219, %243 : vector<16x32xf32>
    %245 = vector.extract_strided_slice %158 {offsets = [0, 0, 24], sizes = [2, 8, 8], strides = [1, 1, 1]} : vector<2x8x32xbf16> to vector<2x8x8xbf16>
    %246 = vector.extract_strided_slice %168 {offsets = [0, 0, 24], sizes = [2, 8, 8], strides = [1, 1, 1]} : vector<2x8x32xbf16> to vector<2x8x8xbf16>
    "tpu.trace_start"() <{level = 10 : i32, message = "bqd,bkd->bqk"}> : () -> ()
    %cst_102 = arith.constant dense<0.000000e+00> : vector<2x8x8xf32>
    %247 = tpu.matmul %245, %246, %cst_102 {dimension_numbers = #tpu.dot_dimension_numbers<[2], [2], [1], [1], [0, 0, 0, 1, 1, 1], [0], [0]>} : vector<2x8x8xbf16>, vector<2x8x8xbf16>, vector<2x8x8xf32> -> vector<2x8x8xf32>
    "tpu.trace_stop"() : () -> ()
    %cst_103 = arith.constant 0.353553385 : f32
    %248 = vector.broadcast %cst_103 : f32 to vector<2x8x8xf32>
    %249 = arith.mulf %247, %248 : vector<2x8x8xf32>
    %250 = arith.addf %249, %7 : vector<2x8x8xf32>
    %cst_104 = arith.constant dense<0xFF800000> : vector<2x8xf32>
    %251 = vector.multi_reduction <maximumf>, %250, %cst_104 [2] : vector<2x8x8xf32> to vector<2x8xf32>
    %252 = vector.shape_cast %251 : vector<2x8xf32> to vector<2x8x1xf32>
    %253 = vector.broadcast %252 : vector<2x8x1xf32> to vector<2x8x8xf32>
    %254 = arith.subf %250, %253 : vector<2x8x8xf32>
    %255 = math.exp %254 : vector<2x8x8xf32>
    %cst_105 = arith.constant dense<0.000000e+00> : vector<2x8xf32>
    %256 = vector.multi_reduction <add>, %255, %cst_105 [2] : vector<2x8x8xf32> to vector<2x8xf32>
    %257 = vector.shape_cast %256 : vector<2x8xf32> to vector<2x8x1xf32>
    %258 = tpu.reciprocal %257 {approx = true} : vector<2x8x1xf32> -> vector<2x8x1xf32>
    %259 = vector.broadcast %258 : vector<2x8x1xf32> to vector<2x8x8xf32>
    %260 = arith.mulf %255, %259 : vector<2x8x8xf32>
    %261 = arith.truncf %260 : vector<2x8x8xf32> to vector<2x8x8xbf16>
    %262 = vector.extract_strided_slice %170 {offsets = [0, 0, 24], sizes = [2, 8, 8], strides = [1, 1, 1]} : vector<2x8x32xbf16> to vector<2x8x8xbf16>
    "tpu.trace_start"() <{level = 10 : i32, message = "bqk,bkd->bqd"}> : () -> ()
    %cst_106 = arith.constant dense<0.000000e+00> : vector<2x8x8xf32>
    %263 = tpu.matmul %261, %262, %cst_106 {dimension_numbers = #tpu.dot_dimension_numbers<[2], [1], [1], [2], [0, 0, 0, 1, 1, 2], [0], [0]>} : vector<2x8x8xbf16>, vector<2x8x8xbf16>, vector<2x8x8xf32> -> vector<2x8x8xf32>
    "tpu.trace_stop"() : () -> ()
    %264 = vector.shape_cast %263 : vector<2x8x8xf32> to vector<16x8xf32>
    %265 = arith.truncf %264 : vector<16x8xf32> to vector<16x8xbf16>
    %c0_107 = arith.constant 0 : index
    %c24_108 = arith.constant 24 : index
    %c0_109 = arith.constant 0 : index
    %266 = vector.load %arg12[%c0_107, %c24_108, %c0_109] : memref<1x32x32xbf16, #tpu.memory_space<vmem>>, vector<1x8x32xbf16>
    %267 = vector.shape_cast %266 : vector<1x8x32xbf16> to vector<8x32xbf16>
    %cst_110 = arith.constant dense<0.000000e+00> : vector<16x32xf32>
    %268 = tpu.matmul %265, %267, %cst_110 {dimension_numbers = #tpu.dot_dimension_numbers<[1], [0], [0], [1], [0, 0, 1, 1], [], []>} : vector<16x8xbf16>, vector<8x32xbf16>, vector<16x32xf32> -> vector<16x32xf32>
    %269 = arith.addf %244, %268 : vector<16x32xf32>
    %c0_111 = arith.constant 0 : index
    %c0_112 = arith.constant 0 : index
    %c0_113 = arith.constant 0 : index
    %270 = vector.load %arg13[%c0_111, %c0_112, %c0_113] : memref<1x1x32xf32, #tpu.memory_space<vmem>>, vector<1x1x32xf32>
    %271 = vector.shape_cast %270 : vector<1x1x32xf32> to vector<1x32xf32>
    %272 = vector.broadcast %271 : vector<1x32xf32> to vector<16x32xf32>
    %273 = arith.addf %269, %272 : vector<16x32xf32>
    %274 = arith.addf %148, %273 : vector<16x32xf32>
    %c0_114 = arith.constant 0 : index
    %c1 = arith.constant 1 : index
    %c0_115 = arith.constant 0 : index
    %275 = vector.load %arg18[%c0_114, %c1, %c0_115] : memref<1x3x32xf32, #tpu.memory_space<vmem>>, vector<1x1x32xf32>
    %276 = vector.shape_cast %275 : vector<1x1x32xf32> to vector<1x32xf32>
    %c0_116 = arith.constant 0 : index
    %c1_117 = arith.constant 1 : index
    %c0_118 = arith.constant 0 : index
    %277 = vector.load %arg19[%c0_116, %c1_117, %c0_118] : memref<1x3x32xf32, #tpu.memory_space<vmem>>, vector<1x1x32xf32>
    %278 = vector.shape_cast %277 : vector<1x1x32xf32> to vector<1x32xf32>
    %cst_119 = arith.constant dense<0.000000e+00> : vector<16xf32>
    %279 = vector.multi_reduction <add>, %274, %cst_119 [1] : vector<16x32xf32> to vector<16xf32>
    %280 = vector.shape_cast %279 : vector<16xf32> to vector<16x1xf32>
    %cst_120 = arith.constant 3.200000e+01 : f32
    %281 = vector.broadcast %cst_120 : f32 to vector<16x1xf32>
    %282 = arith.divf %280, %281 : vector<16x1xf32>
    %283 = arith.mulf %274, %274 : vector<16x32xf32>
    %cst_121 = arith.constant dense<0.000000e+00> : vector<16xf32>
    %284 = vector.multi_reduction <add>, %283, %cst_121 [1] : vector<16x32xf32> to vector<16xf32>
    %285 = vector.shape_cast %284 : vector<16xf32> to vector<16x1xf32>
    %cst_122 = arith.constant 3.200000e+01 : f32
    %286 = vector.broadcast %cst_122 : f32 to vector<16x1xf32>
    %287 = arith.divf %285, %286 : vector<16x1xf32>
    %288 = arith.mulf %282, %282 : vector<16x1xf32>
    %289 = arith.subf %287, %288 : vector<16x1xf32>
    %290 = vector.broadcast %282 : vector<16x1xf32> to vector<16x32xf32>
    %291 = arith.subf %274, %290 : vector<16x32xf32>
    %cst_123 = arith.constant 9.99999974E-6 : f32
    %292 = vector.broadcast %cst_123 : f32 to vector<16x1xf32>
    %293 = arith.addf %289, %292 : vector<16x1xf32>
    %294 = math.rsqrt %293 : vector<16x1xf32>
    %295 = vector.broadcast %294 : vector<16x1xf32> to vector<16x32xf32>
    %296 = arith.mulf %291, %295 : vector<16x32xf32>
    %297 = vector.broadcast %276 : vector<1x32xf32> to vector<16x32xf32>
    %298 = arith.mulf %296, %297 : vector<16x32xf32>
    %299 = vector.broadcast %278 : vector<1x32xf32> to vector<16x32xf32>
    %300 = arith.addf %298, %299 : vector<16x32xf32>
    %301 = arith.truncf %300 : vector<16x32xf32> to vector<16x32xbf16>
    %c0_124 = arith.constant 0 : index
    %c0_125 = arith.constant 0 : index
    %c0_126 = arith.constant 0 : index
    %302 = vector.load %arg14[%c0_124, %c0_125, %c0_126] : memref<1x32x64xbf16, #tpu.memory_space<vmem>>, vector<1x32x64xbf16>
    %303 = vector.shape_cast %302 : vector<1x32x64xbf16> to vector<32x64xbf16>
    %cst_127 = arith.constant dense<0.000000e+00> : vector<16x64xf32>
    %304 = tpu.matmul %301, %303, %cst_127 {dimension_numbers = #tpu.dot_dimension_numbers<[1], [0], [0], [1], [0, 0, 1, 1], [], []>} : vector<16x32xbf16>, vector<32x64xbf16>, vector<16x64xf32> -> vector<16x64xf32>
    %c0_128 = arith.constant 0 : index
    %c0_129 = arith.constant 0 : index
    %c0_130 = arith.constant 0 : index
    %305 = vector.load %arg15[%c0_128, %c0_129, %c0_130] : memref<1x1x64xf32, #tpu.memory_space<vmem>>, vector<1x1x64xf32>
    %306 = vector.shape_cast %305 : vector<1x1x64xf32> to vector<1x64xf32>
    %307 = vector.broadcast %306 : vector<1x64xf32> to vector<16x64xf32>
    %308 = arith.addf %304, %307 : vector<16x64xf32>
    %cst_131 = arith.constant 0.000000e+00 : f32
    %309 = vector.broadcast %cst_131 : f32 to vector<16x64xf32>
    %310 = arith.maximumf %308, %309 : vector<16x64xf32>
    %311 = arith.truncf %310 : vector<16x64xf32> to vector<16x64xbf16>
    %c0_132 = arith.constant 0 : index
    %c0_133 = arith.constant 0 : index
    %c0_134 = arith.constant 0 : index
    %312 = vector.load %arg16[%c0_132, %c0_133, %c0_134] : memref<1x64x32xbf16, #tpu.memory_space<vmem>>, vector<1x64x32xbf16>
    %313 = vector.shape_cast %312 : vector<1x64x32xbf16> to vector<64x32xbf16>
    %cst_135 = arith.constant dense<0.000000e+00> : vector<16x32xf32>
    %314 = tpu.matmul %311, %313, %cst_135 {dimension_numbers = #tpu.dot_dimension_numbers<[1], [0], [0], [1], [0, 0, 1, 1], [], []>} : vector<16x64xbf16>, vector<64x32xbf16>, vector<16x32xf32> -> vector<16x32xf32>
    %c0_136 = arith.constant 0 : index
    %c0_137 = arith.constant 0 : index
    %c0_138 = arith.constant 0 : index
    %315 = vector.load %arg17[%c0_136, %c0_137, %c0_138] : memref<1x1x32xf32, #tpu.memory_space<vmem>>, vector<1x1x32xf32>
    %316 = vector.shape_cast %315 : vector<1x1x32xf32> to vector<1x32xf32>
    %317 = vector.broadcast %316 : vector<1x32xf32> to vector<16x32xf32>
    %318 = arith.addf %314, %317 : vector<16x32xf32>
    %319 = arith.addf %300, %318 : vector<16x32xf32>
    %c0_139 = arith.constant 0 : index
    %c2 = arith.constant 2 : index
    %c0_140 = arith.constant 0 : index
    %320 = vector.load %arg18[%c0_139, %c2, %c0_140] : memref<1x3x32xf32, #tpu.memory_space<vmem>>, vector<1x1x32xf32>
    %321 = vector.shape_cast %320 : vector<1x1x32xf32> to vector<1x32xf32>
    %c0_141 = arith.constant 0 : index
    %c2_142 = arith.constant 2 : index
    %c0_143 = arith.constant 0 : index
    %322 = vector.load %arg19[%c0_141, %c2_142, %c0_143] : memref<1x3x32xf32, #tpu.memory_space<vmem>>, vector<1x1x32xf32>
    %323 = vector.shape_cast %322 : vector<1x1x32xf32> to vector<1x32xf32>
    %cst_144 = arith.constant dense<0.000000e+00> : vector<16xf32>
    %324 = vector.multi_reduction <add>, %319, %cst_144 [1] : vector<16x32xf32> to vector<16xf32>
    %325 = vector.shape_cast %324 : vector<16xf32> to vector<16x1xf32>
    %cst_145 = arith.constant 3.200000e+01 : f32
    %326 = vector.broadcast %cst_145 : f32 to vector<16x1xf32>
    %327 = arith.divf %325, %326 : vector<16x1xf32>
    %328 = arith.mulf %319, %319 : vector<16x32xf32>
    %cst_146 = arith.constant dense<0.000000e+00> : vector<16xf32>
    %329 = vector.multi_reduction <add>, %328, %cst_146 [1] : vector<16x32xf32> to vector<16xf32>
    %330 = vector.shape_cast %329 : vector<16xf32> to vector<16x1xf32>
    %cst_147 = arith.constant 3.200000e+01 : f32
    %331 = vector.broadcast %cst_147 : f32 to vector<16x1xf32>
    %332 = arith.divf %330, %331 : vector<16x1xf32>
    %333 = arith.mulf %327, %327 : vector<16x1xf32>
    %334 = arith.subf %332, %333 : vector<16x1xf32>
    %335 = vector.broadcast %327 : vector<16x1xf32> to vector<16x32xf32>
    %336 = arith.subf %319, %335 : vector<16x32xf32>
    %cst_148 = arith.constant 9.99999974E-6 : f32
    %337 = vector.broadcast %cst_148 : f32 to vector<16x1xf32>
    %338 = arith.addf %334, %337 : vector<16x1xf32>
    %339 = math.rsqrt %338 : vector<16x1xf32>
    %340 = vector.broadcast %339 : vector<16x1xf32> to vector<16x32xf32>
    %341 = arith.mulf %336, %340 : vector<16x32xf32>
    %342 = vector.broadcast %321 : vector<1x32xf32> to vector<16x32xf32>
    %343 = arith.mulf %341, %342 : vector<16x32xf32>
    %344 = vector.broadcast %323 : vector<1x32xf32> to vector<16x32xf32>
    %345 = arith.addf %343, %344 : vector<16x32xf32>
    %346 = vector.shape_cast %345 : vector<16x32xf32> to vector<2x8x32xf32>
    %c0_149 = arith.constant 0 : index
    %c0_150 = arith.constant 0 : index
    %c0_151 = arith.constant 0 : index
    %347 = vector.load %arg20[%c0_149, %c0_150, %c0_151] : memref<2x8x32xf32, #tpu.memory_space<vmem>>, vector<2x8x32xf32>
    tpu.vector_store %arg20[%c0_149, %c0_150, %c0_151], %346 {strides = array<i32>} : memref<2x8x32xf32, #tpu.memory_space<vmem>>, vector<2x8x32xf32>,
    return
  }
  func.func @transform_0(%arg0: i32, %arg1: i32) -> (i32, i32, i32) {
    %c0_i32 = arith.constant 0 : i32
    %c0_i32_0 = arith.constant 0 : i32
    %c0_i32_1 = arith.constant 0 : i32
    return %arg0, %c0_i32, %c0_i32_0 : i32, i32, i32
  }
  func.func @transform_1(%arg0: i32, %arg1: i32) -> (i32, i32, i32) {
    %c0_i32 = arith.constant 0 : i32
    %c0_i32_0 = arith.constant 0 : i32
    %c0_i32_1 = arith.constant 0 : i32
    return %arg0, %c0_i32, %c0_i32_0 : i32, i32, i32
  }
  func.func @transform_2(%arg0: i32, %arg1: i32) -> (i32, i32, i32) {
    %c0_i32 = arith.constant 0 : i32
    %c0_i32_0 = arith.constant 0 : i32
    %c0_i32_1 = arith.constant 0 : i32
    return %arg0, %c0_i32, %c0_i32_0 : i32, i32, i32
  }
  func.func @transform_3(%arg0: i32, %arg1: i32) -> (i32, i32) {
    %c0_i32 = arith.constant 0 : i32
    %c0_i32_0 = arith.constant 0 : i32
    %c0_i32_1 = arith.constant 0 : i32
    return %c0_i32, %c0_i32_0 : i32, i32
  }
  func.func @transform_4(%arg0: i32, %arg1: i32) -> (i32, i32, i32) {
    %c0_i32 = arith.constant 0 : i32
    %c0_i32_0 = arith.constant 0 : i32
    %c0_i32_1 = arith.constant 0 : i32
    return %arg1, %c0_i32, %c0_i32_0 : i32, i32, i32
  }
  func.func @transform_5(%arg0: i32, %arg1: i32) -> (i32, i32, i32) {
    %c0_i32 = arith.constant 0 : i32
    %c0_i32_0 = arith.constant 0 : i32
    %c0_i32_1 = arith.constant 0 : i32
    return %arg1, %c0_i32, %c0_i32_0 : i32, i32, i32
  }
  func.func @transform_6(%arg0: i32, %arg1: i32) -> (i32, i32, i32) {
    %c0_i32 = arith.constant 0 : i32
    %c0_i32_0 = arith.constant 0 : i32
    %c0_i32_1 = arith.constant 0 : i32
    return %arg1, %c0_i32, %c0_i32_0 : i32, i32, i32
  }
  func.func @transform_7(%arg0: i32, %arg1: i32) -> (i32, i32, i32) {
    %c0_i32 = arith.constant 0 : i32
    %c0_i32_0 = arith.constant 0 : i32
    %c0_i32_1 = arith.constant 0 : i32
    return %arg1, %c0_i32, %c0_i32_0 : i32, i32, i32
  }
  func.func @transform_8(%arg0: i32, %arg1: i32) -> (i32, i32, i32) {
    %c0_i32 = arith.constant 0 : i32
    %c0_i32_0 = arith.constant 0 : i32
    %c0_i32_1 = arith.constant 0 : i32
    return %arg1, %c0_i32, %c0_i32_0 : i32, i32, i32
  }
  func.func @transform_9(%arg0: i32, %arg1: i32) -> (i32, i32, i32) {
    %c0_i32 = arith.constant 0 : i32
    %c0_i32_0 = arith.constant 0 : i32
    %c0_i32_1 = arith.constant 0 : i32
    return %arg1, %c0_i32, %c0_i32_0 : i32, i32, i32
  }
  func.func @transform_10(%arg0: i32, %arg1: i32) -> (i32, i32, i32) {
    %c0_i32 = arith.constant 0 : i32
    %c0_i32_0 = arith.constant 0 : i32
    %c0_i32_1 = arith.constant 0 : i32
    return %arg1, %c0_i32, %c0_i32_0 : i32, i32, i32
  }
  func.func @transform_11(%arg0: i32, %arg1: i32) -> (i32, i32, i32) {
    %c0_i32 = arith.constant 0 : i32
    %c0_i32_0 = arith.constant 0 : i32
    %c0_i32_1 = arith.constant 0 : i32
    return %arg1, %c0_i32, %c0_i32_0 : i32, i32, i32
  }
  func.func @transform_12(%arg0: i32, %arg1: i32) -> (i32, i32, i32) {
    %c0_i32 = arith.constant 0 : i32
    %c0_i32_0 = arith.constant 0 : i32
    %c0_i32_1 = arith.constant 0 : i32
    return %arg1, %c0_i32, %c0_i32_0 : i32, i32, i32
  }
  func.func @transform_13(%arg0: i32, %arg1: i32) -> (i32, i32, i32) {
    %c0_i32 = arith.constant 0 : i32
    %c0_i32_0 = arith.constant 0 : i32
    %c0_i32_1 = arith.constant 0 : i32
    return %arg1, %c0_i32, %c0_i32_0 : i32, i32, i32
  }
  func.func @transform_14(%arg0: i32, %arg1: i32) -> (i32, i32, i32) {
    %c0_i32 = arith.constant 0 : i32
    %c0_i32_0 = arith.constant 0 : i32
    %c0_i32_1 = arith.constant 0 : i32
    return %arg1, %c0_i32, %c0_i32_0 : i32, i32, i32
  }
  func.func @transform_15(%arg0: i32, %arg1: i32) -> (i32, i32, i32) {
    %c0_i32 = arith.constant 0 : i32
    %c0_i32_0 = arith.constant 0 : i32
    %c0_i32_1 = arith.constant 0 : i32
    return %arg1, %c0_i32, %c0_i32_0 : i32, i32, i32
  }
  func.func @transform_16(%arg0: i32, %arg1: i32) -> (i32, i32, i32) {
    %c0_i32 = arith.constant 0 : i32
    %c0_i32_0 = arith.constant 0 : i32
    %c0_i32_1 = arith.constant 0 : i32
    return %arg1, %c0_i32, %c0_i32_0 : i32, i32, i32
  }
  func.func @transform_17(%arg0: i32, %arg1: i32) -> (i32, i32, i32) {
    %c0_i32 = arith.constant 0 : i32
    %c0_i32_0 = arith.constant 0 : i32
    %c0_i32_1 = arith.constant 0 : i32
    return %arg1, %c0_i32, %c0_i32_0 : i32, i32, i32
  }
  func.func @transform_18(%arg0: i32, %arg1: i32) -> (i32, i32, i32) {
    %c0_i32 = arith.constant 0 : i32
    %c0_i32_0 = arith.constant 0 : i32
    %c0_i32_1 = arith.constant 0 : i32
    return %arg0, %c0_i32, %c0_i32_0 : i32, i32, i32
  }
}

</mosaic_0001>

<bundles_post_ra>
// kernel: tpu_custom_call.1
= control target key start
LH: loop header
LB: loop body
LE: loop exit
PB: predicated region body
PF: predicated region fallthrough
CT: control target
= control target key end

     0   :  { %s7344_s0 = inlined_call_operand.hbm [shape: f32[4,8,32], index: 0, kind: input, shape index: {}]   ;;  %s7345_s1 = inlined_call_operand.hbm [shape: bf16[4,8,32], index: 1, kind: input, shape index: {}]   ;;  %s7346_s2 = inlined_call_operand.hbm [shape: f32[4,1,8], index: 2, kind: input, shape index: {}]   ;;  %s7347_s3 = inlined_call_operand.hbm [shape: f32[8,8], index: 3, kind: input, shape index: {}]   ;;  %s7348_s4 = inlined_call_operand.hbm [shape: bf16[2,32,96], index: 4, kind: input, shape index: {}]   ;;  %s7349_s5 = inlined_call_operand.hbm [shape: f32[2,1,96], index: 5, kind: input, shape index: {}]   ;;  %s7350_s6 = inlined_call_operand.hbm [shape: bf16[2,32,32], index: 6, kind: input, shape index: {}]   ;;  %s7351_s7 = inlined_call_operand.hbm [shape: f32[2,1,32], index: 7, kind: input, shape index: {}]   ;;  %s7352_s8 = inlined_call_operand.hbm [shape: bf16[2,32,96], index: 8, kind: input, shape index: {}]   ;;  %s7353_s9 = inlined_call_operand.hbm [shape: f32[2,1,96], index: 9, kind: input, shape index: {}]   ;;  %s7354_s10 = inlined_call_operand.hbm [shape: bf16[2,32,32], index: 10, kind: input, shape index: {}]   ;;  %s7355_s11 = inlined_call_operand.hbm [shape: f32[2,1,32], index: 11, kind: input, shape index: {}]   ;;  %s7356_s12 = inlined_call_operand.hbm [shape: bf16[2,32,64], index: 12, kind: input, shape index: {}]   ;;  %s7357_s13 = inlined_call_operand.hbm [shape: f32[2,1,64], index: 13, kind: input, shape index: {}]   ;;  %s7358_s14 = inlined_call_operand.hbm [shape: bf16[2,64,32], index: 14, kind: input, shape index: {}]   ;;  %s7359_s15 = inlined_call_operand.hbm [shape: f32[2,1,32], index: 15, kind: input, shape index: {}]   ;;  %s7360_s16 = inlined_call_operand.hbm [shape: f32[2,3,32], index: 16, kind: input, shape index: {}]   ;;  %s7361_s17 = inlined_call_operand.hbm [shape: f32[2,3,32], index: 17, kind: input, shape index: {}]   ;;  %s7362_s18 = inlined_call_operand.hbm [shape: f32[4,8,32], index: 18, kind: output, shape index: {}]  }
   0x1   :  { %7411 = sst [smem:[#allocation62_spill]] %s7344_s0 }
   0x2   :  { %7412 = sst [smem:[#allocation63_spill]] %s7345_s1 }
   0x3   :  { %7413 = sst [smem:[#allocation64_spill]] %s7346_s2 }
   0x4   :  { %7414 = sst [smem:[#allocation65_spill]] %s7347_s3 }
   0x5   :  { %7415 = sst [smem:[#allocation66_spill]] %s7348_s4 }
   0x6   :  { %7416 = sst [smem:[#allocation67_spill]] %s7349_s5 }
   0x7   :  { %7417 = sst [smem:[#allocation68_spill]] %s7350_s6 }
   0x8   :  { %7418 = sst [smem:[#allocation69_spill]] %s7355_s11 }
   0x9   :  { %7419 = sst [smem:[#allocation70_spill]] %s7356_s12 }
   0xa   :  { %7420 = sst [smem:[#allocation71_spill]] %s7357_s13 }
   0xb   :  { %7421 = sst [smem:[#allocation72_spill]] %s7358_s14 }
   0xc   :  { %7422 = sst [smem:[#allocation73_spill]] %s7359_s15 }
   0xd   :  { %7423 = sst [smem:[#allocation74_spill]] %s7360_s16 }
   0xe   :  { %7424 = sst [smem:[#allocation75_spill]] %s7361_s17 }
   0xf   :  { %7425 = sst [smem:[#allocation76_spill]] %s7362_s18 }
  0x10   :  { %23 = vsyncpa [#allocation4], 0 }
  0x11   :  { %25 = vsyncpa [#allocation4 + $0x1], 0 }
  0x12   :  { %26 = vsyncpa [#allocation7], 0 }
  0x13   :  { %28 = vsyncpa [#allocation7 + $0x1], 0 }
  0x14   :  { %29 = vsyncpa [#allocation10], 0 }
  0x15   :  { %30 = vsyncpa [#allocation5], 0 }
  0x16   :  { %32 = vsyncpa [#allocation5 + $0x1], 0  ;;  %s5936_s27 = smov 0   ;;  %s5938_s28 = smov 0  }
  0x17   :  { %s5940_s29 = smov 0   ;;  %s5942_s30 = smov 0  }
  0x18   :  { %s5944_s0 = smov 0   ;;  %s5946_s19 = smov 0  }
  0x19   :  { %s5948_s1 = smov 0   ;;  %s5950_s20 = smov 0  }
  0x1a   :  { %s5952_s21 = smov 0   ;;  %s5954_s22 = smov 0  }
  0x1b   :  { %s5956_s2 = smov 0  }
  0x1c LB: > { %7426 = sst [smem:[#allocation44_spill]] %s5763_s28  ;;  %s5992_s23 = sadd.s32 4294967295, %s5799_s2   ;;  %s5799_s2 = sphi %s5956_s2, %s38_s2   ;;  %s5795_s22 = sphi %s5954_s22, %s7518_s22   ;;  %s5791_s21 = sphi %s5952_s21, %s7520_s21   ;;  %s5787_s20 = sphi %s5950_s20, %s7516_s20   ;;  %s5783_s1 = sphi %s5948_s1, %s7519_s1   ;;  %s5779_s19 = sphi %s5946_s19, %s7515_s19   ;;  %s5775_s0 = sphi %s5944_s0, %s7514_s0   ;;  %s5771_s30 = sphi %s5942_s30, %s7513_s30   ;;  %s5767_s29 = sphi %s5940_s29, %s7512_s29   ;;  %s5763_s28 = sphi %s5938_s28, %s7511_s28   ;;  %s5759_s27 = sphi %s5936_s27, %s7510_s27  }
  0x1d   : > { %7427 = sst [smem:[#allocation45_spill]] %s5767_s29  ;;  %s4327_s24 = sadd.s32 4294967294, %s5799_s2  }
  0x1e   : > { %7428 = sst [smem:[#allocation46_spill]] %s5771_s30  ;;  %s47_s25 = sadd.s32 1, %s5791_s21 }
  0x1f   : > { %7429 = sst [smem:[#allocation47_spill]] %s5775_s0  ;;  %s50_s26 = sadd.s32 1, %s5795_s22 }
  0x20   : > { %7430 = sst [smem:[#allocation48_spill]] %s5779_s19  ;;  %p48_p0 = scmp.ge.s32.totalorder %s47_s25, 2 }
  0x21   : > { %7431 = sst [smem:[#allocation49_spill]] %s5783_s1  ;;  %s57_s18 = sadd.s32 1, %s5779_s19 }
  0x22   : > { %7432 = sst [smem:[#allocation50_spill]] %s5787_s20  ;;  %p7375_p1 = scmp.ne.s32.totalorder %s5779_s19, %s5775_s0 }
  0x23   : > { %7433 = sst [smem:[#allocation51_spill]] %s5795_s22  ;;  %p65_p2 = scmp.eq.s32.totalorder %s5799_s2, 0 }
  0x24   : > { %7434 = sst [smem:[#allocation52_spill]] %s5992_s23  ;;  %s7522_s25 = smov (%p48_p0, %s47_s25), 0 }
  0x25   : > { %7435 = sst [smem:[#allocation53_spill]] %s7522_s25  ;;  %s7524_s26 = smov (!%p48_p0, %s50_s26), %s5795_s22 }
  0x26   : > { %p6009_p3 = por %p65_p2, %p7375_p1  ;;  %p7374_p4 = scmp.ne.s32.totalorder %s5775_s0, %s5771_s30 }
  0x27   : > { %p52_p5 = scmp.ge.s32.totalorder %s7524_s26, 2  ;;  %p7385_p6 = scmp.eq.s32.totalorder %s5992_s23, 0 }
  0x28   : > { %s7436_s20 = scalar_select %p6009_p3, 1, 0 }
  0x29   : > { %s153_s1 = ssub.s32 %s5791_s21, %s7522_s25  ;;  %s156_s17 = sadd.s32 1, %s5767_s29 }
  0x2a   : > { %s7526_s26 = smov (%p52_p5, %s7524_s26), 0  ;;  %p6026_p7 = por %p7385_p6, %p7374_p4 }
  0x2b   : > { %7437 = sst [smem:[#allocation54_spill]] %s7526_s26  ;;  %p154_p8 = scmp.eq.s32.totalorder %s153_s1, 0 }
  0x2c   : > { %s7438_s16 = scalar_select %p6026_p7, 1, 0 }
  0x2d   : > { %s54_s15 = ssub.s32 %s5795_s22, %s7526_s26  ;;  %p163_p9 = scmp.ne.s32.totalorder %s5767_s29, %s5763_s28 }
  0x2e   : > { %7439 = sst [smem:[#allocation55_spill]] %s7438_s16  ;;  %p55_p10 = scmp.eq.s32.totalorder %s54_s15, 0 }
  0x2f   : > { %p169_p11 = scmp.ne.s32.totalorder %s5763_s28, %s5759_s27  ;;  %p6044_p12 = por %p163_p9, %p65_p2 }
  0x30   : > { %s6037_s25 = scalar_select %p154_p8, %s5767_s29, %s156_s17  }
  0x31   : > { %s6040_s14 = scalar_select %p55_p10, %s5779_s19, %s57_s18  }
  0x32   : > { %7440 = sst [smem:[#allocation56_spill]] %s6037_s25  ;;  %p6050_p13 = por %p169_p11, %p7385_p6 }
  0x33   : > { %7441 = sst [smem:[#allocation57_spill]] %s6040_s14  ;;  %p531_p0 = scmp.eq.s32.totalorder %s5992_s23, 3 }
  0x34   : > { %s7442_s13 = scalar_select %p6044_p12, 1, 0 }
  0x35   : > { %s7443_s12 = scalar_select %p6050_p13, 1, 0 }
  0x36   : > { %p537_p5 = scmp.eq.s32.totalorder %s4327_s24, 3  ;;  %p4328_p4 = scmp.ge.s32.totalorder %s5799_s2, 1 }
  0x37   : > { %7444 = sst [smem:[#allocation58_spill]] %s7443_s12  ;;  %p544_p1 = scmp.lt.s32.totalorder %s5799_s2, 5 }
  0x38   : > { %p7445_p7 = scmp.ne.s32.totalorder %s5779_s19, %s5775_s0  ;;  %p7448_p8 = scmp.ne.s32.totalorder %s5775_s0, %s5771_s30 }
  0x39   : > { %p6071_p2 = pnand %p4328_p4, %p544_p1  ;;  %s5801_s27 = smov [#allocation9]  }
  0x3a   : > { %p6060_p3 = por %p531_p0, %p7445_p7  ;;  %p6067_p10 = por %p537_p5, %p7448_p8 }
  0x3b   : > { %s7451_s18 = scalar_select %p6071_p2, 1, 0 }
  0x3c   : > { %s7446_s15 = scalar_select %p6060_p3, 1, 0 }
  0x3d   : > { %s7449_s17 = scalar_select %p6067_p10, 1, 0 }
  0x3e   : > { %7447 = sst [smem:[#allocation59_spill]] %s7446_s15  ;;  %p4901_p9 = pneg %p6071_p2 }
  0x3f   : > { %7450 = sst [smem:[#allocation60_spill]] %s7449_s17  ;;  %s557_s1 = sshll.u32 %s5801_s27, 4  ;;  %s558_s1 = int_to_ptr.vmem [resolvable:$true] %s557_s1 }
  0x40   : > { %7452 = sst [smem:[#allocation61_spill]] %s7451_s18  ;;  %p6079_p7 = pnand %p4901_p9, %p7385_p6 }
  0x41   : > { %s7454_s3 = sld [smem:[#allocation65_spill]] }
  0x42   : > { %p5111_p4 = pneg %p6079_p7 }
  0x47   : > { %s5109_s25 = scalar_lea.hbm %s7454_s3, 128 }
  0x48   : > { %p5110_p1 = scmp.ne.s32.totalorder %s7454_s3, %s5109_s25  ;;  %p5116_p5 = scmp.lt.u32.totalorder %s5109_s25, %s7454_s3 }
  0x4a   : > { %p5112_p11 = pnand %p5111_p4, %p5110_p1 }
  0x4c   : > { %p5113_p0 = pneg %p5112_p11 }
  0x4e   : > { %p5118_p8 = pnand %p5116_p5, %p5113_p0 }
  0x50   : > { %5121 = shalt.err (!%p5118_p8)
}
  0x51   : > { %s5122_s12 = scalar_lea.vmem %s558_s1, 128  ;;  %p5130_p3 = scmp.lt.s32.totalorder %s558_s1, %s558_s1 }
  0x52   : > { %p5123_p9 = scmp.ne.s32.totalorder %s558_s1, %s5122_s12  ;;  %p5131_p13 = scmp.lt.s32.totalorder %s5122_s12, %s5122_s12 }
  0x54   : > { %p5125_p6 = pnand %p5123_p9, %p5111_p4  ;;  %p5132_p2 = por %p5131_p13, %p5130_p3 }
  0x56   : > { %p5126_p10 = pneg %p5125_p6 }
  0x58   : > { %p5133_p12 = pnand %p5132_p2, %p5126_p10 }
  0x5a   : > { %5136 = shalt.err (!%p5133_p12)
}
  0x5b   : > { %4904 = dma.hbm_to_vmem [thread:$0]  (!%p6079_p7), %s7454_s3, 128, %s558_s1, [#allocation10]  }
  0x5c   : > { %p4330_p1 = scmp.ge.s32.totalorder %s5799_s2, 4 }
  0x5d   : > { %s7394_s25 = sand.u32 (!%p4330_p1), 1, %s5799_s2   ;;  %s6102_s26 = sand.u32 (!%p4330_p1), 1, %s5779_s19  }
  0x5e   : > { %564 = sbr.rel (%p4330_p1) target bundleno = 540 (0x21c), region = 20  ;;  %s4334_s12 = sshll.u32 (!%p4330_p1), %s6102_s26, 3 }
  0x5f   : > { %s4465_s15 = sshll.u32 (!%p4330_p1), %s5795_s22, 7  ;;  %s7455_s27 = sld [smem:[#allocation63_spill]] (!%p4330_p1) }
  0x60   : > { %s593_s1 = scalar_lea.vmem (!%p4330_p1), [#allocation6], %s4334_s12  ;;  %s6115_s30 = scalar_lea.sflag (!%p4330_p1), [#allocation7], %s7394_s25 }
  0x61   : > { %s600_s14 = sshll.u32 (!%p4330_p1), %s593_s1, 4  ;;  %p7457_p6 = scmp.ne.s32.totalorder (!%p4330_p1), %s7436_s20, 0  ;;  %s6111_s14 = int_to_ptr.vmem [resolvable:$true] %s600_s14 }
  0x65   : > { %s7456_s16 = smov %s7455_s27  ;;  %s6109_s28 = scalar_lea.hbm %s7455_s27, %s4465_s15 }
  0x66   : > { %s5137_s3 = scalar_lea.hbm %s6109_s28, 128  ;;  %s5141_s15 = scalar_lea.hbm %s7456_s16, 256 }
  0x67   : > { %p5138_p3 = scmp.ne.s32.totalorder %s6109_s28, %s5137_s3  ;;  %p5142_p10 = scmp.lt.u32.totalorder %s6109_s28, %s7456_s16 }
  0x68   : > { %p5143_p2 = scmp.lt.u32.totalorder %s5141_s15, %s5137_s3  ;;  %p5145_p4 = scmp.lt.u32.totalorder %s5137_s3, %s6109_s28 }
  0x69   : > { %p5139_p12 = pnand %p5138_p3, %p7457_p6 }
  0x6a   : > { %p5144_p7 = por %p5143_p2, %p5142_p10 }
  0x6b   : > { %p5140_p13 = pneg %p5139_p12 }
  0x6c   : > { %p5146_p11 = por %p5145_p4, %p5144_p7 }
  0x6e   : > { %p5147_p0 = pnand %p5146_p11, %p5140_p13 }
  0x70   : > { %5150 = shalt.err (!%p5147_p0)
}
  0x71   : > { %s5151_s12 = scalar_lea.vmem %s6111_s14, 128  ;;  %s5802_s19 = smov [#allocation6]  }
  0x72   : > { %p5152_p5 = scmp.ne.s32.totalorder %s6111_s14, %s5151_s12  ;;  %s5155_s1 = sshll.u32 %s5802_s19, 4  ;;  %s5156_s1 = int_to_ptr.vmem [resolvable:$false] %s5155_s1 }
  0x73   : > { %s5157_s17 = scalar_lea.vmem %s5156_s1, 256  ;;  %p5158_p1 = scmp.lt.s32.totalorder %s6111_s14, %s5156_s1 }
  0x74   : > { %p5153_p8 = pnand %p5152_p5, %p7457_p6  ;;  %p5159_p3 = scmp.lt.s32.totalorder %s5157_s17, %s5151_s12 }
  0x76   : > { %p5154_p9 = pneg %p5153_p8  ;;  %p5160_p12 = por %p5159_p3, %p5158_p1 }
  0x78   : > { %p5161_p10 = pnand %p5160_p12, %p5154_p9 }
  0x7a   : > { %5164 = shalt.err (!%p5161_p10)
}
  0x7b   : > { %s7401_s3 = smov 64   ;;  %s7403_s15 = smov 4  }
  0x7c   : > { %4864 = dma.hbm_to_vmem [thread:$0]  (%p7457_p6), %s6109_s28, 128, %s6111_s14, %s6115_s30, %s7401_s3, %s7401_s3, %s7403_s15  }
  0x7d   : > { %s4331_s24 = sshll.u32 %s6102_s26, 4  ;;  %s4464_s27 = sshll.u32 %s5795_s22, 8 }
  0x7e   : > { %s7458_s1 = sld [smem:[#allocation62_spill]]  ;;  %s572_s16 = scalar_lea.vmem [#allocation3], %s4331_s24 }
  0x7f   : > { %s579_s0 = sshll.u32 %s572_s16, 4  ;;  %s7460_s23 = sand.u32 1, %s5799_s2   ;;  %s6149_s0 = int_to_ptr.vmem [resolvable:$true] %s579_s0 }
  0x80   : > { %s6153_s18 = scalar_lea.sflag [#allocation4], %s7460_s23 }
  0x84   : > { %s7459_s17 = smov %s7458_s1  ;;  %s6147_s25 = scalar_lea.hbm %s7458_s1, %s4464_s27 }
  0x85   : > { %s5165_s11 = scalar_lea.hbm %s6147_s25, 256  ;;  %s5169_s27 = scalar_lea.hbm %s7459_s17, 512 }
  0x86   : > { %p5166_p13 = scmp.ne.s32.totalorder %s6147_s25, %s5165_s11  ;;  %p5170_p4 = scmp.lt.u32.totalorder %s6147_s25, %s7459_s17 }
  0x87   : > { %p5171_p11 = scmp.lt.u32.totalorder %s5169_s27, %s5165_s11  ;;  %p5173_p5 = scmp.lt.u32.totalorder %s5165_s11, %s6147_s25 }
  0x88   : > { %p5167_p2 = pnand %p5166_p13, %p7457_p6 }
  0x89   : > { %p5172_p0 = por %p5171_p11, %p5170_p4 }
  0x8a   : > { %p5168_p7 = pneg %p5167_p2 }
  0x8b   : > { %p5174_p8 = por %p5173_p5, %p5172_p0 }
  0x8d   : > { %p5175_p9 = pnand %p5174_p8, %p5168_p7 }
  0x8f   : > { %5178 = shalt.err (!%p5175_p9)
}
  0x90   : > { %s5179_s16 = scalar_lea.vmem %s6149_s0, 256  ;;  %s5805_s23 = smov [#allocation3]  }
  0x91   : > { %p5180_p1 = scmp.ne.s32.totalorder %s6149_s0, %s5179_s16  ;;  %s5183_s24 = sshll.u32 %s5805_s23, 4  ;;  %s5184_s24 = int_to_ptr.vmem [resolvable:$false] %s5183_s24 }
  0x92   : > { %s5185_s1 = scalar_lea.vmem %s5184_s24, 512  ;;  %p5186_p10 = scmp.lt.s32.totalorder %s6149_s0, %s5184_s24 }
  0x93   : > { %p5181_p3 = pnand %p5180_p1, %p7457_p6  ;;  %p5187_p13 = scmp.lt.s32.totalorder %s5185_s1, %s5179_s16 }
  0x95   : > { %p5182_p12 = pneg %p5181_p3  ;;  %p5188_p2 = por %p5187_p13, %p5186_p10 }
  0x97   : > { %p5189_p4 = pnand %p5188_p2, %p5182_p12 }
  0x99   : > { %5192 = shalt.err (!%p5189_p4)
}
  0x9a   : > { %s5806_s11 = smov 128   ;;  %s5807_s28 = smov 8  }
  0x9b   : > { %4863 = dma.hbm_to_vmem [thread:$0]  (%p7457_p6), %s6147_s25, 256, %s6149_s0, %s6153_s18, %s5806_s11, %s5806_s11, %s5807_s28  }
  0x9c   : > { %s4337_s14 = sshll.u32 %s6102_s26, 1  ;;  %s4466_s27 = sshll.u32 %s5795_s22, 5 }
  0x9d   : > { %s7461_s23 = sld [smem:[#allocation64_spill]]  ;;  %s614_s24 = scalar_lea.vmem [#allocation8], %s4337_s14 }
  0x9e   : > { %s621_s1 = sshll.u32 %s614_s24, 4  ;;  %s6184_s1 = int_to_ptr.vmem [resolvable:$true] %s621_s1 }
  0xa3   : > { %s6182_s16 = scalar_lea.hbm %s7461_s23, %s4466_s27  ;;  %s5197_s26 = scalar_lea.hbm %s7461_s23, 64 }
  0xa4   : > { %s5193_s3 = scalar_lea.hbm %s6182_s16, 32  ;;  %p5198_p5 = scmp.lt.u32.totalorder %s6182_s16, %s7461_s23 }
  0xa5   : > { %p5194_p7 = scmp.ne.s32.totalorder %s6182_s16, %s5193_s3  ;;  %p5199_p8 = scmp.lt.u32.totalorder %s5197_s26, %s5193_s3 }
  0xa6   : > { %p5201_p1 = scmp.lt.u32.totalorder %s5193_s3, %s6182_s16 }
  0xa7   : > { %p5195_p11 = pnand %p5194_p7, %p7457_p6  ;;  %p5200_p9 = por %p5199_p8, %p5198_p5 }
  0xa9   : > { %p5196_p0 = pneg %p5195_p11  ;;  %p5202_p3 = por %p5201_p1, %p5200_p9 }
  0xab   : > { %p5203_p12 = pnand %p5202_p3, %p5196_p0 }
  0xad   : > { %5206 = shalt.err (!%p5203_p12)
}
  0xae   : > { %s5207_s14 = scalar_lea.vmem %s6184_s1, 32  ;;  %s5808_s27 = smov [#allocation8]  }
  0xaf   : > { %p5208_p10 = scmp.ne.s32.totalorder %s6184_s1, %s5207_s14  ;;  %s5211_s12 = sshll.u32 %s5808_s27, 4  ;;  %s5212_s12 = int_to_ptr.vmem [resolvable:$false] %s5211_s12 }
  0xb0   : > { %s5213_s19 = scalar_lea.vmem %s5212_s12, 64  ;;  %p5214_p4 = scmp.lt.s32.totalorder %s6184_s1, %s5212_s12 }
  0xb1   : > { %p5209_p13 = pnand %p5208_p10, %p7457_p6  ;;  %p5215_p7 = scmp.lt.s32.totalorder %s5213_s19, %s5207_s14 }
  0xb3   : > { %p5210_p2 = pneg %p5209_p13  ;;  %p5216_p11 = por %p5215_p7, %p5214_p4 }
  0xb5   : > { %p5217_p5 = pnand %p5216_p11, %p5210_p2 }
  0xb7   : > { %5220 = shalt.err (!%p5217_p5)
}
  0xb8   : > { %s5809_s3 = smov 16   ;;  %s5810_s24 = smov 1  }
  0xb9   : > { %4865 = dma.hbm_to_vmem [thread:$0]  (%p7457_p6), %s6182_s16, 32, %s6184_s1, %s6115_s30, %s5809_s3, %s5809_s3, %s5810_s24  }
  0xba   : > { %s6209_s0 = sand.u32 1, %s5767_s29   ;;  %s6212_s25 = sshll.u32 %s5791_s21, 8 }
  0xbb   : > { %s6215_s26 = sshll.u32 %s6209_s0, 4  ;;  %s7462_s4 = sld [smem:[#allocation66_spill]] }
  0xbc   : > { %s635_s20 = scalar_lea.vmem [#allocation11], %s6215_s26  ;;  %s6225_s1 = sshll.u32 %s5791_s21, 4 }
  0xbd   : > { %s642_s16 = sshll.u32 %s635_s20, 4  ;;  %s7463_s5 = sld [smem:[#allocation67_spill]]  ;;  %s6227_s16 = int_to_ptr.vmem [resolvable:$true] %s642_s16 }
  0xbe   : > { %p7464_p0 = scmp.ne.s32.totalorder %s7442_s13, 0 }
  0xc1   : > { %s6221_s14 = scalar_lea.hbm %s7462_s4, %s6212_s25  ;;  %s5225_s28 = scalar_lea.hbm %s7462_s4, 512 }
  0xc2   : > { %s5221_s3 = scalar_lea.hbm %s6221_s14, 256  ;;  %p5226_p1 = scmp.lt.u32.totalorder %s6221_s14, %s7462_s4 }
  0xc3   : > { %s6233_s19 = scalar_lea.hbm %s7463_s5, %s6225_s1  ;;  %p5222_p6 = scmp.ne.s32.totalorder %s6221_s14, %s5221_s3 }
  0xc4   : > { %p5227_p3 = scmp.lt.u32.totalorder %s5225_s28, %s5221_s3  ;;  %p5229_p10 = scmp.lt.u32.totalorder %s5221_s3, %s6221_s14 }
  0xc5   : > { %p5223_p8 = pnand %p5222_p6, %p7464_p0 }
  0xc6   : > { %p5228_p12 = por %p5227_p3, %p5226_p1 }
  0xc7   : > { %p5224_p9 = pneg %p5223_p8 }
  0xc8   : > { %p5230_p13 = por %p5229_p10, %p5228_p12 }
  0xca   : > { %p5231_p2 = pnand %p5230_p13, %p5224_p9 }
  0xcc   : > { %5234 = shalt.err (!%p5231_p2)
}
  0xcd   : > { %s5235_s27 = scalar_lea.vmem %s6227_s16, 256  ;;  %s5811_s12 = smov [#allocation11]  }
  0xce   : > { %p5236_p4 = scmp.ne.s32.totalorder %s6227_s16, %s5235_s27  ;;  %s5239_s24 = sshll.u32 %s5811_s12, 4  ;;  %s5240_s24 = int_to_ptr.vmem [resolvable:$false] %s5239_s24 }
  0xcf   : > { %s5241_s15 = scalar_lea.vmem %s5240_s24, 512  ;;  %p5242_p5 = scmp.lt.s32.totalorder %s6227_s16, %s5240_s24 }
  0xd0   : > { %p5237_p7 = pnand %p5236_p4, %p7464_p0  ;;  %p5243_p6 = scmp.lt.s32.totalorder %s5241_s15, %s5235_s27 }
  0xd2   : > { %p5238_p11 = pneg %p5237_p7  ;;  %p5244_p8 = por %p5243_p6, %p5242_p5 }
  0xd4   : > { %p5245_p1 = pnand %p5244_p8, %p5238_p11 }
  0xd6   : > { %5248 = shalt.err (!%p5245_p1)
}
  0xd7   : > { %s7465_s3 = smov 4   ;;  %s7466_s11 = smov 64  }
  0xd8   : > { %4866 = dma.hbm_to_vmem [thread:$0]  (%p7464_p0), %s6221_s14, 256, %s6227_s16, %s6153_s18, %s7466_s11, %s7466_s11, %s7465_s3  }
  0xd9   : > { %s655_s28 = scalar_lea.vmem [#allocation12], %s6209_s0  ;;  %s7467_s6 = sld [smem:[#allocation68_spill]] }
  0xda   : > { %s662_s20 = sshll.u32 %s655_s28, 4  ;;  %s5249_s15 = scalar_lea.hbm %s6233_s19, 16  ;;  %s663_s20 = int_to_ptr.vmem [resolvable:$true] %s662_s20 }
  0xdb   : > { %p5250_p9 = scmp.ne.s32.totalorder %s6233_s19, %s5249_s15  ;;  %s5253_s23 = scalar_lea.hbm %s7463_s5, 32 }
  0xdc   : > { %p5254_p10 = scmp.lt.u32.totalorder %s6233_s19, %s7463_s5  ;;  %p5255_p13 = scmp.lt.u32.totalorder %s5253_s23, %s5249_s15 }
  0xdd   : > { %p5251_p3 = pnand %p5250_p9, %p7464_p0  ;;  %p5257_p4 = scmp.lt.u32.totalorder %s5249_s15, %s6233_s19 }
  0xde   : > { %p5256_p2 = por %p5255_p13, %p5254_p10 }
  0xdf   : > { %s6265_s24 = scalar_lea.hbm %s7467_s6, %s6212_s25  ;;  %p5252_p12 = pneg %p5251_p3 }
  0xe0   : > { %p5258_p7 = por %p5257_p4, %p5256_p2 }
  0xe2   : > { %p5259_p11 = pnand %p5258_p7, %p5252_p12 }
  0xe4   : > { %5262 = shalt.err (!%p5259_p11)
}
  0xe5   : > { %s5263_s14 = scalar_lea.vmem %s663_s20, 16  ;;  %s5812_s16 = smov [#allocation12]  }
  0xe6   : > { %p5264_p5 = scmp.ne.s32.totalorder %s663_s20, %s5263_s14  ;;  %s5267_s28 = sshll.u32 %s5812_s16, 4  ;;  %s5268_s28 = int_to_ptr.vmem [resolvable:$false] %s5267_s28 }
  0xe7   : > { %s5269_s4 = scalar_lea.vmem %s5268_s28, 32  ;;  %p5270_p1 = scmp.lt.s32.totalorder %s663_s20, %s5268_s28 }
  0xe8   : > { %p5265_p6 = pnand %p5264_p5, %p7464_p0  ;;  %p5271_p9 = scmp.lt.s32.totalorder %s5269_s4, %s5263_s14 }
  0xea   : > { %p5266_p8 = pneg %p5265_p6  ;;  %p5272_p3 = por %p5271_p9, %p5270_p1 }
  0xec   : > { %p5273_p10 = pnand %p5272_p3, %p5266_p8 }
  0xee   : > { %5276 = shalt.err (!%p5273_p10)
}
  0xef   : > { %4867 = dma.hbm_to_vmem [thread:$0]  (%p7464_p0), %s6233_s19, 16, %s663_s20, %s6115_s30  }
  0xf0   : > { %s673_s29 = scalar_lea.vmem [#allocation13], %s6215_s26  ;;  %s6292_s27 = scalar_lea.hbm %s7351_s7, %s6225_s1 }
  0xf1   : > { %s680_s22 = sshll.u32 %s673_s29, 4  ;;  %s5277_s12 = scalar_lea.hbm %s6265_s24, 256  ;;  %s6286_s22 = int_to_ptr.vmem [resolvable:$true] %s680_s22 }
  0xf2   : > { %p5278_p12 = scmp.ne.s32.totalorder %s6265_s24, %s5277_s12  ;;  %s5281_s16 = scalar_lea.hbm %s7467_s6, 512 }
  0xf3   : > { %p5282_p4 = scmp.lt.u32.totalorder %s6265_s24, %s7467_s6  ;;  %p5283_p7 = scmp.lt.u32.totalorder %s5281_s16, %s5277_s12 }
  0xf4   : > { %p5279_p13 = pnand %p5278_p12, %p7464_p0  ;;  %p5285_p5 = scmp.lt.u32.totalorder %s5277_s12, %s6265_s24 }
  0xf5   : > { %p5284_p11 = por %p5283_p7, %p5282_p4 }
  0xf6   : > { %p5280_p2 = pneg %p5279_p13 }
  0xf7   : > { %p5286_p6 = por %p5285_p5, %p5284_p11 }
  0xf9   : > { %p5287_p8 = pnand %p5286_p6, %p5280_p2 }
  0xfb   : > { %5290 = shalt.err (!%p5287_p8)
}
  0xfc   : > { %s5291_s20 = scalar_lea.vmem %s6286_s22, 256  ;;  %s5813_s4 = smov [#allocation13]  }
  0xfd   : > { %p5292_p1 = scmp.ne.s32.totalorder %s6286_s22, %s5291_s20  ;;  %s5295_s29 = sshll.u32 %s5813_s4, 4  ;;  %s5296_s29 = int_to_ptr.vmem [resolvable:$false] %s5295_s29 }
  0xfe   : > { %s5297_s17 = scalar_lea.vmem %s5296_s29, 512  ;;  %p5298_p10 = scmp.lt.s32.totalorder %s6286_s22, %s5296_s29 }
  0xff   : > { %p5293_p9 = pnand %p5292_p1, %p7464_p0  ;;  %p5299_p12 = scmp.lt.s32.totalorder %s5297_s17, %s5291_s20 }
 0x101   : > { %p5294_p3 = pneg %p5293_p9  ;;  %p5300_p13 = por %p5299_p12, %p5298_p10 }
 0x103   : > { %p5301_p4 = pnand %p5300_p13, %p5294_p3 }
 0x105   : > { %5304 = shalt.err (!%p5301_p4)
}
 0x106   : > { %4868 = dma.hbm_to_vmem [thread:$0]  (%p7464_p0), %s6265_s24, 256, %s6286_s22, %s6153_s18, %s7466_s11, %s7466_s11, %s7465_s3  }
 0x107   : > { %s693_s23 = scalar_lea.vmem [#allocation14], %s6209_s0  ;;  %s6324_s16 = scalar_lea.hbm %s7352_s8, %s6212_s25 }
 0x108   : > { %s700_s12 = sshll.u32 %s693_s23, 4  ;;  %s5305_s28 = scalar_lea.hbm %s6292_s27, 16  ;;  %s701_s12 = int_to_ptr.vmem [resolvable:$true] %s700_s12 }
 0x109   : > { %p5306_p2 = scmp.ne.s32.totalorder %s6292_s27, %s5305_s28  ;;  %s5309_s4 = scalar_lea.hbm %s7351_s7, 32 }
 0x10a   : > { %p5310_p5 = scmp.lt.u32.totalorder %s6292_s27, %s7351_s7  ;;  %p5311_p6 = scmp.lt.u32.totalorder %s5309_s4, %s5305_s28 }
 0x10b   : > { %p5307_p7 = pnand %p5306_p2, %p7464_p0  ;;  %p5313_p1 = scmp.lt.u32.totalorder %s5305_s28, %s6292_s27 }
 0x10c   : > { %p5312_p8 = por %p5311_p6, %p5310_p5 }
 0x10d   : > { %p5308_p11 = pneg %p5307_p7 }
 0x10e   : > { %p5314_p9 = por %p5313_p1, %p5312_p8 }
 0x110   : > { %p5315_p3 = pnand %p5314_p9, %p5308_p11 }
 0x112   : > { %5318 = shalt.err (!%p5315_p3)
}
 0x113   : > { %s5319_s24 = scalar_lea.vmem %s701_s12, 16  ;;  %s5814_s22 = smov [#allocation14]  }
 0x114   : > { %p5320_p10 = scmp.ne.s32.totalorder %s701_s12, %s5319_s24  ;;  %s5323_s23 = sshll.u32 %s5814_s22, 4  ;;  %s5324_s23 = int_to_ptr.vmem [resolvable:$false] %s5323_s23 }
 0x115   : > { %s5325_s15 = scalar_lea.vmem %s5324_s23, 32  ;;  %p5326_p4 = scmp.lt.s32.totalorder %s701_s12, %s5324_s23 }
 0x116   : > { %p5321_p12 = pnand %p5320_p10, %p7464_p0  ;;  %p5327_p2 = scmp.lt.s32.totalorder %s5325_s15, %s5319_s24 }
 0x118   : > { %p5322_p13 = pneg %p5321_p12  ;;  %p5328_p7 = por %p5327_p2, %p5326_p4 }
 0x11a   : > { %p5329_p5 = pnand %p5328_p7, %p5322_p13 }
 0x11c   : > { %5332 = shalt.err (!%p5329_p5)
}
 0x11d   : > { %4869 = dma.hbm_to_vmem [thread:$0]  (%p7464_p0), %s6292_s27, 16, %s701_s12, %s6115_s30  }
 0x11e   : > { %s711_s14 = scalar_lea.vmem [#allocation15], %s6215_s26  ;;  %s6351_s4 = scalar_lea.hbm %s7353_s9, %s6225_s1 }
 0x11f   : > { %s718_s28 = sshll.u32 %s711_s14, 4  ;;  %s5333_s29 = scalar_lea.hbm %s6324_s16, 256  ;;  %s6345_s28 = int_to_ptr.vmem [resolvable:$true] %s718_s28 }
 0x120   : > { %p5334_p11 = scmp.ne.s32.totalorder %s6324_s16, %s5333_s29  ;;  %s5337_s22 = scalar_lea.hbm %s7352_s8, 512 }
 0x121   : > { %p5338_p1 = scmp.lt.u32.totalorder %s6324_s16, %s7352_s8  ;;  %p5339_p9 = scmp.lt.u32.totalorder %s5337_s22, %s5333_s29 }
 0x122   : > { %p5335_p6 = pnand %p5334_p11, %p7464_p0  ;;  %p5341_p10 = scmp.lt.u32.totalorder %s5333_s29, %s6324_s16 }
 0x123   : > { %p5340_p3 = por %p5339_p9, %p5338_p1 }
 0x124   : > { %p5336_p8 = pneg %p5335_p6 }
 0x125   : > { %p5342_p12 = por %p5341_p10, %p5340_p3 }
 0x127   : > { %p5343_p13 = pnand %p5342_p12, %p5336_p8 }
 0x129   : > { %5346 = shalt.err (!%p5343_p13)
}
 0x12a   : > { %s5347_s12 = scalar_lea.vmem %s6345_s28, 256  ;;  %s5815_s15 = smov [#allocation15]  }
 0x12b   : > { %p5348_p4 = scmp.ne.s32.totalorder %s6345_s28, %s5347_s12  ;;  %s5351_s14 = sshll.u32 %s5815_s15, 4  ;;  %s5352_s14 = int_to_ptr.vmem [resolvable:$false] %s5351_s14 }
 0x12c   : > { %s5353_s19 = scalar_lea.vmem %s5352_s14, 512  ;;  %p5354_p5 = scmp.lt.s32.totalorder %s6345_s28, %s5352_s14 }
 0x12d   : > { %p5349_p2 = pnand %p5348_p4, %p7464_p0  ;;  %p5355_p11 = scmp.lt.s32.totalorder %s5353_s19, %s5347_s12 }
 0x12f   : > { %p5350_p7 = pneg %p5349_p2  ;;  %p5356_p6 = por %p5355_p11, %p5354_p5 }
 0x131   : > { %p5357_p1 = pnand %p5356_p6, %p5350_p7 }
 0x133   : > { %5360 = shalt.err (!%p5357_p1)
}
 0x134   : > { %4870 = dma.hbm_to_vmem [thread:$0]  (%p7464_p0), %s6324_s16, 256, %s6345_s28, %s6153_s18, %s7466_s11, %s7466_s11, %s7465_s3  }
 0x135   : > { %s731_s20 = scalar_lea.vmem [#allocation16], %s6209_s0  ;;  %s6383_s22 = scalar_lea.hbm %s7354_s10, %s6212_s25 }
 0x136   : > { %s738_s29 = sshll.u32 %s731_s20, 4  ;;  %s5361_s23 = scalar_lea.hbm %s6351_s4, 16  ;;  %s739_s29 = int_to_ptr.vmem [resolvable:$true] %s738_s29 }
 0x137   : > { %p5362_p8 = scmp.ne.s32.totalorder %s6351_s4, %s5361_s23  ;;  %s5365_s15 = scalar_lea.hbm %s7353_s9, 32 }
 0x138   : > { %p5366_p10 = scmp.lt.u32.totalorder %s6351_s4, %s7353_s9  ;;  %p5367_p12 = scmp.lt.u32.totalorder %s5365_s15, %s5361_s23 }
 0x139   : > { %p5363_p9 = pnand %p5362_p8, %p7464_p0  ;;  %p5369_p4 = scmp.lt.u32.totalorder %s5361_s23, %s6351_s4 }
 0x13a   : > { %p5368_p13 = por %p5367_p12, %p5366_p10 }
 0x13b   : > { %p5364_p3 = pneg %p5363_p9 }
 0x13c   : > { %p5370_p2 = por %p5369_p4, %p5368_p13 }
 0x13e   : > { %p5371_p7 = pnand %p5370_p2, %p5364_p3 }
 0x140   : > { %5374 = shalt.err (!%p5371_p7)
}
 0x141   : > { %s5375_s16 = scalar_lea.vmem %s739_s29, 16  ;;  %s5816_s28 = smov [#allocation16]  }
 0x142   : > { %p5376_p5 = scmp.ne.s32.totalorder %s739_s29, %s5375_s16  ;;  %s5379_s20 = sshll.u32 %s5816_s28, 4  ;;  %s5380_s20 = int_to_ptr.vmem [resolvable:$false] %s5379_s20 }
 0x143   : > { %s5381_s17 = scalar_lea.vmem %s5380_s20, 32  ;;  %p5382_p1 = scmp.lt.s32.totalorder %s739_s29, %s5380_s20 }
 0x144   : > { %p5377_p11 = pnand %p5376_p5, %p7464_p0  ;;  %p5383_p8 = scmp.lt.s32.totalorder %s5381_s17, %s5375_s16 }
 0x146   : > { %p5378_p6 = pneg %p5377_p11  ;;  %p5384_p9 = por %p5383_p8, %p5382_p1 }
 0x148   : > { %p5385_p10 = pnand %p5384_p9, %p5378_p6 }
 0x14a   : > { %5388 = shalt.err (!%p5385_p10)
}
 0x14b   : > { %4871 = dma.hbm_to_vmem [thread:$0]  (%p7464_p0), %s6351_s4, 16, %s739_s29, %s6115_s30  }
 0x14c   : > { %s749_s24 = scalar_lea.vmem [#allocation17], %s6215_s26  ;;  %s7468_s15 = sld [smem:[#allocation69_spill]] }
 0x14d   : > { %s756_s23 = sshll.u32 %s749_s24, 4  ;;  %s5389_s19 = scalar_lea.hbm %s6383_s22, 256  ;;  %s6404_s23 = int_to_ptr.vmem [resolvable:$true] %s756_s23 }
 0x14e   : > { %p5390_p3 = scmp.ne.s32.totalorder %s6383_s22, %s5389_s19  ;;  %s5393_s20 = scalar_lea.hbm %s7354_s10, 512 }
 0x14f   : > { %p5394_p4 = scmp.lt.u32.totalorder %s6383_s22, %s7354_s10  ;;  %p5395_p2 = scmp.lt.u32.totalorder %s5393_s20, %s5389_s19 }
 0x150   : > { %p5391_p12 = pnand %p5390_p3, %p7464_p0  ;;  %p5397_p5 = scmp.lt.u32.totalorder %s5389_s19, %s6383_s22 }
 0x151   : > { %p5396_p7 = por %p5395_p2, %p5394_p4 }
 0x152   : > { %s6410_s14 = scalar_lea.hbm %s7468_s15, %s6225_s1  ;;  %p5392_p13 = pneg %p5391_p12 }
 0x153   : > { %p5398_p11 = por %p5397_p5, %p5396_p7 }
 0x155   : > { %p5399_p6 = pnand %p5398_p11, %p5392_p13 }
 0x157   : > { %5402 = shalt.err (!%p5399_p6)
}
 0x158   : > { %s5403_s29 = scalar_lea.vmem %s6404_s23, 256  ;;  %s5817_s24 = smov [#allocation17]  }
 0x159   : > { %p5404_p1 = scmp.ne.s32.totalorder %s6404_s23, %s5403_s29  ;;  %s5407_s27 = sshll.u32 %s5817_s24, 4  ;;  %s5408_s27 = int_to_ptr.vmem [resolvable:$false] %s5407_s27 }
 0x15a   : > { %s5409_s12 = scalar_lea.vmem %s5408_s27, 512  ;;  %p5410_p10 = scmp.lt.s32.totalorder %s6404_s23, %s5408_s27 }
 0x15b   : > { %p5405_p8 = pnand %p5404_p1, %p7464_p0  ;;  %p5411_p3 = scmp.lt.s32.totalorder %s5409_s12, %s5403_s29 }
 0x15d   : > { %p5406_p9 = pneg %p5405_p8  ;;  %p5412_p12 = por %p5411_p3, %p5410_p10 }
 0x15f   : > { %p5413_p4 = pnand %p5412_p12, %p5406_p9 }
 0x161   : > { %5416 = shalt.err (!%p5413_p4)
}
 0x162   : > { %4872 = dma.hbm_to_vmem [thread:$0]  (%p7464_p0), %s6383_s22, 256, %s6404_s23, %s6153_s18, %s7466_s11, %s7466_s11, %s7465_s3  }
 0x163   : > { %s769_s19 = scalar_lea.vmem [#allocation18], %s6209_s0  ;;  %s7469_s17 = sld [smem:[#allocation70_spill]] }
 0x164   : > { %s776_s16 = sshll.u32 %s769_s19, 4  ;;  %s5417_s29 = scalar_lea.hbm %s6410_s14, 16  ;;  %s777_s16 = int_to_ptr.vmem [resolvable:$true] %s776_s16 }
 0x165   : > { %p5418_p13 = scmp.ne.s32.totalorder %s6410_s14, %s5417_s29  ;;  %s5421_s12 = scalar_lea.hbm %s7468_s15, 32 }
 0x166   : > { %p5422_p5 = scmp.lt.u32.totalorder %s6410_s14, %s7468_s15  ;;  %p5423_p11 = scmp.lt.u32.totalorder %s5421_s12, %s5417_s29 }
 0x167   : > { %p5419_p2 = pnand %p5418_p13, %p7464_p0  ;;  %p5425_p1 = scmp.lt.u32.totalorder %s5417_s29, %s6410_s14 }
 0x168   : > { %p5424_p6 = por %p5423_p11, %p5422_p5 }
 0x169   : > { %s6442_s4 = scalar_lea.hbm %s7469_s17, %s6212_s25  ;;  %p5420_p7 = pneg %p5419_p2 }
 0x16a   : > { %p5426_p8 = por %p5425_p1, %p5424_p6 }
 0x16c   : > { %p5427_p9 = pnand %p5426_p8, %p5420_p7 }
 0x16e   : > { %5430 = shalt.err (!%p5427_p9)
}
 0x16f   : > { %s5431_s25 = scalar_lea.vmem %s777_s16, 16  ;;  %s5818_s22 = smov [#allocation18]  }
 0x170   : > { %p5432_p10 = scmp.ne.s32.totalorder %s777_s16, %s5431_s25  ;;  %s5435_s23 = sshll.u32 %s5818_s22, 4  ;;  %s5436_s23 = int_to_ptr.vmem [resolvable:$false] %s5435_s23 }
 0x171   : > { %s5437_s19 = scalar_lea.vmem %s5436_s23, 32  ;;  %p5438_p4 = scmp.lt.s32.totalorder %s777_s16, %s5436_s23 }
 0x172   : > { %p5433_p3 = pnand %p5432_p10, %p7464_p0  ;;  %p5439_p13 = scmp.lt.s32.totalorder %s5437_s19, %s5431_s25 }
 0x174   : > { %p5434_p12 = pneg %p5433_p3  ;;  %p5440_p2 = por %p5439_p13, %p5438_p4 }
 0x176   : > { %p5441_p5 = pnand %p5440_p2, %p5434_p12 }
 0x178   : > { %5444 = shalt.err (!%p5441_p5)
}
 0x179   : > { %4873 = dma.hbm_to_vmem [thread:$0]  (%p7464_p0), %s6410_s14, 16, %s777_s16, %s6115_s30  }
 0x17a   : > { %s787_s5 = scalar_lea.vmem [#allocation19], %s6215_s26  ;;  %s7470_s29 = sld [smem:[#allocation71_spill]] }
 0x17b   : > { %s794_s6 = sshll.u32 %s787_s5, 4  ;;  %s5445_s12 = scalar_lea.hbm %s6442_s4, 256  ;;  %s6463_s6 = int_to_ptr.vmem [resolvable:$true] %s794_s6 }
 0x17c   : > { %p5446_p7 = scmp.ne.s32.totalorder %s6442_s4, %s5445_s12  ;;  %s5449_s23 = scalar_lea.hbm %s7469_s17, 512 }
 0x17d   : > { %p5450_p1 = scmp.lt.u32.totalorder %s6442_s4, %s7469_s17  ;;  %p5451_p8 = scmp.lt.u32.totalorder %s5449_s23, %s5445_s12 }
 0x17e   : > { %p5447_p11 = pnand %p5446_p7, %p7464_p0  ;;  %p5453_p10 = scmp.lt.u32.totalorder %s5445_s12, %s6442_s4 }
 0x17f   : > { %p5452_p9 = por %p5451_p8, %p5450_p1 }
 0x180   : > { %s7471_s24 = smov %s7470_s29  ;;  %s6469_s27 = scalar_lea.hbm %s7470_s29, %s6225_s1 }
 0x181   : > { %p5448_p6 = pneg %p5447_p11  ;;  %p5454_p3 = por %p5453_p10, %p5452_p9 }
 0x183   : > { %p5455_p12 = pnand %p5454_p3, %p5448_p6 }
 0x185   : > { %5458 = shalt.err (!%p5455_p12)
}
 0x186   : > { %s5459_s26 = scalar_lea.vmem %s6463_s6, 256  ;;  %s5819_s16 = smov [#allocation19]  }
 0x187   : > { %p5460_p4 = scmp.ne.s32.totalorder %s6463_s6, %s5459_s26  ;;  %s5463_s5 = sshll.u32 %s5819_s16, 4  ;;  %s5464_s5 = int_to_ptr.vmem [resolvable:$false] %s5463_s5 }
 0x188   : > { %s5465_s28 = scalar_lea.vmem %s5464_s5, 512  ;;  %p5466_p5 = scmp.lt.s32.totalorder %s6463_s6, %s5464_s5 }
 0x189   : > { %p5461_p13 = pnand %p5460_p4, %p7464_p0  ;;  %p5467_p7 = scmp.lt.s32.totalorder %s5465_s28, %s5459_s26 }
 0x18b   : > { %p5462_p2 = pneg %p5461_p13  ;;  %p5468_p11 = por %p5467_p7, %p5466_p5 }
 0x18d   : > { %p5469_p1 = pnand %p5468_p11, %p5462_p2 }
 0x18f   : > { %5472 = shalt.err (!%p5469_p1)
}
 0x190   : > { %4874 = dma.hbm_to_vmem [thread:$0]  (%p7464_p0), %s6442_s4, 256, %s6463_s6, %s6153_s18, %s7466_s11, %s7466_s11, %s7465_s3  }
 0x191   : > { %s807_s20 = scalar_lea.vmem [#allocation20], %s6209_s0  ;;  %s4360_s12 = sshll.u32 %s6209_s0, 5 }
 0x192   : > { %s814_s29 = sshll.u32 %s807_s20, 4  ;;  %s5473_s25 = scalar_lea.hbm %s6469_s27, 16  ;;  %s815_s29 = int_to_ptr.vmem [resolvable:$true] %s814_s29 }
 0x193   : > { %p5474_p6 = scmp.ne.s32.totalorder %s6469_s27, %s5473_s25  ;;  %s5477_s19 = scalar_lea.hbm %s7471_s24, 32 }
 0x194   : > { %p5478_p10 = scmp.lt.u32.totalorder %s6469_s27, %s7471_s24  ;;  %p5479_p3 = scmp.lt.u32.totalorder %s5477_s19, %s5473_s25 }
 0x195   : > { %p5475_p8 = pnand %p5474_p6, %p7464_p0  ;;  %p5481_p4 = scmp.lt.u32.totalorder %s5473_s25, %s6469_s27 }
 0x196   : > { %p5480_p12 = por %p5479_p3, %p5478_p10 }
 0x197   : > { %p5476_p9 = pneg %p5475_p8 }
 0x198   : > { %p5482_p13 = por %p5481_p4, %p5480_p12 }
 0x19a   : > { %p5483_p2 = pnand %p5482_p13, %p5476_p9 }
 0x19c   : > { %5486 = shalt.err (!%p5483_p2)
}
 0x19d   : > { %s5487_s4 = scalar_lea.vmem %s815_s29, 16  ;;  %s5820_s6 = smov [#allocation20]  }
 0x19e   : > { %p5488_p5 = scmp.ne.s32.totalorder %s815_s29, %s5487_s4  ;;  %s5491_s16 = sshll.u32 %s5820_s6, 4  ;;  %s5492_s16 = int_to_ptr.vmem [resolvable:$false] %s5491_s16 }
 0x19f   : > { %s5493_s5 = scalar_lea.vmem %s5492_s16, 32  ;;  %p5494_p1 = scmp.lt.s32.totalorder %s815_s29, %s5492_s16 }
 0x1a0   : > { %p5489_p7 = pnand %p5488_p5, %p7464_p0  ;;  %p5495_p6 = scmp.lt.s32.totalorder %s5493_s5, %s5487_s4 }
 0x1a2   : > { %p5490_p11 = pneg %p5489_p7  ;;  %p5496_p8 = por %p5495_p6, %p5494_p1 }
 0x1a4   : > { %p5497_p3 = pnand %p5496_p8, %p5490_p11 }
 0x1a6   : > { %5500 = shalt.err (!%p5497_p3)
}
 0x1a7   : > { %4875 = dma.hbm_to_vmem [thread:$0]  (%p7464_p0), %s6469_s27, 16, %s815_s29, %s6115_s30  }
 0x1a8   : > { %s4472_s28 = sshll.u32 %s5791_s21, 9  ;;  %s825_s20 = scalar_lea.vmem [#allocation21], %s4360_s12 }
 0x1a9   : > { %s832_s25 = sshll.u32 %s825_s20, 4  ;;  %s7472_s19 = sld [smem:[#allocation72_spill]]  ;;  %s6524_s25 = int_to_ptr.vmem [resolvable:$true] %s832_s25 }
 0x1af   : > { %s7473_s14 = smov %s7472_s19  ;;  %s6522_s26 = scalar_lea.hbm %s7472_s19, %s4472_s28 }
 0x1b0   : > { %s5501_s4 = scalar_lea.hbm %s6522_s26, 512  ;;  %s5505_s12 = scalar_lea.hbm %s7473_s14, 1024 }
 0x1b1   : > { %p5502_p9 = scmp.ne.s32.totalorder %s6522_s26, %s5501_s4  ;;  %p5506_p4 = scmp.lt.u32.totalorder %s6522_s26, %s7473_s14 }
 0x1b2   : > { %p5507_p13 = scmp.lt.u32.totalorder %s5505_s12, %s5501_s4  ;;  %p5509_p5 = scmp.lt.u32.totalorder %s5501_s4, %s6522_s26 }
 0x1b3   : > { %p5503_p10 = pnand %p5502_p9, %p7464_p0 }
 0x1b4   : > { %p5508_p2 = por %p5507_p13, %p5506_p4 }
 0x1b5   : > { %p5504_p12 = pneg %p5503_p10 }
 0x1b6   : > { %p5510_p7 = por %p5509_p5, %p5508_p2 }
 0x1b8   : > { %p5511_p11 = pnand %p5510_p7, %p5504_p12 }
 0x1ba   : > { %5514 = shalt.err (!%p5511_p11)
}
 0x1bb   : > { %s5515_s5 = scalar_lea.vmem %s6524_s25, 512  ;;  %s5821_s28 = smov [#allocation21]  }
 0x1bc   : > { %p5516_p1 = scmp.ne.s32.totalorder %s6524_s25, %s5515_s5  ;;  %s5519_s20 = sshll.u32 %s5821_s28, 4  ;;  %s5520_s20 = int_to_ptr.vmem [resolvable:$false] %s5519_s20 }
 0x1bd   : > { %s5521_s22 = scalar_lea.vmem %s5520_s20, 1024  ;;  %p5522_p3 = scmp.lt.s32.totalorder %s6524_s25, %s5520_s20 }
 0x1be   : > { %p5517_p6 = pnand %p5516_p1, %p7464_p0  ;;  %p5523_p9 = scmp.lt.s32.totalorder %s5521_s22, %s5515_s5 }
 0x1c0   : > { %p5518_p8 = pneg %p5517_p6  ;;  %p5524_p10 = por %p5523_p9, %p5522_p3 }
 0x1c2   : > { %p5525_p4 = pnand %p5524_p10, %p5518_p8 }
 0x1c4   : > { %5528 = shalt.err (!%p5525_p4)
}
 0x1c5   : > { %4876 = dma.hbm_to_vmem [thread:$0]  (%p7464_p0), %s6522_s26, 512, %s6524_s25, %s6153_s18, %s7466_s11, %s7466_s11, %s7465_s3  }
 0x1c6   : > { %s7474_s4 = sld [smem:[#allocation73_spill]]  ;;  %s845_s29 = scalar_lea.vmem [#allocation22], %s6209_s0 }
 0x1c7   : > { %s852_s12 = sshll.u32 %s845_s29, 4  ;;  %s4364_s6 = sshll.u32 %s6209_s0, 2  ;;  %s853_s12 = int_to_ptr.vmem [resolvable:$true] %s852_s12 }
 0x1cc   : > { %s6555_s27 = scalar_lea.hbm %s7474_s4, %s6225_s1  ;;  %s5533_s11 = scalar_lea.hbm %s7474_s4, 32 }
 0x1cd   : > { %s5529_s16 = scalar_lea.hbm %s6555_s27, 16  ;;  %p5534_p5 = scmp.lt.u32.totalorder %s6555_s27, %s7474_s4 }
 0x1ce   : > { %p5530_p12 = scmp.ne.s32.totalorder %s6555_s27, %s5529_s16  ;;  %p5535_p7 = scmp.lt.u32.totalorder %s5533_s11, %s5529_s16 }
 0x1cf   : > { %p5537_p1 = scmp.lt.u32.totalorder %s5529_s16, %s6555_s27 }
 0x1d0   : > { %p5531_p13 = pnand %p5530_p12, %p7464_p0  ;;  %p5536_p11 = por %p5535_p7, %p5534_p5 }
 0x1d2   : > { %p5532_p2 = pneg %p5531_p13  ;;  %p5538_p6 = por %p5537_p1, %p5536_p11 }
 0x1d4   : > { %p5539_p8 = pnand %p5538_p6, %p5532_p2 }
 0x1d6   : > { %5542 = shalt.err (!%p5539_p8)
}
 0x1d7   : > { %s5543_s26 = scalar_lea.vmem %s853_s12, 16  ;;  %s5822_s28 = smov [#allocation22]  }
 0x1d8   : > { %p5544_p3 = scmp.ne.s32.totalorder %s853_s12, %s5543_s26  ;;  %s5547_s20 = sshll.u32 %s5822_s28, 4  ;;  %s5548_s20 = int_to_ptr.vmem [resolvable:$false] %s5547_s20 }
 0x1d9   : > { %s5549_s22 = scalar_lea.vmem %s5548_s20, 32  ;;  %p5550_p4 = scmp.lt.s32.totalorder %s853_s12, %s5548_s20 }
 0x1da   : > { %p5545_p9 = pnand %p5544_p3, %p7464_p0  ;;  %p5551_p12 = scmp.lt.s32.totalorder %s5549_s22, %s5543_s26 }
 0x1dc   : > { %p5546_p10 = pneg %p5545_p9  ;;  %p5552_p13 = por %p5551_p12, %p5550_p4 }
 0x1de   : > { %p5553_p5 = pnand %p5552_p13, %p5546_p10 }
 0x1e0   : > { %5556 = shalt.err (!%p5553_p5)
}
 0x1e1   : > { %4877 = dma.hbm_to_vmem [thread:$0]  (%p7464_p0), %s6555_s27, 16, %s853_s12, %s6115_s30  }
 0x1e2   : > { %s4365_s23 = sshll.u32 %s5791_s21, 6  ;;  %s863_s19 = scalar_lea.vmem [#allocation23], %s4364_s6 }
 0x1e3   : > { %s870_s29 = sshll.u32 %s863_s19, 4  ;;  %s7475_s3 = sld [smem:[#allocation74_spill]]  ;;  %s871_s29 = int_to_ptr.vmem [resolvable:$true] %s870_s29 }
 0x1e9   : > { %s868_s11 = scalar_lea.hbm %s7475_s3, %s4365_s23  ;;  %s5561_s28 = scalar_lea.hbm %s7475_s3, 128 }
 0x1ea   : > { %s5557_s25 = scalar_lea.hbm %s868_s11, 64  ;;  %p5562_p1 = scmp.lt.u32.totalorder %s868_s11, %s7475_s3 }
 0x1eb   : > { %p5558_p2 = scmp.ne.s32.totalorder %s868_s11, %s5557_s25  ;;  %p5563_p6 = scmp.lt.u32.totalorder %s5561_s28, %s5557_s25 }
 0x1ec   : > { %p5565_p3 = scmp.lt.u32.totalorder %s5557_s25, %s868_s11 }
 0x1ed   : > { %p5559_p7 = pnand %p5558_p2, %p7464_p0  ;;  %p5564_p8 = por %p5563_p6, %p5562_p1 }
 0x1ef   : > { %p5560_p11 = pneg %p5559_p7  ;;  %p5566_p9 = por %p5565_p3, %p5564_p8 }
 0x1f1   : > { %p5567_p10 = pnand %p5566_p9, %p5560_p11 }
 0x1f3   : > { %5570 = shalt.err (!%p5567_p10)
}
 0x1f4   : > { %s5571_s20 = scalar_lea.vmem %s871_s29, 64  ;;  %s5823_s22 = smov [#allocation23]  }
 0x1f5   : > { %p5572_p4 = scmp.ne.s32.totalorder %s871_s29, %s5571_s20  ;;  %s5575_s19 = sshll.u32 %s5823_s22, 4  ;;  %s5576_s19 = int_to_ptr.vmem [resolvable:$false] %s5575_s19 }
 0x1f6   : > { %s5577_s16 = scalar_lea.vmem %s5576_s19, 128  ;;  %p5578_p5 = scmp.lt.s32.totalorder %s871_s29, %s5576_s19 }
 0x1f7   : > { %p5573_p12 = pnand %p5572_p4, %p7464_p0  ;;  %p5579_p2 = scmp.lt.s32.totalorder %s5577_s16, %s5571_s20 }
 0x1f9   : > { %p5574_p13 = pneg %p5573_p12  ;;  %p5580_p7 = por %p5579_p2, %p5578_p5 }
 0x1fb   : > { %p5581_p1 = pnand %p5580_p7, %p5574_p13 }
 0x1fd   : > { %5584 = shalt.err (!%p5581_p1)
}
 0x1fe   : > { %4878 = dma.hbm_to_vmem [thread:$0]  (%p7464_p0), %s868_s11, 64, %s871_s29, %s6153_s18  }
 0x1ff   : > { %s7476_s1 = sld [smem:[#allocation75_spill]]  ;;  %s881_s27 = scalar_lea.vmem [#allocation24], %s4364_s6 }
 0x200   : > { %s888_s12 = sshll.u32 %s881_s27, 4  ;;  %s889_s12 = int_to_ptr.vmem [resolvable:$true] %s888_s12 }
 0x205   : > { %s7477_s26 = smov %s7476_s1  ;;  %s6603_s28 = scalar_lea.hbm %s7476_s1, %s4365_s23 }
 0x206   : > { %s5585_s20 = scalar_lea.hbm %s6603_s28, 64  ;;  %s5589_s11 = scalar_lea.hbm %s7477_s26, 128 }
 0x207   : > { %p5586_p11 = scmp.ne.s32.totalorder %s6603_s28, %s5585_s20  ;;  %p5590_p3 = scmp.lt.u32.totalorder %s6603_s28, %s7477_s26 }
 0x208   : > { %p5591_p9 = scmp.lt.u32.totalorder %s5589_s11, %s5585_s20  ;;  %p5593_p4 = scmp.lt.u32.totalorder %s5585_s20, %s6603_s28 }
 0x209   : > { %p5587_p6 = pnand %p5586_p11, %p7464_p0 }
 0x20a   : > { %p5592_p10 = por %p5591_p9, %p5590_p3 }
 0x20b   : > { %p5588_p8 = pneg %p5587_p6 }
 0x20c   : > { %p5594_p12 = por %p5593_p4, %p5592_p10 }
 0x20e   : > { %p5595_p13 = pnand %p5594_p12, %p5588_p8 }
 0x210   : > { %5598 = shalt.err (!%p5595_p13)
}
 0x211   : > { %s5599_s0 = scalar_lea.vmem %s889_s12, 64  ;;  %s5824_s6 = smov [#allocation24]  }
 0x212   : > { %p5600_p5 = scmp.ne.s32.totalorder %s889_s12, %s5599_s0  ;;  %s5603_s19 = sshll.u32 %s5824_s6, 4  ;;  %s5604_s19 = int_to_ptr.vmem [resolvable:$false] %s5603_s19 }
 0x213   : > { %s5605_s16 = scalar_lea.vmem %s5604_s19, 128  ;;  %p5606_p1 = scmp.lt.s32.totalorder %s889_s12, %s5604_s19 }
 0x214   : > { %p5601_p2 = pnand %p5600_p5, %p7464_p0  ;;  %p5607_p11 = scmp.lt.s32.totalorder %s5605_s16, %s5599_s0 }
 0x216   : > { %p5602_p7 = pneg %p5601_p2  ;;  %p5608_p6 = por %p5607_p11, %p5606_p1 }
 0x218   : > { %p5609_p3 = pnand %p5608_p6, %p5602_p7 }
 0x21a   : > { %5612 = shalt.err (!%p5609_p3)
}
 0x21b   : > { %4879 = dma.hbm_to_vmem [thread:$0]  (%p7464_p0), %s6603_s28, 64, %s889_s12, %s6115_s30  }
 0x21c PF: > { %s7478_s5 = sld [smem:[#allocation61_spill]] }
 0x222   : > { %p7479_p8 = scmp.ne.s32.totalorder %s7478_s5, 0 }
 0x223   : > { %s7480_s25 = sld [smem:[#allocation52_spill]] (!%p7479_p8)  ;;  %s7481_s1 = sld [smem:[#allocation47_spill]] (!%p7479_p8) }
 0x224   : > { %897 = sbr.rel (%p7479_p8) target bundleno = 8173 (0x1fed), region = 92  ;;  %s7482_s27 = sld [smem:[#allocation55_spill]] (!%p7479_p8) }
 0x229   : > { %s899_s20 = sand.u32 (!%p7479_p8), 1, %s7480_s25   ;;  %s6629_s18 = sand.u32 (!%p7479_p8), 1, %s7481_s1  }
 0x22a   : > { %s4369_s29 = sshll.u32 (!%p7479_p8), %s6629_s18, 4  ;;  %s6632_s11 = scalar_lea.sflag (!%p7479_p8), [#allocation4], %s899_s20 }
 0x22b   : > { %s6636_s13 = scalar_lea.vmem [#allocation3], %s4369_s29  ;;  %p7483_p0 = scmp.ne.s32.totalorder %s7482_s27, 0 }
 0x22d   : > { %5686 = dma.done.wait (%p7483_p0), %s6632_s11, 256  }
 0x22e   : > { %5688 = vsyncadd (%p7483_p0), %s6632_s11, 4294967040  ;;  %s4370_s30 = sshll.u32 %s6629_s18, 3  ;;  %s6645_s28 = scalar_lea.sflag [#allocation7], %s899_s20 }
 0x22f   : > { %s6647_s12 = scalar_lea.vmem [#allocation6], %s4370_s30 }
 0x230   : > { %5690 = dma.done.wait (%p7483_p0), %s6645_s28, 160  }
 0x231   : > { %5692 = vsyncadd (%p7483_p0), %s6645_s28, 4294967136  ;;  %s4371_s22 = sshll.u32 %s6629_s18, 1  ;;  %p7484_p9 = scmp.eq.s32.totalorder %s7480_s25, 0 }
 0x232   : > { %s6656_s23 = scalar_lea.vmem [#allocation8], %s4371_s22 }
 0x233   : > { %5694 = dma.done.wait (%p7484_p9), [#allocation10], 128   ;;  %p7485_p10 = pmov %p7484_p9 }
 0x234   : > { %s7486_s0 = sld [smem:[#allocation44_spill]]  ;;  %s7487_s6 = sld [smem:[#allocation58_spill]] }
 0x235   : > { %5696 = vsyncadd (%p7485_p10), [#allocation10], 4294967168 }
 0x23a   : > { %s6663_s19 = sand.u32 1, %s7486_s0   ;;  %p7488_p4 = scmp.ne.s32.totalorder %s7487_s6, 0 }
 0x23b   : > { %s6666_s16 = sshll.u32 %s6663_s19, 4 }
 0x23c   : > { %5698 = dma.done.wait (%p7488_p4), %s6632_s11, 256  }
 0x23d   : > { %5700 = vsyncadd (%p7488_p4), %s6632_s11, 4294967040 }
 0x23e   : > { %5702 = dma.done.wait (%p7488_p4), %s6645_s28, 16  }
 0x23f   : > { %5704 = vsyncadd (%p7488_p4), %s6645_s28, 4294967280  ;;  %s6683_s1 = scalar_lea.vmem [#allocation13], %s6666_s16 }
 0x240   : > { %5706 = dma.done.wait (%p7488_p4), %s6632_s11, 256  }
 0x241   : > { %5708 = vsyncadd (%p7488_p4), %s6632_s11, 4294967040 }
 0x242   : > { %5710 = dma.done.wait (%p7488_p4), %s6645_s28, 16  }
 0x243   : > { %5712 = vsyncadd (%p7488_p4), %s6645_s28, 4294967280 }
 0x244   : > { %5714 = dma.done.wait (%p7488_p4), %s6632_s11, 256  }
 0x245   : > { %5716 = vsyncadd (%p7488_p4), %s6632_s11, 4294967040 }
 0x246   : > { %5718 = dma.done.wait (%p7488_p4), %s6645_s28, 16  }
 0x247   : > { %5720 = vsyncadd (%p7488_p4), %s6645_s28, 4294967280  ;;  %s6713_s22 = scalar_lea.vmem [#allocation17], %s6666_s16 }
 0x248   : > { %5722 = dma.done.wait (%p7488_p4), %s6632_s11, 256  }
 0x249   : > { %5724 = vsyncadd (%p7488_p4), %s6632_s11, 4294967040 }
 0x24a   : > { %5726 = dma.done.wait (%p7488_p4), %s6645_s28, 16  }
 0x24b   : > { %5728 = vsyncadd (%p7488_p4), %s6645_s28, 4294967280 }
 0x24c   : > { %5730 = dma.done.wait (%p7488_p4), %s6632_s11, 256  }
 0x24d   : > { %5732 = vsyncadd (%p7488_p4), %s6632_s11, 4294967040 }
 0x24e   : > { %5734 = dma.done.wait (%p7488_p4), %s6645_s28, 16  }
 0x24f   : > { %5736 = vsyncadd (%p7488_p4), %s6645_s28, 4294967280  ;;  %s4378_s30 = sshll.u32 %s6663_s19, 5 }
 0x250   : > { %s6743_s27 = scalar_lea.vmem [#allocation21], %s4378_s30 }
 0x251   : > { %5738 = dma.done.wait (%p7488_p4), %s6632_s11, 512  }
 0x252   : > { %5740 = vsyncadd (%p7488_p4), %s6632_s11, 4294966784 }
 0x253   : > { %5742 = dma.done.wait (%p7488_p4), %s6645_s28, 16  }
 0x254   : > { %5744 = vsyncadd (%p7488_p4), %s6645_s28, 4294967280  ;;  %s4379_s30 = sshll.u32 %s6663_s19, 2 }
 0x255   : > { %s6759_s20 = scalar_lea.vmem [#allocation23], %s4379_s30 }
 0x256   : > { %5746 = dma.done.wait (%p7488_p4), %s6632_s11, 64  }
 0x257   : > { %5748 = vsyncadd (%p7488_p4), %s6632_s11, 4294967232  ;;  %s6767_s0 = scalar_lea.vmem [#allocation24], %s4379_s30 }
 0x258   : > { %5750 = dma.done.wait (%p7488_p4), %s6645_s28, 64  }
 0x259   : > { %5752 = vsyncadd (%p7488_p4), %s6645_s28, 4294967232  ;;  %s6777_s25 = scalar_lea.vmem [#allocation25], %s4369_s29  ;;  %s7489_s5 = sld [smem:[#allocation49_spill]] }
 0x25f   : > { %p4382_p12 = scmp.ne.s32.totalorder %s7489_s5, 0 }
 0x260   : > { %v1181_v0 = vld [vmem:[%s6636_s13] sm:$0xff] (!%p4382_p12)  ;;  %vm1183_vm0 = vcmask (!%p4382_p12), 261120   ;;  %v1182_v1 = vld [vmem:[%s6636_s13 + $0x8] sm:$0xff] (!%p4382_p12)  ;;  %vm1203_vm1 = vcmask (!%p4382_p12), 64512  }
 0x261   : > { %1180 = sbr.rel (%p4382_p12) target bundleno = 616 (0x268), region = 168  ;;  %v4383_v2 = vld [vmem:[%s6656_s23] ss:$0 sm:$0xff] (!%p4382_p12)  ;;  %1184 = vst.msk [vmem:[%s6777_s25] sm:$0xff] (!%p4382_p12), %vm1183_vm0, %v1181_v0  ;;  %1185 = vst.msk [vmem:[%s6777_s25 + $0x8] sm:$0xff] (!%p4382_p12), %vm1183_vm0, %v1182_v1  ;;  %v1188_v3 = vld [vmem:[#allocation9] sm:$0xff] (!%p4382_p12) }
 0x262   : > { %v4384_v4 = vld [vmem:[%s6656_s23 + $0x1] ss:$0 sm:$0xff] (!%p4382_p12)  ;;  %v1201_v5 = vadd.f32 (!%p4382_p12), %v4383_v2, %v1188_v3 }
 0x263   : > { %v1202_v6 = vadd.f32 (!%p4382_p12), %v4384_v4, %v1188_v3 }
 0x264   : > { %1204 = vst.msk [vmem:[#allocation2] sm:$0xff] (!%p4382_p12), %vm1203_vm1, %v1201_v5 }
 0x265   : > { %1205 = vst.msk [vmem:[#allocation2 + $0x8] sm:$0xff] (!%p4382_p12), %vm1203_vm1, %v1202_v6 }
 0x268 PF: > { %s7490_s29 = scalar_lea.vmem [#allocation11], %s6666_s16  ;;  %v5825_v8 = vmov 0.0   ;;  %vm5826_vm2 = vmmov 0   ;;  %v6795_v10 = vld [vmem:[%s6777_s25] sm:$0xff]  ;;  %v6798_v11 = vld [vmem:[%s6777_s25 + $0x8] sm:$0xff]  ;;  %vm1236_vm3 = vcmask 261120  }
 0x269   : > { %v5022_v7 = vld [vmem:[%s7490_s29] sm:$0xff]   ;;  %4577 = vmatprep.subr.bf16.mxu1 %v5825_v8  ;;  %4591 = vmatprep.subr.bf16.mxu0 %v5825_v8  ;;  %s7491_s11 = smov %s7490_s29  ;;  %v1212_v12 = vpack.c.bf16 %v6798_v11, %v6795_v10  ;;  %s7492_s13 = scalar_lea.vmem [#allocation12], %s6663_s19  ;;  %vm1289_vm4 = vcmask 64512   ;;  %vm1415_vm5 = vcmask 1043456   ;;  %vm3820_vm6 = vcmask 523264  }
 0x26a   : > { %4578 = vmatpush3.bf16.msra.mxu1 %v5022_v7  ;;  %v5023_v9 = vld [vmem:[%s7491_s11 + $0x8] sm:$0xff]   ;;  %4581 = vmatprep.mubr.msk.bf16.mxu1 %vm5826_vm2, %v5825_v8  ;;  %v4385_v13 = vld [vmem:[%s7492_s13] ss:$0 sm:$0xff]  ;;  %s5827_s28 = smov 96   ;;  %s5828_s23 = smov 64  }
 0x26b   : > { %4579 = vmatprep.subr.bf16.mxu1 %v5825_v8  ;;  %4593 = vmatprep.mubr.msk.bf16.mxu0 %vm5826_vm2, %v5825_v8  ;;  %s5829_s6 = smov 88   ;;  %s5830_s5 = smov 120  }
 0x26c   : > { %s5831_s30 = smov 56   ;;  %s5832_s29 = smov 112  }
 0x26d   : > { %s5833_s11 = smov 80   ;;  %s5834_s13 = smov 48  }
 0x26e   : > { %4580 = vmatpush3.bf16.msra.mxu1 %v5023_v9 }
 0x26f   : > { %4585 = vmatprep.subr.bf16.mxu1 %v5825_v8 }
 0x271   : > { %4582 = vmatmul.mubr.msk.bf16.vlgmr.msra.gmra.mrb[0].mxu1 %vm1236_vm3, %v1212_v12 }
 0x272   : > { %4587 = vmatprep.mubr.msk.bf16.mxu1 %vm5826_vm2, %v5825_v8 }
 0x344   : > { %v1274_v14 = vpop.f32.mrb[0].mxu1 }
 0x345   : > { %v1275_v15 = vadd.f32 %v4385_v13, %v1274_v14  ;;  %v4583_v16 = vpop.f32.mrb[1].mxu1 }
 0x346   : > { %v1277_v17 = vpop.f32.mrb[2].mxu1 }
 0x347   : > { %v6811_v18 = vpack.c.bf16 %v1275_v15, %v1275_v15  ;;  %v1278_v19 = vadd.f32 %v4385_v13, %v1277_v17  ;;  %v4584_v20 = vpop.f32.mrb[3].mxu1 }
 0x349   : > { %1287 = vrot.lane.b32.xlu0 %v6811_v18, %s5827_s28  ;;  %v6815_v21 = vpack.c.bf16 %v1278_v19, %v1278_v19 }
 0x34d   : > { %1336 = vrot.lane.b32.xlu0 %v6815_v21, %s5827_s28 }
 0x3bb   : > { %v1288_v22 = vpop.permute.xlu0 %1287 }
 0x3bc   : > { %v1294_v23 = vsel %vm1289_vm4, %v1288_v22, 0 }
 0x3bd   : > { %4586 = vmatpush3.bf16.xpose.msra.mxu1 %v1294_v23 }
 0x3be   : > { %4597 = vmatprep.subr.bf16.mxu1 %v5825_v8 }
 0x3bf   : > { %v1337_v24 = vpop.permute.xlu0 %1336 }
 0x3c0   : > { %v1342_v25 = vsel %vm1289_vm4, %v1337_v24, 0 }
 0x3c1   : > { %4592 = vmatpush3.bf16.xpose.msra.mxu0 %v1342_v25 }
 0x3c2   : > { %4603 = vmatprep.subr.bf16.mxu0 %v5825_v8 }
 0x3c4   : > { %4588 = vmatmul.mubr.msk.bf16.vlgmr.msra.gmra.mrb[4].mxu1 %vm1289_vm4, %v6811_v18 }
 0x3c5   : > { %4599 = vmatprep.mubr.msk.bf16.mxu1 %vm5826_vm2, %v5825_v8 }
 0x3c8   : > { %4594 = vmatmul.mubr.msk.bf16.vlgmr.msra.gmra.mrb[0].mxu0 %vm1289_vm4, %v6815_v21 }
 0x3c9   : > { %4605 = vmatprep.mubr.msk.bf16.mxu0 %vm5826_vm2, %v5825_v8 }
 0x497   : > { %v1330_v26 = vpop.f32.mrb[4].mxu1 }
 0x498   : > { %v1384_v27 = vmul.f32 0.35355338, %v1330_v26  ;;  %v4589_v28 = vpop.f32.mrb[5].mxu1 }
 0x499   : > { %v1333_v29 = vpop.f32.mrb[6].mxu1 }
 0x49a   : > { %v4590_v30 = vpop.f32.mrb[7].mxu1  ;;  %v1386_v31 = vsel %vm1289_vm4, %v1384_v27, -inf }
 0x49b   : > { %v1378_v32 = vpop.f32.mrb[0].mxu0  ;;  %1387 = vmax.xlane.f32.xlu1 %v1386_v31 }
 0x49c   : > { %v1385_v33 = vmul.f32 0.35355338, %v1378_v32  ;;  %v4595_v34 = vpop.f32.mrb[1].mxu0 }
 0x49d   : > { %v1381_v35 = vpop.f32.mrb[2].mxu0 }
 0x49e   : > { %v4596_v36 = vpop.f32.mrb[3].mxu0  ;;  %v1389_v37 = vsel %vm1289_vm4, %v1385_v33, -inf }
 0x49f   : > { %1390 = vmax.xlane.f32.xlu1 %v1389_v37 }
 0x4b0   : > { %1410 = vrot.lane.b32.xlu1 %v6811_v18, %s5828_s23 }
 0x4b4   : > { %1459 = vrot.lane.b32.xlu1 %v6815_v21, %s5828_s23  ;;  %s7409_s23 = smov 72  }
 0x4b8   : > { %1511 = vrot.lane.b32.xlu1 %v6811_v18, %s5829_s6 }
 0x528   : > { %v1388_v38 = vpop.xlane.xlu1 %1387 }
 0x529   : > { %v1392_v39 = vsub.f32 %v1384_v27, %v1388_v38 }
 0x52b   : > { %v1394_v40 = vmul.f32 1.442695, %v1392_v39 }
 0x52c   : > { %v1391_v41 = vpop.xlane.xlu1 %1390 }
 0x52d   : > { %5033 = vpow2.f32 %v1394_v40  ;;  %v1393_v42 = vsub.f32 %v1385_v33, %v1391_v41 }
 0x52f   : > { %v1396_v43 = vmul.f32 1.442695, %v1393_v42 }
 0x530   : > { %v1411_v44 = vpop.permute.xlu1 %1410 }
 0x531   : > { %5035 = vpow2.f32 %v1396_v43  ;;  %v1417_v45 = vsel %vm1415_vm5, %v1411_v44, 0 }
 0x532   : > { %4598 = vmatpush3.bf16.msra.mxu1 %v1417_v45  ;;  %v1732_v45 = vld [vmem:[%s6683_s1 + $0x4] sm:$0xf] }
 0x533   : > { %4609 = vmatprep.subr.bf16.mxu1 %v5825_v8 }
 0x534   : > { %v1460_v46 = vpop.permute.xlu1 %1459 }
 0x535   : > { %v1465_v47 = vsel %vm1415_vm5, %v1460_v46, 0 }
 0x536   : > { %4604 = vmatpush3.bf16.msra.mxu0 %v1465_v47 }
 0x537   : > { %v5034_v48 = vpop.eup %5033  ;;  %4615 = vmatprep.subr.bf16.mxu0 %v5825_v8 }
 0x538   : > { %v1398_v49 = vsel %vm1289_vm4, %v5034_v48, 0.0  ;;  %v1512_v52 = vpop.permute.xlu1 %1511 }
 0x539   : > { %1399 = vadd.xlane.f32.xlu0 %v1398_v49  ;;  %v1517_v59 = vsel %vm1289_vm4, %v1512_v52, 0 }
 0x53b   : > { %v5036_v50 = vpop.eup %5035 }
 0x53c   : > { %v1401_v51 = vsel %vm1289_vm4, %v5036_v50, 0.0 }
 0x53d   : > { %1402 = vadd.xlane.f32.xlu1 %v1401_v51 }
 0x54e   : > { %1561 = vrot.lane.b32.xlu1 %v6815_v21, %s5829_s6 }
 0x54f   : > { %1509 = vrot.lane.b32.xlu0 %v6811_v18, %s5830_s5 }
 0x552   : > { %1559 = vrot.lane.b32.xlu1 %v6815_v21, %s5830_s5 }
 0x5c6   : > { %v1400_v53 = vpop.xlane.xlu0 %1399 }
 0x5c7   : > { %5037 = vrcp.f32 %v1400_v53 }
 0x5ca   : > { %v1403_v54 = vpop.xlane.xlu1 %1402  ;;  %v1510_v0 = vpop.permute.xlu0 %1509 }
 0x5cb   : > { %5039 = vrcp.f32 %v1403_v54 }
 0x5ce   : > { %v1562_v61 = vpop.permute.xlu1 %1561 }
 0x5cf   : > { %v1567_v63 = vsel %vm1289_vm4, %v1562_v61, 0 }
 0x5d1   : > { %v5038_v55 = vpop.eup %5037 }
 0x5d2   : > { %v1406_v56 = vmul.f32 %v5038_v55, %v5034_v48  ;;  %v1560_v1 = vpop.permute.xlu1 %1559  ;;  %v1737_v48 = vsel %vm1415_vm5, %v1732_v45, 0 }
 0x5d4   : > { %v1408_v57 = vpack.c.bf16 %v1406_v56, %v1406_v56 }
 0x5d5   : > { %v5040_v58 = vpop.eup %5039 }
 0x5d6   : > { %v1407_v60 = vmul.f32 %v5040_v58, %v5036_v50  ;;  %4600 = vmatmul.mubr.msk.bf16.vlgmr.msra.gmra.mrb[8].mxu1 %vm1289_vm4, %v1408_v57  ;;  %v1508_v50 = vld [vmem:[%s6683_s1] sm:$0xf] }
 0x5d7   : > { %4610 = vmatpush3.bf16.xpose.msra.mxu1 %v1517_v59  ;;  %4611 = vmatprep.mubr.msk.bf16.mxu1 %vm5826_vm2, %v5825_v8  ;;  %v1784_v53 = vsel %vm1415_vm5, %v1508_v50, 0 }
 0x5d8   : > { %v1409_v62 = vpack.c.bf16 %v1407_v60, %v1407_v60  ;;  %4621 = vmatprep.subr.bf16.mxu1 %v5825_v8 }
 0x5da   : > { %4606 = vmatmul.mubr.msk.bf16.vlgmr.msra.gmra.mrb[4].mxu0 %vm1289_vm4, %v1409_v62 }
 0x5db   : > { %4616 = vmatpush3.bf16.xpose.msra.mxu0 %v1567_v63  ;;  %4617 = vmatprep.mubr.msk.bf16.mxu0 %vm5826_vm2, %v5825_v8 }
 0x5dc   : > { %4627 = vmatprep.subr.bf16.mxu0 %v5825_v8 }
 0x5de   : > { %4612 = vmatmul.mubr.msk.bf16.vlgmr.msra.gmra.mrb[12].mxu1 %vm1289_vm4, %v1510_v0 }
 0x5df   : > { %4623 = vmatprep.mubr.msk.bf16.mxu1 %vm5826_vm2, %v5825_v8 }
 0x5e2   : > { %4618 = vmatmul.mubr.msk.bf16.vlgmr.msra.gmra.mrb[8].mxu0 %vm1289_vm4, %v1560_v1 }
 0x5e3   : > { %4629 = vmatprep.mubr.msk.bf16.mxu0 %vm5826_vm2, %v5825_v8 }
 0x6a9   : > { %v6865_v2 = vpop.f32.mrb[8].mxu1 }
 0x6aa   : > { %v4601_v3 = vpop.f32.mrb[9].mxu1 }
 0x6ab   : > { %v1456_v4 = vpop.f32.mrb[10].mxu1 }
 0x6ac   : > { %v4602_v5 = vpop.f32.mrb[11].mxu1 }
 0x6ad   : > { %v6867_v6 = vpop.f32.mrb[4].mxu0 }
 0x6ae   : > { %v1507_v7 = vpack.c.bf16 %v6867_v6, %v6865_v2  ;;  %v4607_v9 = vpop.f32.mrb[5].mxu0 }
 0x6af   : > { %v1504_v12 = vpop.f32.mrb[6].mxu0 }
 0x6b0   : > { %v4608_v13 = vpop.f32.mrb[7].mxu0 }
 0x6b1   : > { %v1553_v14 = vpop.f32.mrb[12].mxu1 }
 0x6b2   : > { %v1609_v15 = vmul.f32 0.35355338, %v1553_v14  ;;  %v4613_v16 = vpop.f32.mrb[13].mxu1 }
 0x6b3   : > { %v1556_v17 = vpop.f32.mrb[14].mxu1 }
 0x6b4   : > { %v4614_v19 = vpop.f32.mrb[15].mxu1  ;;  %v1611_v20 = vsel %vm1289_vm4, %v1609_v15, -inf }
 0x6b5   : > { %v1603_v22 = vpop.f32.mrb[8].mxu0  ;;  %1612 = vmax.xlane.f32.xlu1 %v1611_v20 }
 0x6b6   : > { %v1610_v23 = vmul.f32 0.35355338, %v1603_v22  ;;  %v4619_v24 = vpop.f32.mrb[9].mxu0 }
 0x6b7   : > { %v1606_v25 = vpop.f32.mrb[10].mxu0 }
 0x6b8   : > { %v4620_v26 = vpop.f32.mrb[11].mxu0  ;;  %v1614_v27 = vsel %vm1289_vm4, %v1610_v23, -inf }
 0x6b9   : > { %1615 = vmax.xlane.f32.xlu0 %v1614_v27 }
 0x6cf   : > { %1683 = vrot.lane.b32.xlu0 %v6815_v21, %s5831_s30 }
 0x6d3   : > { %1827 = vrot.lane.b32.xlu0 %v6811_v18, %s5832_s29 }
 0x742   : > { %v1613_v28 = vpop.xlane.xlu1 %1612 }
 0x743   : > { %v1617_v29 = vsub.f32 %v1609_v15, %v1613_v28 }
 0x745   : > { %v1619_v30 = vmul.f32 1.442695, %v1617_v29 }
 0x746   : > { %v1616_v31 = vpop.xlane.xlu0 %1615 }
 0x747   : > { %5041 = vpow2.f32 %v1619_v30  ;;  %v1618_v32 = vsub.f32 %v1610_v23, %v1616_v31 }
 0x749   : > { %v1621_v33 = vmul.f32 1.442695, %v1618_v32 }
 0x74a   : > { %v1684_v34 = vpop.permute.xlu0 %1683 }
 0x74b   : > { %5043 = vpow2.f32 %v1621_v33  ;;  %v1689_v35 = vsel %vm1415_vm5, %v1684_v34, 0 }
 0x74c   : > { %4628 = vmatpush3.bf16.msra.mxu0 %v1689_v35 }
 0x74d   : > { %4639 = vmatprep.subr.bf16.mxu0 %v5825_v8 }
 0x74e   : > { %v1828_v6 = vpop.permute.xlu0 %1827 }
 0x751   : > { %v5042_v36 = vpop.eup %5041 }
 0x752   : > { %v1623_v37 = vsel %vm1289_vm4, %v5042_v36, 0.0 }
 0x753   : > { %1624 = vadd.xlane.f32.xlu1 %v1623_v37 }
 0x755   : > { %v5044_v38 = vpop.eup %5043 }
 0x756   : > { %v1626_v39 = vsel %vm1289_vm4, %v5044_v38, 0.0 }
 0x757   : > { %1627 = vadd.xlane.f32.xlu1 %v1626_v39 }
 0x768   : > { %1635 = vrot.lane.b32.xlu1 %v6811_v18, %s5831_s30  ;;  %s5836_s30 = smov 104  }
 0x76c   : > { %1829 = vrot.lane.b32.xlu1 %v6811_v18, %s5833_s11 }
 0x770   : > { %1879 = vrot.lane.b32.xlu1 %v6815_v21, %s5833_s11 }
 0x774   : > { %1877 = vrot.lane.b32.xlu1 %v6815_v21, %s5832_s29 }
 0x7e0   : > { %v1625_v40 = vpop.xlane.xlu1 %1624 }
 0x7e1   : > { %5045 = vrcp.f32 %v1625_v40 }
 0x7e4   : > { %v1628_v41 = vpop.xlane.xlu1 %1627 }
 0x7e5   : > { %5047 = vrcp.f32 %v1628_v41 }
 0x7e8   : > { %v1636_v42 = vpop.permute.xlu1 %1635 }
 0x7e9   : > { %v1641_v43 = vsel %vm1415_vm5, %v1636_v42, 0 }
 0x7ea   : > { %4622 = vmatpush3.bf16.msra.mxu1 %v1641_v43 }
 0x7eb   : > { %v5046_v44 = vpop.eup %5045  ;;  %4633 = vmatprep.subr.bf16.mxu1 %v5825_v8 }
 0x7ec   : > { %v1631_v46 = vmul.f32 %v5046_v44, %v5042_v36  ;;  %v1830_v54 = vpop.permute.xlu1 %1829 }
 0x7ed   : > { %v1835_v2 = vsel %vm1289_vm4, %v1830_v54, 0 }
 0x7ee   : > { %v1633_v47 = vpack.c.bf16 %v1631_v46, %v1631_v46 }
 0x7ef   : > { %v5048_v49 = vpop.eup %5047 }
 0x7f0   : > { %v1632_v51 = vmul.f32 %v5048_v49, %v5044_v38  ;;  %4624 = vmatmul.mubr.msk.bf16.vlgmr.msra.gmra.mrb[16].mxu1 %vm1289_vm4, %v1633_v47  ;;  %v1880_v55 = vpop.permute.xlu1 %1879 }
 0x7f1   : > { %4634 = vmatpush3.bf16.msra.mxu1 %v1737_v48  ;;  %4635 = vmatprep.mubr.msk.bf16.mxu1 %vm5826_vm2, %v5825_v8  ;;  %v1885_v56 = vsel %vm1289_vm4, %v1880_v55, 0 }
 0x7f2   : > { %v1634_v52 = vpack.c.bf16 %v1632_v51, %v1632_v51  ;;  %4645 = vmatprep.subr.bf16.mxu1 %v5825_v8 }
 0x7f4   : > { %4630 = vmatmul.mubr.msk.bf16.vlgmr.msra.gmra.mrb[12].mxu0 %vm1289_vm4, %v1634_v52  ;;  %v1878_v57 = vpop.permute.xlu1 %1877 }
 0x7f5   : > { %4640 = vmatpush3.bf16.msra.mxu0 %v1784_v53  ;;  %4641 = vmatprep.mubr.msk.bf16.mxu0 %vm5826_vm2, %v5825_v8 }
 0x7f6   : > { %4651 = vmatprep.subr.bf16.mxu0 %v5825_v8 }
 0x7fc   : > { %4642 = vmatmul.mubr.msk.bf16.vlgmr.msra.gmra.mrb[16].mxu0 %vm1289_vm4, %v1507_v7 }
 0x7fd   : > { %4653 = vmatprep.mubr.msk.bf16.mxu0 %vm5826_vm2, %v5825_v8 }
 0x7fe   : > { %4652 = vmatpush3.bf16.xpose.msra.mxu0 %v1885_v56 }
 0x7ff   : > { %4663 = vmatprep.subr.bf16.mxu0 %v5825_v8 }
 0x805   : > { %4654 = vmatmul.mubr.msk.bf16.vlgmr.msra.gmra.mrb[20].mxu0 %vm1289_vm4, %v1878_v57  ;;  %v2050_v57 = vld [vmem:[%s6683_s1 + $0x8] sm:$0xf] }
 0x806   : > { %4665 = vmatprep.mubr.msk.bf16.mxu0 %vm5826_vm2, %v5825_v8 }
 0x8c3   : > { %v1677_v58 = vpop.f32.mrb[16].mxu1 }
 0x8c4   : > { %v4625_v59 = vpop.f32.mrb[17].mxu1 }
 0x8c5   : > { %v1680_v60 = vpop.f32.mrb[18].mxu1 }
 0x8c6   : > { %v4626_v61 = vpop.f32.mrb[19].mxu1 }
 0x8c7   : > { %v1725_v62 = vpop.f32.mrb[12].mxu0 }
 0x8c8   : > { %v1731_v63 = vpack.c.bf16 %v1725_v62, %v1677_v58  ;;  %v4631_v0 = vpop.f32.mrb[13].mxu0  ;;  %v2055_v58 = vsel %vm1415_vm5, %v2050_v57, 0 }
 0x8c9   : > { %v1728_v1 = vpop.f32.mrb[14].mxu0 }
 0x8ca   : > { %v4632_v3 = vpop.f32.mrb[15].mxu0  ;;  %4636 = vmatmul.mubr.msk.bf16.vlgmr.msra.gmra.mrb[20].mxu1 %vm1289_vm4, %v1731_v63 }
 0x8cb   : > { %4646 = vmatpush3.bf16.xpose.msra.mxu1 %v1835_v2  ;;  %4647 = vmatprep.mubr.msk.bf16.mxu1 %vm5826_vm2, %v5825_v8 }
 0x8cc   : > { %4657 = vmatprep.subr.bf16.mxu1 %v5825_v8 }
 0x8cf   : > { %v1820_v4 = vpop.f32.mrb[16].mxu0 }
 0x8d0   : > { %v4643_v5 = vpop.f32.mrb[17].mxu0 }
 0x8d1   : > { %v1823_v7 = vpop.f32.mrb[18].mxu0 }
 0x8d2   : > { %v4644_v9 = vpop.f32.mrb[19].mxu0  ;;  %4648 = vmatmul.mubr.msk.bf16.vlgmr.msra.gmra.mrb[24].mxu1 %vm1289_vm4, %v1828_v6 }
 0x8d3   : > { %4659 = vmatprep.mubr.msk.bf16.mxu1 %vm5826_vm2, %v5825_v8 }
 0x8d8   : > { %v1921_v12 = vpop.f32.mrb[20].mxu0 }
 0x8d9   : > { %v1928_v13 = vmul.f32 0.35355338, %v1921_v12  ;;  %v4655_v14 = vpop.f32.mrb[21].mxu0 }
 0x8da   : > { %v1924_v15 = vpop.f32.mrb[22].mxu0 }
 0x8db   : > { %v4656_v16 = vpop.f32.mrb[23].mxu0  ;;  %v1932_v17 = vsel %vm1289_vm4, %v1928_v13, -inf }
 0x8dc   : > { %1933 = vmax.xlane.f32.xlu1 %v1932_v17 }
 0x8ed   : > { %1953 = vrot.lane.b32.xlu1 %v6811_v18, %s5834_s13 }
 0x8f1   : > { %2102 = vrot.lane.b32.xlu1 %v6811_v18, %s7409_s23 }
 0x8f5   : > { %2152 = vrot.lane.b32.xlu1 %v6815_v21, %s7409_s23  ;;  %s7495_s23 = scalar_lea.vmem [#allocation14], %s6663_s19 }
 0x8f9   : > { %2150 = vrot.lane.b32.xlu1 %v6815_v21, %s5836_s30 }
 0x969   : > { %v1934_v19 = vpop.xlane.xlu1 %1933 }
 0x96a   : > { %v1936_v23 = vsub.f32 %v1928_v13, %v1934_v19 }
 0x96c   : > { %v1939_v24 = vmul.f32 1.442695, %v1936_v23 }
 0x96d   : > { %v1954_v20 = vpop.permute.xlu1 %1953 }
 0x96e   : > { %v1959_v22 = vsel %vm1415_vm5, %v1954_v20, 0  ;;  %5049 = vpow2.f32 %v1939_v24 }
 0x96f   : > { %4658 = vmatpush3.bf16.msra.mxu1 %v1959_v22 }
 0x970   : > { %4669 = vmatprep.subr.bf16.mxu1 %v5825_v8 }
 0x971   : > { %v2103_v52 = vpop.permute.xlu1 %2102 }
 0x972   : > { %v2108_v54 = vsel %vm1289_vm4, %v2103_v52, 0 }
 0x975   : > { %v2153_v63 = vpop.permute.xlu1 %2152 }
 0x978   : > { %v5050_v37 = vpop.eup %5049 }
 0x979   : > { %v1944_v38 = vsel %vm1289_vm4, %v5050_v37, 0.0  ;;  %v2151_v15 = vpop.permute.xlu1 %2150 }
 0x99d   : > { %v1773_v25 = vpop.f32.mrb[20].mxu1 }
 0x99e   : > { %v6931_v26 = vadd.f32 %v1820_v4, %v1773_v25  ;;  %v4637_v27 = vpop.f32.mrb[21].mxu1  ;;  %v2158_v4 = vsel %vm1289_vm4, %v2153_v63, 0 }
 0x99f   : > { %v1776_v28 = vpop.f32.mrb[22].mxu1 }
 0x9a0   : > { %v6933_v29 = vadd.f32 %v1823_v7, %v1776_v28  ;;  %v4638_v30 = vpop.f32.mrb[23].mxu1 }
 0x9a5   : > { %v1871_v31 = vpop.f32.mrb[24].mxu1 }
 0x9a6   : > { %v1927_v32 = vmul.f32 0.35355338, %v1871_v31  ;;  %v4649_v33 = vpop.f32.mrb[25].mxu1 }
 0x9a7   : > { %v1874_v34 = vpop.f32.mrb[26].mxu1 }
 0x9a8   : > { %v4650_v35 = vpop.f32.mrb[27].mxu1  ;;  %v1929_v36 = vsel %vm1289_vm4, %v1927_v32, -inf }
 0x9a9   : > { %1930 = vmax.xlane.f32.xlu0 %v1929_v36 }
 0x9ad   : > { %1945 = vadd.xlane.f32.xlu0 %v1944_v38 }
 0xa36   : > { %v1931_v39 = vpop.xlane.xlu0 %1930 }
 0xa37   : > { %v1935_v40 = vsub.f32 %v1927_v32, %v1931_v39 }
 0xa39   : > { %v1937_v41 = vmul.f32 1.442695, %v1935_v40 }
 0xa3a   : > { %v1946_v44 = vpop.xlane.xlu0 %1945 }
 0xa3b   : > { %5051 = vpow2.f32 %v1937_v41 }
 0xa3c   : > { %5053 = vrcp.f32 %v1946_v44 }
 0xa45   : > { %v5052_v42 = vpop.eup %5051 }
 0xa46   : > { %v1941_v43 = vsel %vm1289_vm4, %v5052_v42, 0.0  ;;  %v5054_v45 = vpop.eup %5053 }
 0xa47   : > { %1942 = vadd.xlane.f32.xlu0 %v1941_v43  ;;  %v1950_v47 = vmul.f32 %v5054_v45, %v5050_v37  ;;  %v2323_v45 = vld [vmem:[%s6683_s1 + $0xc] sm:$0xf]  ;;  %s7493_s1 = scalar_lea.vmem [#allocation15], %s6666_s16 }
 0xa49   : > { %v1952_v50 = vpack.c.bf16 %v1950_v47, %v1950_v47 }
 0xa5d   : > { %2001 = vrot.lane.b32.xlu0 %v6815_v21, %s5834_s13  ;;  %s5837_s13 = smov 40  }
 0xa61   : > { %2100 = vrot.lane.b32.xlu0 %v6811_v18, %s5836_s30 }
 0xad4   : > { %v1943_v46 = vpop.xlane.xlu0 %1942 }
 0xad5   : > { %5055 = vrcp.f32 %v1943_v46  ;;  %v2328_v46 = vsel %vm1415_vm5, %v2323_v45, 0 }
 0xad8   : > { %v2002_v48 = vpop.permute.xlu0 %2001 }
 0xad9   : > { %v2007_v49 = vsel %vm1415_vm5, %v2002_v48, 0 }
 0xada   : > { %4664 = vmatpush3.bf16.msra.mxu0 %v2007_v49 }
 0xadb   : > { %4675 = vmatprep.subr.bf16.mxu0 %v5825_v8 }
 0xadc   : > { %v2101_v56 = vpop.permute.xlu0 %2100 }
 0xadd   : > { %4666 = vmatmul.mubr.msk.bf16.vlgmr.msra.gmra.mrb[24].mxu0 %vm1289_vm4, %v1952_v50 }
 0xade   : > { %4677 = vmatprep.mubr.msk.bf16.mxu0 %vm5826_vm2, %v5825_v8 }
 0xadf   : > { %v5056_v51 = vpop.eup %5055 }
 0xae0   : > { %v1949_v53 = vmul.f32 %v5056_v51, %v5052_v42 }
 0xae2   : > { %v1951_v55 = vpack.c.bf16 %v1949_v53, %v1949_v53 }
 0xae3   : > { %4676 = vmatpush3.bf16.xpose.msra.mxu0 %v2108_v54 }
 0xae4   : > { %4660 = vmatmul.mubr.msk.bf16.vlgmr.msra.gmra.mrb[28].mxu1 %vm1289_vm4, %v1951_v55  ;;  %4687 = vmatprep.subr.bf16.mxu0 %v5825_v8 }
 0xae5   : > { %4671 = vmatprep.mubr.msk.bf16.mxu1 %vm5826_vm2, %v5825_v8  ;;  %4670 = vmatpush3.bf16.msra.mxu1 %v2055_v58 }
 0xae6   : > { %4681 = vmatprep.subr.bf16.mxu1 %v5825_v8 }
 0xaea   : > { %4678 = vmatmul.mubr.msk.bf16.vlgmr.msra.gmra.mrb[28].mxu0 %vm1289_vm4, %v2101_v56 }
 0xaeb   : > { %4689 = vmatprep.mubr.msk.bf16.mxu0 %vm5826_vm2, %v5825_v8 }
 0xbb0   : > { %v2043_v59 = vpop.f32.mrb[24].mxu0 }
 0xbb1   : > { %v4667_v60 = vpop.f32.mrb[25].mxu0 }
 0xbb2   : > { %v2046_v61 = vpop.f32.mrb[26].mxu0 }
 0xbb3   : > { %v4668_v62 = vpop.f32.mrb[27].mxu0  ;;  %v5024_v61 = vld [vmem:[%s7493_s1] sm:$0xff]  }
 0xbb7   : > { %v1995_v0 = vpop.f32.mrb[28].mxu1 }
 0xbb8   : > { %v2049_v1 = vpack.c.bf16 %v2043_v59, %v1995_v0  ;;  %v4661_v2 = vpop.f32.mrb[29].mxu1  ;;  %v4411_v0 = vld [vmem:[%s7495_s23] ss:$0 sm:$0xff]  ;;  %s7496_s23 = scalar_lea.vmem [#allocation16], %s6663_s19 }
 0xbb9   : > { %v1998_v3 = vpop.f32.mrb[30].mxu1 }
 0xbba   : > { %v4662_v5 = vpop.f32.mrb[31].mxu1  ;;  %4672 = vmatmul.mubr.msk.bf16.vlgmr.msra.gmra.mrb[32].mxu1 %vm1289_vm4, %v2049_v1 }
 0xbbb   : > { %4682 = vmatpush3.bf16.xpose.msra.mxu1 %v2158_v4  ;;  %4683 = vmatprep.mubr.msk.bf16.mxu1 %vm5826_vm2, %v5825_v8 }
 0xbbc   : > { %4693 = vmatprep.subr.bf16.mxu1 %v5825_v8 }
 0xbbd   : > { %v2144_v6 = vpop.f32.mrb[28].mxu0 }
 0xbbe   : > { %v2200_v7 = vmul.f32 0.35355338, %v2144_v6  ;;  %v4679_v9 = vpop.f32.mrb[29].mxu0 }
 0xbbf   : > { %v2147_v12 = vpop.f32.mrb[30].mxu0 }
 0xbc0   : > { %v4680_v13 = vpop.f32.mrb[31].mxu0  ;;  %v2202_v14 = vsel %vm1289_vm4, %v2200_v7, -inf }
 0xbc1   : > { %2203 = vmax.xlane.f32.xlu0 %v2202_v14 }
 0xbc2   : > { %4684 = vmatmul.mubr.msk.bf16.vlgmr.msra.gmra.mrb[36].mxu1 %vm1289_vm4, %v2151_v15 }
 0xbc3   : > { %4695 = vmatprep.mubr.msk.bf16.mxu1 %vm5826_vm2, %v5825_v8 }
 0xc4e   : > { %v2204_v16 = vpop.xlane.xlu0 %2203 }
 0xc4f   : > { %v2208_v17 = vsub.f32 %v2200_v7, %v2204_v16 }
 0xc51   : > { %v2210_v19 = vmul.f32 1.442695, %v2208_v17 }
 0xc53   : > { %5057 = vpow2.f32 %v2210_v19 }
 0xc5d   : > { %v5058_v20 = vpop.eup %5057 }
 0xc5e   : > { %v2214_v22 = vsel %vm1289_vm4, %v5058_v20, 0.0 }
 0xc5f   : > { %2215 = vadd.xlane.f32.xlu0 %v2214_v22 }
 0xc8d   : > { %v2091_v23 = vpop.f32.mrb[32].mxu1 }
 0xc8e   : > { %v6969_v24 = vadd.f32 %v2091_v23, %v6931_v26  ;;  %v4673_v25 = vpop.f32.mrb[33].mxu1 }
 0xc8f   : > { %v2094_v27 = vpop.f32.mrb[34].mxu1 }
 0xc90   : > { %v6972_v28 = vadd.f32 %v2094_v27, %v6933_v29  ;;  %v4674_v30 = vpop.f32.mrb[35].mxu1 }
 0xc95   : > { %v2194_v31 = vpop.f32.mrb[36].mxu1 }
 0xc96   : > { %v2201_v32 = vmul.f32 0.35355338, %v2194_v31  ;;  %v4685_v33 = vpop.f32.mrb[37].mxu1 }
 0xc97   : > { %v2197_v34 = vpop.f32.mrb[38].mxu1 }
 0xc98   : > { %v4686_v35 = vpop.f32.mrb[39].mxu1  ;;  %v2205_v36 = vsel %vm1289_vm4, %v2201_v32, -inf }
 0xc99   : > { %2206 = vmax.xlane.f32.xlu1 %v2205_v36 }
 0xcaa   : > { %2226 = vrot.lane.b32.xlu1 %v6811_v18, %s5837_s13 }
 0xcec   : > { %v2216_v37 = vpop.xlane.xlu0 %2215 }
 0xced   : > { %5059 = vrcp.f32 %v2216_v37 }
 0xcf7   : > { %v5060_v26 = vpop.eup %5059 }
 0xcf8   : > { %v2222_v29 = vmul.f32 %v5060_v26, %v5058_v20  ;;  %v5026_v26 = vld [vmem:[%s6647_s12] sm:$0xff]   ;;  %s7497_s12 = smov 72  }
 0xcfa   : > { %v2224_v43 = vpack.c.bf16 %v2222_v29, %v2222_v29  ;;  %v4412_v29 = vld [vmem:[%s6759_s20] ss:$0 sm:$0xff] }
 0xd26   : > { %v2207_v38 = vpop.xlane.xlu1 %2206 }
 0xd27   : > { %v2209_v39 = vsub.f32 %v2201_v32, %v2207_v38 }
 0xd29   : > { %v2212_v40 = vmul.f32 1.442695, %v2209_v39 }
 0xd2a   : > { %v2227_v41 = vpop.permute.xlu1 %2226 }
 0xd2b   : > { %5061 = vpow2.f32 %v2212_v40  ;;  %v2232_v42 = vsel %vm1415_vm5, %v2227_v41, 0 }
 0xd2c   : > { %4688 = vmatpush3.bf16.msra.mxu0 %v2232_v42 }
 0xd2d   : > { %4699 = vmatprep.subr.bf16.mxu0 %v5825_v8 }
 0xd2f   : > { %4690 = vmatmul.mubr.msk.bf16.vlgmr.msra.gmra.mrb[32].mxu0 %vm1289_vm4, %v2224_v43 }
 0xd30   : > { %4701 = vmatprep.mubr.msk.bf16.mxu0 %vm5826_vm2, %v5825_v8  ;;  %4700 = vmatpush3.bf16.msra.mxu0 %v2328_v46 }
 0xd31   : > { %4713 = vmatprep.subr.bf16.mxu0 %v5825_v8 }
 0xd35   : > { %v5062_v18 = vpop.eup %5061 }
 0xd36   : > { %v2217_v44 = vsel %vm1289_vm4, %v5062_v18, 0.0 }
 0xd37   : > { %2218 = vadd.xlane.f32.xlu0 %v2217_v44  ;;  %v4413_v44 = vld [vmem:[%s6767_s0] ss:$0 sm:$0xff] }
 0xd4d   : > { %2274 = vrot.lane.b32.xlu0 %v6815_v21, %s5837_s13  ;;  %s7494_s13 = smov %s7493_s1 }
 0xd4e   : > { %v5025_v62 = vld [vmem:[%s7494_s13 + $0x8] sm:$0xff]   ;;  %s7505_s13 = sld [smem:[#allocation76_spill]] }
 0xdc4   : > { %v2219_v47 = vpop.xlane.xlu0 %2218 }
 0xdc5   : > { %5063 = vrcp.f32 %v2219_v47 }
 0xdc8   : > { %v2275_v48 = vpop.permute.xlu0 %2274 }
 0xdc9   : > { %v2280_v49 = vsel %vm1415_vm5, %v2275_v48, 0 }
 0xdca   : > { %4694 = vmatpush3.bf16.msra.mxu1 %v2280_v49 }
 0xdcb   : > { %4705 = vmatprep.subr.bf16.mxu1 %v5825_v8 }
 0xdcf   : > { %v5064_v50 = vpop.eup %5063 }
 0xdd0   : > { %v2223_v51 = vmul.f32 %v5064_v50, %v5062_v18 }
 0xdd2   : > { %v2225_v52 = vpack.c.bf16 %v2223_v51, %v2223_v51 }
 0xdd4   : > { %4696 = vmatmul.mubr.msk.bf16.vlgmr.msra.gmra.mrb[40].mxu1 %vm1289_vm4, %v2225_v52 }
 0xdd5   : > { %4709 = vmatprep.mubr.msk.bf16.mxu1 %vm5826_vm2, %v5825_v8  ;;  %4706 = vmatpush3.bf16.msra.mxu1 %v5024_v61 }
 0xdd6   : > { %4707 = vmatprep.subr.bf16.mxu1 %v5825_v8 }
 0xdd9   : > { %4708 = vmatpush3.bf16.msra.mxu1 %v5025_v62 }
 0xdda   : > { %4721 = vmatprep.subr.bf16.mxu1 %v5825_v8 }
 0xe02   : > { %v2268_v21 = vpop.f32.mrb[32].mxu0 }
 0xe03   : > { %v4691_v53 = vpop.f32.mrb[33].mxu0 }
 0xe04   : > { %v2271_v54 = vpop.f32.mrb[34].mxu0 }
 0xe05   : > { %v4692_v55 = vpop.f32.mrb[35].mxu0 }
 0xea7   : > { %v2316_v56 = vpop.f32.mrb[40].mxu1 }
 0xea8   : > { %v2322_v57 = vpack.c.bf16 %v2316_v56, %v2268_v21  ;;  %v4697_v58 = vpop.f32.mrb[41].mxu1 }
 0xea9   : > { %v2319_v59 = vpop.f32.mrb[42].mxu1 }
 0xeaa   : > { %v4698_v60 = vpop.f32.mrb[43].mxu1  ;;  %4702 = vmatmul.mubr.msk.bf16.vlgmr.msra.gmra.mrb[36].mxu0 %vm1289_vm4, %v2322_v57 }
 0xeab   : > { %4717 = vmatprep.mubr.msk.bf16.mxu0 %vm5826_vm2, %v5825_v8 }
 0xf7d   : > { %v2364_v63 = vpop.f32.mrb[36].mxu0 }
 0xf7e   : > { %v2371_v1 = vadd.f32 %v2364_v63, %v6969_v24  ;;  %v4703_v2 = vpop.f32.mrb[37].mxu0 }
 0xf7f   : > { %v2367_v3 = vpop.f32.mrb[38].mxu0 }
 0xf80   : > { %v2380_v4 = vadd.f32 %v4411_v0, %v2371_v1  ;;  %v2372_v5 = vadd.f32 %v2367_v3, %v6972_v28  ;;  %v4704_v6 = vpop.f32.mrb[39].mxu0 }
 0xf82   : > { %v2382_v7 = vadd.f32 %v2380_v4, %v6795_v10  ;;  %v2381_v9 = vadd.f32 %v4411_v0, %v2372_v5  ;;  %v4414_v10 = vld [vmem:[%s7496_s23] ss:$0 sm:$0xff] }
 0xf83   : > { %v7054_v4 = vld [vmem:[#allocation2] sm:$0xff] }
 0xf84   : > { %v2383_v12 = vadd.f32 %v2381_v9, %v6798_v11  ;;  %v2386_v13 = vsel %vm1236_vm3, %v2382_v7, 0.0  ;;  %v2395_v14 = vmul.f32 %v2382_v7, %v2382_v7 }
 0xf85   : > { %2387 = vadd.xlane.f32.xlu1 %v2386_v13 }
 0xf86   : > { %v2389_v15 = vsel %vm1236_vm3, %v2383_v12, 0.0  ;;  %v2396_v16 = vmul.f32 %v2383_v12, %v2383_v12  ;;  %v2397_v17 = vsel %vm1236_vm3, %v2395_v14, 0.0 }
 0xf87   : > { %2390 = vadd.xlane.f32.xlu0 %v2389_v15 }
 0xf88   : > { %v2400_v19 = vsel %vm1236_vm3, %v2396_v16, 0.0 }
 0xf89   : > { %2398 = vadd.xlane.f32.xlu1 %v2397_v17 }
 0xf8b   : > { %2401 = vadd.xlane.f32.xlu0 %v2400_v19 }
 0xf9a   : > { %2508 = vrot.lane.b32.xlu1 %v5024_v61, %s5827_s28 }
 0xf9e   : > { %2514 = vrot.lane.b32.xlu1 %v4414_v10, %s5827_s28 }
 0xfa1   : > { %2510 = vrot.lane.b32.xlu0 %v5025_v62, %s5827_s28 }
0x1012   : > { %v2388_v11 = vpop.xlane.xlu1 %2387 }
0x1013   : > { %v2393_v20 = vmul.f32 0.03125, %v2388_v11 }
0x1014   : > { %v2391_v22 = vpop.xlane.xlu0 %2390 }
0x1015   : > { %v2394_v23 = vmul.f32 0.03125, %v2391_v22  ;;  %v2405_v25 = vmul.f32 %v2393_v20, %v2393_v20  ;;  %v2409_v38 = vsub.f32 %v2382_v7, %v2393_v20 }
0x1016   : > { %v2399_v24 = vpop.xlane.xlu1 %2398 }
0x1017   : > { %v2403_v27 = vmul.f32 0.03125, %v2399_v24  ;;  %v2406_v30 = vmul.f32 %v2394_v23, %v2394_v23  ;;  %v2410_v40 = vsub.f32 %v2383_v12, %v2394_v23  ;;  %v7056_v12 = vld [vmem:[#allocation2 + $0x8] sm:$0xff] }
0x1018   : > { %v2402_v28 = vpop.xlane.xlu0 %2401 }
0x1019   : > { %v2407_v31 = vsub.f32 %v2403_v27, %v2405_v25  ;;  %v2404_v32 = vmul.f32 0.03125, %v2402_v28 }
0x101a   : > { %v2509_v33 = vpop.permute.xlu1 %2508 }
0x101b   : > { %v2411_v34 = vadd.f32 1e-05, %v2407_v31  ;;  %v2408_v35 = vsub.f32 %v2404_v32, %v2406_v30  ;;  %4714 = vmatpush3.bf16.msra.mxu0 %v2509_v33 }
0x101c   : > { %4715 = vmatprep.subr.bf16.mxu0 %v5825_v8  ;;  %v2511_v36 = vpop.permute.xlu0 %2510 }
0x101d   : > { %5065 = vrsqrt.f32 %v2411_v34  ;;  %v2412_v37 = vadd.f32 1e-05, %v2408_v35 }
0x101e   : > { %v2515_v49 = vpop.permute.xlu1 %2514 }
0x101f   : > { %5067 = vrsqrt.f32 %v2412_v37  ;;  %4716 = vmatpush3.bf16.msra.mxu0 %v2511_v36 }
0x1020   : > { %4727 = vmatprep.subr.bf16.mxu0 %v5825_v8 }
0x1022   : > { %4718 = vmatmul.mubr.msk.bf16.vlgmr.msra.gmra.mrb[40].mxu0 %vm1236_vm3, %v5026_v26 }
0x1023   : > { %4729 = vmatprep.mubr.msk.bf16.mxu0 %vm5826_vm2, %v5825_v8 }
0x1027   : > { %v5066_v39 = vpop.eup %5065 }
0x1028   : > { %v2415_v41 = vmul.f32 %v5066_v39, %v2409_v38 }
0x1029   : > { %v5068_v42 = vpop.eup %5067 }
0x102a   : > { %v2416_v43 = vmul.f32 %v5068_v42, %v2410_v40  ;;  %v2421_v18 = vmul.f32 %v4412_v29, %v2415_v41 }
0x102c   : > { %v2422_v45 = vmul.f32 %v4412_v29, %v2416_v43  ;;  %v7023_v46 = vadd.f32 %v4413_v44, %v2421_v18 }
0x102e   : > { %v7025_v47 = vadd.f32 %v4413_v44, %v2422_v45 }
0x1030   : > { %v2429_v48 = vpack.c.bf16 %v7025_v47, %v7023_v46 }
0x1032   : > { %4710 = vmatmul.mubr.msk.bf16.vlgmr.msra.gmra.mrb[44].mxu1 %vm1236_vm3, %v2429_v48 }
0x1033   : > { %4723 = vmatprep.mubr.msk.bf16.mxu1 %vm5826_vm2, %v5825_v8 }
0x10f5   : > { %v2554_v50 = vpop.f32.mrb[40].mxu0 }
0x10f6   : > { %v4719_v51 = vpop.f32.mrb[41].mxu0  ;;  %v2555_v52 = vadd.f32 %v2554_v50, %v2515_v49 }
0x10f7   : > { %v2557_v21 = vpop.f32.mrb[42].mxu0 }
0x10f8   : > { %v2558_v53 = vadd.f32 %v2557_v21, %v2515_v49  ;;  %v7032_v54 = vpack.c.bf16 %v2555_v52, %v2555_v52  ;;  %v4720_v55 = vpop.f32.mrb[43].mxu0 }
0x10fa   : > { %v7034_v56 = vpack.c.bf16 %v2558_v53, %v2558_v53  ;;  %v2571_v57 = vsel %vm1289_vm4, %v7032_v54, 0 }
0x10fb   : > { %4722 = vmatpush3.bf16.xpose.msra.mxu1 %v2571_v57 }
0x10fc   : > { %v2617_v58 = vsel %vm1289_vm4, %v7034_v56, 0  ;;  %4733 = vmatprep.subr.bf16.mxu1 %v5825_v8 }
0x10fd   : > { %4728 = vmatpush3.bf16.xpose.msra.mxu0 %v2617_v58 }
0x10fe   : > { %4739 = vmatprep.subr.bf16.mxu0 %v5825_v8 }
0x1105   : > { %v2490_v59 = vpop.f32.mrb[44].mxu1 }
0x1106   : > { %v2491_v60 = vadd.f32 %v4414_v10, %v2490_v59  ;;  %v4711_v61 = vpop.f32.mrb[45].mxu1 }
0x1107   : > { %v2493_v62 = vpop.f32.mrb[46].mxu1 }
0x1108   : > { %v7042_v63 = vpack.c.bf16 %v2491_v60, %v2491_v60  ;;  %v2494_v0 = vadd.f32 %v4414_v10, %v2493_v62  ;;  %v4712_v1 = vpop.f32.mrb[47].mxu1 }
0x110a   : > { %v7044_v2 = vpack.c.bf16 %v2494_v0, %v2494_v0  ;;  %4724 = vmatmul.mubr.msk.bf16.vlgmr.msra.gmra.mrb[48].mxu1 %vm1289_vm4, %v7042_v63 }
0x110b   : > { %4735 = vmatprep.mubr.msk.bf16.mxu1 %vm5826_vm2, %v5825_v8 }
0x110c   : > { %4730 = vmatmul.mubr.msk.bf16.vlgmr.msra.gmra.mrb[44].mxu0 %vm1289_vm4, %v7044_v2 }
0x110d   : > { %4741 = vmatprep.mubr.msk.bf16.mxu0 %vm5826_vm2, %v5825_v8 }
0x11dd   : > { %v2607_v3 = vpop.f32.mrb[48].mxu1 }
0x11de   : > { %v2659_v5 = vmul.f32 0.35355338, %v2607_v3  ;;  %v4725_v6 = vpop.f32.mrb[49].mxu1 }
0x11df   : > { %v2610_v7 = vpop.f32.mrb[50].mxu1  ;;  %v2653_v9 = vpop.f32.mrb[44].mxu0 }
0x11e0   : > { %v2660_v13 = vmul.f32 0.35355338, %v2653_v9  ;;  %v4726_v14 = vpop.f32.mrb[51].mxu1  ;;  %v4731_v15 = vpop.f32.mrb[45].mxu0  ;;  %v2661_v16 = vadd.f32 %v2659_v5, %v7054_v4 }
0x11e1   : > { %v2656_v17 = vpop.f32.mrb[46].mxu0 }
0x11e2   : > { %v4732_v19 = vpop.f32.mrb[47].mxu0  ;;  %v2663_v10 = vsel %vm1289_vm4, %v2661_v16, -inf  ;;  %v2662_v11 = vadd.f32 %v2660_v13, %v7056_v12 }
0x11e3   : > { %2664 = vmax.xlane.f32.xlu1 %v2663_v10 }
0x11e4   : > { %v2666_v20 = vsel %vm1289_vm4, %v2662_v11, -inf }
0x11e5   : > { %2667 = vmax.xlane.f32.xlu0 %v2666_v20 }
0x11f4   : > { %2735 = vrot.lane.b32.xlu1 %v7034_v56, %s5827_s28 }
0x11fb   : > { %2687 = vrot.lane.b32.xlu0 %v7032_v54, %s5827_s28  ;;  %s7499_s28 = scalar_lea.vmem [#allocation19], %s6666_s16  ;;  %s7501_s16 = scalar_lea.vmem [#allocation20], %s6663_s19 }
0x1270   : > { %v2665_v22 = vpop.xlane.xlu1 %2664 }
0x1271   : > { %v2669_v23 = vsub.f32 %v2661_v16, %v2665_v22 }
0x1272   : > { %v2668_v24 = vpop.xlane.xlu0 %2667 }
0x1273   : > { %v2671_v25 = vmul.f32 1.442695, %v2669_v23  ;;  %v2670_v27 = vsub.f32 %v2662_v11, %v2668_v24 }
0x1274   : > { %v2736_v28 = vpop.permute.xlu1 %2735 }
0x1275   : > { %5069 = vpow2.f32 %v2671_v25  ;;  %v2673_v30 = vmul.f32 1.442695, %v2670_v27  ;;  %v2741_v31 = vsel %vm1415_vm5, %v2736_v28, 0 }
0x1276   : > { %v2688_v32 = vpop.permute.xlu0 %2687  ;;  %4740 = vmatpush3.bf16.msra.mxu0 %v2741_v31 }
0x1277   : > { %5071 = vpow2.f32 %v2673_v30  ;;  %v2693_v33 = vsel %vm1415_vm5, %v2688_v32, 0  ;;  %4751 = vmatprep.subr.bf16.mxu0 %v5825_v8 }
0x1278   : > { %4734 = vmatpush3.bf16.msra.mxu1 %v2693_v33 }
0x1279   : > { %4745 = vmatprep.subr.bf16.mxu1 %v5825_v8 }
0x127f   : > { %v5070_v34 = vpop.eup %5069 }
0x1280   : > { %v2675_v35 = vsel %vm1289_vm4, %v5070_v34, 0.0 }
0x1281   : > { %v5072_v36 = vpop.eup %5071  ;;  %2676 = vadd.xlane.f32.xlu0 %v2675_v35 }
0x1282   : > { %v2678_v37 = vsel %vm1289_vm4, %v5072_v36, 0.0 }
0x1283   : > { %2679 = vadd.xlane.f32.xlu1 %v2678_v37  ;;  %v3010_v37 = vld [vmem:[%s6713_s22 + $0x4] sm:$0xf] }
0x1294   : > { %2787 = vrot.lane.b32.xlu1 %v7032_v54, %s5830_s5 }
0x1297   : > { %2837 = vrot.lane.b32.xlu0 %v7034_v56, %s5830_s5 }
0x1298   : > { %2785 = vrot.lane.b32.xlu1 %v7042_v63, %s5830_s5 }
0x129b   : > { %2835 = vrot.lane.b32.xlu0 %v7044_v2, %s5830_s5  ;;  %s7502_s5 = scalar_lea.vmem [#allocation22], %s6663_s19 }
0x130e   : > { %v2677_v26 = vpop.xlane.xlu0 %2676 }
0x130f   : > { %5073 = vrcp.f32 %v2677_v26 }
0x1310   : > { %v2680_v38 = vpop.xlane.xlu1 %2679 }
0x1311   : > { %5075 = vrcp.f32 %v2680_v38 }
0x1312   : > { %v2838_v18 = vpop.permute.xlu0 %2837 }
0x1313   : > { %v2843_v48 = vsel %vm1289_vm4, %v2838_v18, 0 }
0x1314   : > { %v2788_v41 = vpop.permute.xlu1 %2787 }
0x1315   : > { %v2793_v44 = vsel %vm1289_vm4, %v2788_v41, 0  ;;  %v3015_v41 = vsel %vm1415_vm5, %v3010_v37, 0 }
0x1316   : > { %v2836_v50 = vpop.permute.xlu0 %2835 }
0x1318   : > { %v2786_v49 = vpop.permute.xlu1 %2785 }
0x1319   : > { %v5074_v39 = vpop.eup %5073 }
0x131a   : > { %v2683_v29 = vmul.f32 %v5074_v39, %v5070_v34  ;;  %v2784_v39 = vld [vmem:[%s6713_s22] sm:$0xf] }
0x131b   : > { %v5076_v40 = vpop.eup %5075 }
0x131c   : > { %v2684_v42 = vmul.f32 %v5076_v40, %v5072_v36  ;;  %v2685_v43 = vpack.c.bf16 %v2683_v29, %v2683_v29 }
0x131e   : > { %4736 = vmatmul.mubr.msk.bf16.vlgmr.msra.gmra.mrb[52].mxu1 %vm1289_vm4, %v2685_v43  ;;  %v2686_v45 = vpack.c.bf16 %v2684_v42, %v2684_v42  ;;  %v3062_v43 = vsel %vm1415_vm5, %v2784_v39, 0 }
0x131f   : > { %4746 = vmatpush3.bf16.xpose.msra.mxu1 %v2793_v44  ;;  %4747 = vmatprep.mubr.msk.bf16.mxu1 %vm5826_vm2, %v5825_v8 }
0x1320   : > { %4742 = vmatmul.mubr.msk.bf16.vlgmr.msra.gmra.mrb[48].mxu0 %vm1289_vm4, %v2686_v45  ;;  %4757 = vmatprep.subr.bf16.mxu1 %v5825_v8 }
0x1321   : > { %4752 = vmatpush3.bf16.xpose.msra.mxu0 %v2843_v48  ;;  %4753 = vmatprep.mubr.msk.bf16.mxu0 %vm5826_vm2, %v5825_v8 }
0x1322   : > { %4763 = vmatprep.subr.bf16.mxu0 %v5825_v8 }
0x1326   : > { %4748 = vmatmul.mubr.msk.bf16.vlgmr.msra.gmra.mrb[56].mxu1 %vm1289_vm4, %v2786_v49 }
0x1327   : > { %4759 = vmatprep.mubr.msk.bf16.mxu1 %vm5826_vm2, %v5825_v8 }
0x1328   : > { %4754 = vmatmul.mubr.msk.bf16.vlgmr.msra.gmra.mrb[52].mxu0 %vm1289_vm4, %v2836_v50 }
0x1329   : > { %4765 = vmatprep.mubr.msk.bf16.mxu0 %vm5826_vm2, %v5825_v8 }
0x13f1   : > { %v7096_v51 = vpop.f32.mrb[52].mxu1 }
0x13f2   : > { %v4737_v52 = vpop.f32.mrb[53].mxu1 }
0x13f3   : > { %v2732_v21 = vpop.f32.mrb[54].mxu1  ;;  %v7098_v53 = vpop.f32.mrb[48].mxu0 }
0x13f4   : > { %v2783_v55 = vpack.c.bf16 %v7098_v53, %v7096_v51  ;;  %v4738_v57 = vpop.f32.mrb[55].mxu1  ;;  %v4743_v58 = vpop.f32.mrb[49].mxu0 }
0x13f5   : > { %v2780_v59 = vpop.f32.mrb[50].mxu0 }
0x13f6   : > { %v4744_v60 = vpop.f32.mrb[51].mxu0 }
0x13f9   : > { %v2829_v61 = vpop.f32.mrb[56].mxu1 }
0x13fa   : > { %v2885_v62 = vmul.f32 0.35355338, %v2829_v61  ;;  %v4749_v0 = vpop.f32.mrb[57].mxu1 }
0x13fb   : > { %v2832_v1 = vpop.f32.mrb[58].mxu1  ;;  %v2879_v3 = vpop.f32.mrb[52].mxu0 }
0x13fc   : > { %v2886_v5 = vmul.f32 0.35355338, %v2879_v3  ;;  %v4750_v6 = vpop.f32.mrb[59].mxu1  ;;  %v4755_v7 = vpop.f32.mrb[53].mxu0  ;;  %v2887_v9 = vadd.f32 %v2885_v62, %v7054_v4 }
0x13fd   : > { %v2882_v13 = vpop.f32.mrb[54].mxu0 }
0x13fe   : > { %v4756_v14 = vpop.f32.mrb[55].mxu0  ;;  %v2889_v15 = vsel %vm1289_vm4, %v2887_v9, -inf  ;;  %v2888_v16 = vadd.f32 %v2886_v5, %v7056_v12 }
0x13ff   : > { %2890 = vmax.xlane.f32.xlu1 %v2889_v15 }
0x1400   : > { %v2892_v17 = vsel %vm1289_vm4, %v2888_v16, -inf }
0x1401   : > { %2893 = vmax.xlane.f32.xlu0 %v2892_v17 }
0x148c   : > { %v2891_v19 = vpop.xlane.xlu1 %2890 }
0x148d   : > { %v2895_v10 = vsub.f32 %v2887_v9, %v2891_v19 }
0x148e   : > { %v2894_v11 = vpop.xlane.xlu0 %2893 }
0x148f   : > { %v2897_v20 = vmul.f32 1.442695, %v2895_v10  ;;  %v2896_v22 = vsub.f32 %v2888_v16, %v2894_v11 }
0x1491   : > { %5077 = vpow2.f32 %v2897_v20  ;;  %v2899_v23 = vmul.f32 1.442695, %v2896_v22 }
0x1493   : > { %5079 = vpow2.f32 %v2899_v23 }
0x149b   : > { %v5078_v24 = vpop.eup %5077 }
0x149c   : > { %v2901_v25 = vsel %vm1289_vm4, %v5078_v24, 0.0 }
0x149d   : > { %v5080_v27 = vpop.eup %5079  ;;  %2902 = vadd.xlane.f32.xlu0 %v2901_v25 }
0x149e   : > { %v2904_v28 = vsel %vm1289_vm4, %v5080_v27, 0.0 }
0x149f   : > { %2905 = vadd.xlane.f32.xlu1 %v2904_v28 }
0x14b0   : > { %2961 = vrot.lane.b32.xlu1 %v7034_v56, %s5829_s6 }
0x14b3   : > { %2913 = vrot.lane.b32.xlu0 %v7032_v54, %s5829_s6  ;;  %s7500_s6 = smov %s7499_s28 }
0x14b4   : > { %3107 = vrot.lane.b32.xlu1 %v7032_v54, %s5832_s29 }
0x14b7   : > { %3157 = vrot.lane.b32.xlu0 %v7034_v56, %s5832_s29 }
0x14b8   : > { %3105 = vrot.lane.b32.xlu1 %v7042_v63, %s5832_s29 }
0x14bb   : > { %3155 = vrot.lane.b32.xlu0 %v7044_v2, %s5832_s29 }
0x152a   : > { %v2903_v30 = vpop.xlane.xlu0 %2902 }
0x152b   : > { %5081 = vrcp.f32 %v2903_v30 }
0x152c   : > { %v2906_v31 = vpop.xlane.xlu1 %2905 }
0x152d   : > { %5083 = vrcp.f32 %v2906_v31 }
0x152e   : > { %v2914_v32 = vpop.permute.xlu0 %2913 }
0x152f   : > { %v2919_v33 = vsel %vm1415_vm5, %v2914_v32, 0 }
0x1530   : > { %4758 = vmatpush3.bf16.msra.mxu1 %v2919_v33  ;;  %v2962_v34 = vpop.permute.xlu1 %2961 }
0x1531   : > { %v2967_v35 = vsel %vm1415_vm5, %v2962_v34, 0  ;;  %4769 = vmatprep.subr.bf16.mxu1 %v5825_v8 }
0x1532   : > { %4764 = vmatpush3.bf16.msra.mxu0 %v2967_v35  ;;  %v3158_v18 = vpop.permute.xlu0 %3157 }
0x1533   : > { %4775 = vmatprep.subr.bf16.mxu0 %v5825_v8  ;;  %v3163_v44 = vsel %vm1289_vm4, %v3158_v18, 0 }
0x1534   : > { %v3108_v49 = vpop.permute.xlu1 %3107 }
0x1535   : > { %v5082_v36 = vpop.eup %5081  ;;  %v3113_v58 = vsel %vm1289_vm4, %v3108_v49, 0 }
0x1536   : > { %v2909_v26 = vmul.f32 %v5082_v36, %v5078_v24  ;;  %v3156_v45 = vpop.permute.xlu0 %3155 }
0x1537   : > { %v5084_v38 = vpop.eup %5083 }
0x1538   : > { %v2910_v29 = vmul.f32 %v5084_v38, %v5080_v27  ;;  %v2911_v40 = vpack.c.bf16 %v2909_v26, %v2909_v26  ;;  %v3106_v62 = vpop.permute.xlu1 %3105 }
0x153a   : > { %4760 = vmatmul.mubr.msk.bf16.vlgmr.msra.gmra.mrb[60].mxu1 %vm1289_vm4, %v2911_v40  ;;  %v2912_v42 = vpack.c.bf16 %v2910_v29, %v2910_v29 }
0x153b   : > { %4770 = vmatpush3.bf16.msra.mxu1 %v3015_v41  ;;  %4771 = vmatprep.mubr.msk.bf16.mxu1 %vm5826_vm2, %v5825_v8 }
0x153c   : > { %4766 = vmatmul.mubr.msk.bf16.vlgmr.msra.gmra.mrb[56].mxu0 %vm1289_vm4, %v2912_v42  ;;  %4781 = vmatprep.subr.bf16.mxu1 %v5825_v8 }
0x153d   : > { %4776 = vmatpush3.bf16.msra.mxu0 %v3062_v43  ;;  %4777 = vmatprep.mubr.msk.bf16.mxu0 %vm5826_vm2, %v5825_v8 }
0x153e   : > { %4787 = vmatprep.subr.bf16.mxu0 %v5825_v8 }
0x1544   : > { %4778 = vmatmul.mubr.msk.bf16.vlgmr.msra.gmra.mrb[60].mxu0 %vm1289_vm4, %v2783_v55 }
0x1545   : > { %4789 = vmatprep.mubr.msk.bf16.mxu0 %vm5826_vm2, %v5825_v8 }
0x1546   : > { %4788 = vmatpush3.bf16.xpose.msra.mxu0 %v3163_v44 }
0x1547   : > { %4799 = vmatprep.subr.bf16.mxu0 %v5825_v8 }
0x154d   : > { %4790 = vmatmul.mubr.msk.bf16.vlgmr.msra.gmra.mrb[64].mxu0 %vm1289_vm4, %v3156_v45 }
0x154e   : > { %4801 = vmatprep.mubr.msk.bf16.mxu0 %vm5826_vm2, %v5825_v8 }
0x160d   : > { %v2955_v48 = vpop.f32.mrb[60].mxu1 }
0x160e   : > { %v4761_v50 = vpop.f32.mrb[61].mxu1 }
0x160f   : > { %v2958_v51 = vpop.f32.mrb[62].mxu1  ;;  %v3003_v52 = vpop.f32.mrb[56].mxu0 }
0x1610   : > { %v3009_v21 = vpack.c.bf16 %v3003_v52, %v2955_v48  ;;  %v4762_v53 = vpop.f32.mrb[63].mxu1  ;;  %v4767_v55 = vpop.f32.mrb[57].mxu0  ;;  %v3330_v51 = vld [vmem:[%s6713_s22 + $0x8] sm:$0xf] }
0x1611   : > { %v3006_v57 = vpop.f32.mrb[58].mxu0  ;;  %v3335_v53 = vsel %vm1415_vm5, %v3330_v51, 0 }
0x1612   : > { %v4768_v59 = vpop.f32.mrb[59].mxu0  ;;  %4772 = vmatmul.mubr.msk.bf16.vlgmr.msra.gmra.mrb[64].mxu1 %vm1289_vm4, %v3009_v21 }
0x1613   : > { %4782 = vmatpush3.bf16.xpose.msra.mxu1 %v3113_v58  ;;  %4783 = vmatprep.mubr.msk.bf16.mxu1 %vm5826_vm2, %v5825_v8 }
0x1614   : > { %4793 = vmatprep.subr.bf16.mxu1 %v5825_v8 }
0x1617   : > { %v3098_v60 = vpop.f32.mrb[60].mxu0 }
0x1618   : > { %v4779_v61 = vpop.f32.mrb[61].mxu0 }
0x1619   : > { %v3101_v0 = vpop.f32.mrb[62].mxu0 }
0x161a   : > { %v4780_v1 = vpop.f32.mrb[63].mxu0  ;;  %4784 = vmatmul.mubr.msk.bf16.vlgmr.msra.gmra.mrb[68].mxu1 %vm1289_vm4, %v3106_v62 }
0x161b   : > { %4795 = vmatprep.mubr.msk.bf16.mxu1 %vm5826_vm2, %v5825_v8 }
0x1620   : > { %v3199_v3 = vpop.f32.mrb[64].mxu0 }
0x1621   : > { %v3206_v5 = vmul.f32 0.35355338, %v3199_v3  ;;  %v4791_v6 = vpop.f32.mrb[65].mxu0 }
0x1622   : > { %v3202_v7 = vpop.f32.mrb[66].mxu0 }
0x1623   : > { %v4792_v9 = vpop.f32.mrb[67].mxu0  ;;  %v3208_v13 = vadd.f32 %v3206_v5, %v7056_v12 }
0x1625   : > { %v3212_v14 = vsel %vm1289_vm4, %v3208_v13, -inf }
0x1626   : > { %3213 = vmax.xlane.f32.xlu0 %v3212_v14 }
0x16b3   : > { %v3214_v15 = vpop.xlane.xlu0 %3213 }
0x16b4   : > { %v3216_v16 = vsub.f32 %v3208_v13, %v3214_v15 }
0x16b6   : > { %v3219_v17 = vmul.f32 1.442695, %v3216_v16 }
0x16b8   : > { %5085 = vpow2.f32 %v3219_v17 }
0x16c2   : > { %v5086_v33 = vpop.eup %5085 }
0x16c3   : > { %v3224_v34 = vsel %vm1289_vm4, %v5086_v33, 0.0 }
0x16e5   : > { %v3051_v19 = vpop.f32.mrb[64].mxu1 }
0x16e6   : > { %v7157_v10 = vadd.f32 %v3098_v60, %v3051_v19  ;;  %v4773_v11 = vpop.f32.mrb[65].mxu1 }
0x16e7   : > { %v3054_v20 = vpop.f32.mrb[66].mxu1 }
0x16e8   : > { %v7159_v22 = vadd.f32 %v3101_v0, %v3054_v20  ;;  %v4774_v23 = vpop.f32.mrb[67].mxu1 }
0x16ed   : > { %v3149_v24 = vpop.f32.mrb[68].mxu1 }
0x16ee   : > { %v3205_v25 = vmul.f32 0.35355338, %v3149_v24  ;;  %v4785_v27 = vpop.f32.mrb[69].mxu1 }
0x16ef   : > { %v3152_v28 = vpop.f32.mrb[70].mxu1 }
0x16f0   : > { %v4786_v30 = vpop.f32.mrb[71].mxu1  ;;  %v3207_v31 = vadd.f32 %v3205_v25, %v7054_v4 }
0x16f2   : > { %v3209_v32 = vsel %vm1289_vm4, %v3207_v31, -inf }
0x16f3   : > { %3210 = vmax.xlane.f32.xlu1 %v3209_v32 }
0x16f7   : > { %3225 = vadd.xlane.f32.xlu1 %v3224_v34 }
0x1708   : > { %3281 = vrot.lane.b32.xlu1 %v7034_v56, %s5833_s11 }
0x170c   : > { %3382 = vrot.lane.b32.xlu1 %v7032_v54, %s5836_s30 }
0x1710   : > { %3380 = vrot.lane.b32.xlu1 %v7042_v63, %s5836_s30 }
0x1780   : > { %v3211_v35 = vpop.xlane.xlu1 %3210 }
0x1781   : > { %v3215_v36 = vsub.f32 %v3207_v31, %v3211_v35 }
0x1783   : > { %v3217_v37 = vmul.f32 1.442695, %v3215_v36 }
0x1784   : > { %v3226_v26 = vpop.xlane.xlu1 %3225 }
0x1785   : > { %5087 = vpow2.f32 %v3217_v37 }
0x1786   : > { %5089 = vrcp.f32 %v3226_v26 }
0x1788   : > { %v3282_v38 = vpop.permute.xlu1 %3281 }
0x1789   : > { %v3287_v39 = vsel %vm1415_vm5, %v3282_v38, 0 }
0x178a   : > { %4800 = vmatpush3.bf16.msra.mxu0 %v3287_v39 }
0x178b   : > { %4811 = vmatprep.subr.bf16.mxu0 %v5825_v8 }
0x178c   : > { %v3383_v43 = vpop.permute.xlu1 %3382 }
0x178d   : > { %v3388_v18 = vsel %vm1289_vm4, %v3383_v43, 0  ;;  %v3605_v43 = vld [vmem:[%s6713_s22 + $0xc] sm:$0xf]  ;;  %s7498_s22 = scalar_lea.vmem [#allocation18], %s6663_s19  ;;  %s7503_s19 = sld [smem:[#allocation50_spill]] }
0x178f   : > { %v5088_v29 = vpop.eup %5087 }
0x1790   : > { %v5090_v40 = vpop.eup %5089  ;;  %v3221_v41 = vsel %vm1289_vm4, %v5088_v29, 0.0  ;;  %v3381_v44 = vpop.permute.xlu1 %3380 }
0x1791   : > { %v3230_v42 = vmul.f32 %v5090_v40, %v5086_v33  ;;  %3222 = vadd.xlane.f32.xlu0 %v3221_v41 }
0x1793   : > { %v3232_v63 = vpack.c.bf16 %v3230_v42, %v3230_v42  ;;  %s4479_s29 = sshll.u32 %s7503_s19, 8 }
0x1794   : > { %s7275_s23 = scalar_lea.hbm %s7505_s13, %s4479_s29 }
0x1795   : > { %4802 = vmatmul.mubr.msk.bf16.vlgmr.msra.gmra.mrb[68].mxu0 %vm1289_vm4, %v3232_v63  ;;  %v3610_v63 = vsel %vm1415_vm5, %v3605_v43, 0 }
0x1796   : > { %4812 = vmatpush3.bf16.xpose.msra.mxu0 %v3388_v18  ;;  %4813 = vmatprep.mubr.msk.bf16.mxu0 %vm5826_vm2, %v5825_v8 }
0x1797   : > { %4823 = vmatprep.subr.bf16.mxu0 %v5825_v8 }
0x179d   : > { %4814 = vmatmul.mubr.msk.bf16.vlgmr.msra.gmra.mrb[72].mxu0 %vm1289_vm4, %v3381_v44 }
0x179e   : > { %4825 = vmatprep.mubr.msk.bf16.mxu0 %vm5826_vm2, %v5825_v8 }
0x17a7   : > { %3233 = vrot.lane.b32.xlu0 %v7032_v54, %s5833_s11  ;;  %s3927_s11 = sshll.u32 %s6777_s25, 4  ;;  %s7277_s11 = int_to_ptr.vmem [resolvable:$true] %s3927_s11 }
0x17ab   : > { %3432 = vrot.lane.b32.xlu0 %v7034_v56, %s5836_s30 }
0x17af   : > { %3430 = vrot.lane.b32.xlu0 %v7044_v2, %s5836_s30 }
0x181e   : > { %v3223_v45 = vpop.xlane.xlu0 %3222 }
0x181f   : > { %5091 = vrcp.f32 %v3223_v45 }
0x1822   : > { %v3234_v48 = vpop.permute.xlu0 %3233 }
0x1823   : > { %v3239_v49 = vsel %vm1415_vm5, %v3234_v48, 0 }
0x1824   : > { %4794 = vmatpush3.bf16.msra.mxu1 %v3239_v49 }
0x1825   : > { %4805 = vmatprep.subr.bf16.mxu1 %v5825_v8 }
0x1826   : > { %v3433_v5 = vpop.permute.xlu0 %3432 }
0x1827   : > { %v3438_v14 = vsel %vm1289_vm4, %v3433_v5, 0 }
0x1829   : > { %v5092_v50 = vpop.eup %5091 }
0x182a   : > { %v3229_v52 = vmul.f32 %v5092_v50, %v5088_v29 }
0x182c   : > { %v3231_v21 = vpack.c.bf16 %v3229_v52, %v3229_v52 }
0x182e   : > { %4796 = vmatmul.mubr.msk.bf16.vlgmr.msra.gmra.mrb[72].mxu1 %vm1289_vm4, %v3231_v21 }
0x182f   : > { %4806 = vmatpush3.bf16.msra.mxu1 %v3335_v53  ;;  %4807 = vmatprep.mubr.msk.bf16.mxu1 %vm5826_vm2, %v5825_v8 }
0x1830   : > { %4817 = vmatprep.subr.bf16.mxu1 %v5825_v8 }
0x1868   : > { %v3323_v2 = vpop.f32.mrb[68].mxu0 }
0x1869   : > { %v4803_v55 = vpop.f32.mrb[69].mxu0 }
0x186a   : > { %v3326_v57 = vpop.f32.mrb[70].mxu0 }
0x186b   : > { %v4804_v58 = vpop.f32.mrb[71].mxu0 }
0x1870   : > { %v3424_v59 = vpop.f32.mrb[72].mxu0 }
0x1871   : > { %v3480_v60 = vmul.f32 0.35355338, %v3424_v59  ;;  %v4815_v61 = vpop.f32.mrb[73].mxu0 }
0x1872   : > { %v3427_v62 = vpop.f32.mrb[74].mxu0 }
0x1873   : > { %v4816_v0 = vpop.f32.mrb[75].mxu0  ;;  %v3482_v1 = vadd.f32 %v3480_v60, %v7054_v4  ;;  %v3431_v4 = vpop.permute.xlu0 %3430  ;;  %v4444_v60 = vld [vmem:[%s7498_s22] ss:$0 sm:$0xff] }
0x1875   : > { %v3484_v3 = vsel %vm1289_vm4, %v3482_v1, -inf }
0x1876   : > { %3485 = vmax.xlane.f32.xlu1 %v3484_v3 }
0x1901   : > { %v3275_v6 = vpop.f32.mrb[72].mxu1 }
0x1902   : > { %v3329_v7 = vpack.c.bf16 %v3323_v2, %v3275_v6  ;;  %v4797_v9 = vpop.f32.mrb[73].mxu1 }
0x1903   : > { %v3278_v13 = vpop.f32.mrb[74].mxu1  ;;  %v3486_v16 = vpop.xlane.xlu1 %3485 }
0x1904   : > { %v4798_v15 = vpop.f32.mrb[75].mxu1  ;;  %4808 = vmatmul.mubr.msk.bf16.vlgmr.msra.gmra.mrb[76].mxu1 %vm1289_vm4, %v3329_v7  ;;  %v3490_v17 = vsub.f32 %v3482_v1, %v3486_v16 }
0x1905   : > { %4818 = vmatpush3.bf16.xpose.msra.mxu1 %v3438_v14  ;;  %4819 = vmatprep.mubr.msk.bf16.mxu1 %vm5826_vm2, %v5825_v8 }
0x1906   : > { %4829 = vmatprep.subr.bf16.mxu1 %v5825_v8  ;;  %v3492_v19 = vmul.f32 1.442695, %v3490_v17 }
0x1908   : > { %5093 = vpow2.f32 %v3492_v19  ;;  %v5029_v19 = vld [vmem:[%s6743_s27] sm:$0xff]  }
0x190c   : > { %4820 = vmatmul.mubr.msk.bf16.vlgmr.msra.gmra.mrb[80].mxu1 %vm1289_vm4, %v3431_v4 }
0x190d   : > { %4831 = vmatprep.mubr.msk.bf16.mxu1 %vm5826_vm2, %v5825_v8 }
0x1912   : > { %v5094_v36 = vpop.eup %5093 }
0x19d7   : > { %v3371_v11 = vpop.f32.mrb[76].mxu1 }
0x19d8   : > { %v7206_v20 = vadd.f32 %v3371_v11, %v7157_v10  ;;  %v4809_v23 = vpop.f32.mrb[77].mxu1  ;;  %v3496_v10 = vsel %vm1289_vm4, %v5094_v36, 0.0  ;;  %v5030_v11 = vld [vmem:[%s6743_s27 + $0x8] sm:$0xff]  }
0x19d9   : > { %v3374_v24 = vpop.f32.mrb[78].mxu1 }
0x19da   : > { %v7209_v25 = vadd.f32 %v3374_v24, %v7159_v22  ;;  %v4810_v27 = vpop.f32.mrb[79].mxu1 }
0x19df   : > { %v3474_v28 = vpop.f32.mrb[80].mxu1 }
0x19e0   : > { %v3481_v30 = vmul.f32 0.35355338, %v3474_v28  ;;  %v4821_v31 = vpop.f32.mrb[81].mxu1 }
0x19e1   : > { %v3477_v32 = vpop.f32.mrb[82].mxu1 }
0x19e2   : > { %v4822_v33 = vpop.f32.mrb[83].mxu1  ;;  %v3483_v34 = vadd.f32 %v3481_v30, %v7056_v12 }
0x19e4   : > { %v3487_v35 = vsel %vm1289_vm4, %v3483_v34, -inf }
0x19e5   : > { %3488 = vmax.xlane.f32.xlu0 %v3487_v35 }
0x19e9   : > { %3497 = vadd.xlane.f32.xlu0 %v3496_v10 }
0x19ff   : > { %3508 = vrot.lane.b32.xlu0 %v7032_v54, %s7497_s12 }
0x1a72   : > { %v3489_v22 = vpop.xlane.xlu0 %3488 }
0x1a73   : > { %v3491_v37 = vsub.f32 %v3483_v34, %v3489_v22 }
0x1a75   : > { %v3494_v26 = vmul.f32 1.442695, %v3491_v37 }
0x1a76   : > { %v3498_v38 = vpop.xlane.xlu0 %3497 }
0x1a77   : > { %5095 = vpow2.f32 %v3494_v26  ;;  %v4445_v26 = vld [vmem:[%s6759_s20 + $0x1] ss:$0 sm:$0xff] }
0x1a78   : > { %5097 = vrcp.f32 %v3498_v38 }
0x1a7a   : > { %v3509_v39 = vpop.permute.xlu0 %3508 }
0x1a7b   : > { %v3514_v12 = vsel %vm1415_vm5, %v3509_v39, 0 }
0x1a7c   : > { %4824 = vmatpush3.bf16.msra.mxu0 %v3514_v12 }
0x1a7d   : > { %4835 = vmatprep.subr.bf16.mxu0 %v5825_v8 }
0x1a81   : > { %v5096_v29 = vpop.eup %5095 }
0x1a82   : > { %v5098_v40 = vpop.eup %5097  ;;  %v3499_v41 = vsel %vm1289_vm4, %v5096_v29, 0.0 }
0x1a83   : > { %v3504_v42 = vmul.f32 %v5098_v40, %v5094_v36  ;;  %3500 = vadd.xlane.f32.xlu1 %v3499_v41  ;;  %v4446_v41 = vld [vmem:[%s6767_s0 + $0x1] ss:$0 sm:$0xff] }
0x1a85   : > { %v3506_v54 = vpack.c.bf16 %v3504_v42, %v3504_v42 }
0x1a87   : > { %4826 = vmatmul.mubr.msk.bf16.vlgmr.msra.gmra.mrb[76].mxu0 %vm1289_vm4, %v3506_v54 }
0x1a88   : > { %4837 = vmatprep.mubr.msk.bf16.mxu0 %vm5826_vm2, %v5825_v8  ;;  %4836 = vmatpush3.bf16.msra.mxu0 %v3610_v63 }
0x1a89   : > { %4849 = vmatprep.subr.bf16.mxu0 %v5825_v8 }
0x1a94   : > { %3556 = vrot.lane.b32.xlu1 %v7034_v56, %s7497_s12  ;;  %s5838_s12 = smov [#allocation25]  }
0x1a95   : > { %s5617_s22 = sshll.u32 %s5838_s12, 4  ;;  %s5618_s22 = int_to_ptr.vmem [resolvable:$false] %s5617_s22 }
0x1a96   : > { %p5620_p1 = scmp.lt.s32.totalorder %s7277_s11, %s5618_s22 }
0x1b10   : > { %v3501_v18 = vpop.xlane.xlu1 %3500 }
0x1b11   : > { %5099 = vrcp.f32 %v3501_v18  ;;  %v5031_v18 = vld [vmem:[%s6743_s27 + $0x10] sm:$0xff]  }
0x1b14   : > { %v3557_v44 = vpop.permute.xlu1 %3556 }
0x1b15   : > { %v3562_v45 = vsel %vm1415_vm5, %v3557_v44, 0  ;;  %v5032_v44 = vld [vmem:[%s6743_s27 + $0x18] sm:$0xff]   ;;  %s7504_s27 = sld [smem:[#allocation59_spill]] }
0x1b16   : > { %4830 = vmatpush3.bf16.msra.mxu1 %v3562_v45  ;;  %v4447_v45 = vld [vmem:[%s7501_s16] ss:$0 sm:$0xff] }
0x1b17   : > { %4841 = vmatprep.subr.bf16.mxu1 %v5825_v8 }
0x1b1b   : > { %v5100_v48 = vpop.eup %5099  ;;  %p7506_p5 = scmp.ne.s32.totalorder %s7504_s27, 0 }
0x1b1c   : > { %v3505_v49 = vmul.f32 %v5100_v48, %v5096_v29 }
0x1b1e   : > { %v3507_v50 = vpack.c.bf16 %v3505_v49, %v3505_v49 }
0x1b20   : > { %4832 = vmatmul.mubr.msk.bf16.vlgmr.msra.gmra.mrb[84].mxu1 %vm1289_vm4, %v3507_v50 }
0x1b21   : > { %4845 = vmatprep.mubr.msk.bf16.mxu1 %vm5826_vm2, %v5825_v8 }
0x1b5a   : > { %v3550_v56 = vpop.f32.mrb[76].mxu0 }
0x1b5b   : > { %v4827_v51 = vpop.f32.mrb[77].mxu0 }
0x1b5c   : > { %v3553_v52 = vpop.f32.mrb[78].mxu0 }
0x1b5d   : > { %v4828_v21 = vpop.f32.mrb[79].mxu0 }
0x1bf3   : > { %v3598_v53 = vpop.f32.mrb[84].mxu1 }
0x1bf4   : > { %v3604_v2 = vpack.c.bf16 %v3598_v53, %v3550_v56  ;;  %v4833_v55 = vpop.f32.mrb[85].mxu1 }
0x1bf5   : > { %v3601_v57 = vpop.f32.mrb[86].mxu1  ;;  %v4451_v55 = vld [vmem:[%s7502_s5] ss:$0 sm:$0xff] }
0x1bf6   : > { %v4834_v58 = vpop.f32.mrb[87].mxu1  ;;  %4838 = vmatmul.mubr.msk.bf16.vlgmr.msra.gmra.mrb[80].mxu0 %vm1289_vm4, %v3604_v2 }
0x1bf7   : > { %4857 = vmatprep.mubr.msk.bf16.mxu0 %vm5826_vm2, %v5825_v8  ;;  %4850 = vmatpush3.bf16.msra.mxu0 %v5029_v19 }
0x1bf8   : > { %4851 = vmatprep.subr.bf16.mxu0 %v5825_v8 }
0x1bfb   : > { %4852 = vmatpush3.bf16.msra.mxu0 %v5030_v11 }
0x1bfc   : > { %4853 = vmatprep.subr.bf16.mxu0 %v5825_v8 }
0x1bff   : > { %4854 = vmatpush3.bf16.msra.mxu0 %v5031_v18 }
0x1c00   : > { %4855 = vmatprep.subr.bf16.mxu0 %v5825_v8 }
0x1c03   : > { %4856 = vmatpush3.bf16.msra.mxu0 %v5032_v44 }
0x1cc9   : > { %v3646_v59 = vpop.f32.mrb[80].mxu0 }
0x1cca   : > { %v3653_v61 = vadd.f32 %v3646_v59, %v7206_v20  ;;  %v4839_v62 = vpop.f32.mrb[81].mxu0 }
0x1ccb   : > { %v3649_v0 = vpop.f32.mrb[82].mxu0 }
0x1ccc   : > { %v3662_v1 = vadd.f32 %v4444_v60, %v3653_v61  ;;  %v3654_v3 = vadd.f32 %v3649_v0, %v7209_v25  ;;  %v4840_v5 = vpop.f32.mrb[83].mxu0 }
0x1cce   : > { %v3664_v6 = vadd.f32 %v3662_v1, %v7023_v46  ;;  %v3663_v7 = vadd.f32 %v4444_v60, %v3654_v3  ;;  %v5027_v46 = vld [vmem:[%s7499_s28] sm:$0xff]   ;;  %s5619_s28 = scalar_lea.vmem %s5618_s22, 512 }
0x1ccf   : > { %4842 = vmatpush3.bf16.msra.mxu1 %v5027_v46 }
0x1cd0   : > { %v3665_v9 = vadd.f32 %v3663_v7, %v7025_v47  ;;  %v3668_v13 = vsel %vm1236_vm3, %v3664_v6, 0.0  ;;  %v3676_v4 = vmul.f32 %v3664_v6, %v3664_v6  ;;  %v5028_v47 = vld [vmem:[%s7500_s6 + $0x8] sm:$0xff]   ;;  %4843 = vmatprep.subr.bf16.mxu1 %v5825_v8 }
0x1cd1   : > { %3669 = vadd.xlane.f32.xlu1 %v3668_v13 }
0x1cd2   : > { %v3671_v14 = vsel %vm1236_vm3, %v3665_v9, 0.0  ;;  %v3677_v15 = vmul.f32 %v3665_v9, %v3665_v9  ;;  %v3678_v17 = vsel %vm1236_vm3, %v3676_v4, 0.0 }
0x1cd3   : > { %3672 = vadd.xlane.f32.xlu0 %v3671_v14  ;;  %4844 = vmatpush3.bf16.msra.mxu1 %v5028_v47 }
0x1cd4   : > { %v3681_v16 = vsel %vm1236_vm3, %v3677_v15, 0.0 }
0x1cd5   : > { %3682 = vadd.xlane.f32.xlu1 %v3681_v16 }
0x1cd7   : > { %3679 = vadd.xlane.f32.xlu0 %v3678_v17 }
0x1d5e   : > { %v3670_v20 = vpop.xlane.xlu1 %3669 }
0x1d5f   : > { %v3674_v24 = vmul.f32 0.03125, %v3670_v20 }
0x1d60   : > { %v3673_v23 = vpop.xlane.xlu0 %3672 }
0x1d61   : > { %v3675_v25 = vmul.f32 0.03125, %v3673_v23  ;;  %v3686_v32 = vmul.f32 %v3674_v24, %v3674_v24  ;;  %v3690_v38 = vsub.f32 %v3664_v6, %v3674_v24 }
0x1d62   : > { %v3683_v27 = vpop.xlane.xlu1 %3682 }
0x1d63   : > { %v3687_v28 = vmul.f32 %v3675_v25, %v3675_v25  ;;  %v3685_v30 = vmul.f32 0.03125, %v3683_v27  ;;  %v3691_v22 = vsub.f32 %v3665_v9, %v3675_v25 }
0x1d64   : > { %v3680_v31 = vpop.xlane.xlu0 %3679 }
0x1d65   : > { %v3689_v33 = vsub.f32 %v3685_v30, %v3687_v28  ;;  %v3684_v34 = vmul.f32 0.03125, %v3680_v31  ;;  %v4457_v30 = vld [vmem:[%s6759_s20 + $0x2] ss:$0 sm:$0xff]  ;;  %s3914_s20 = scalar_lea.sflag [#allocation5], %s6629_s18 }
0x1d67   : > { %v3693_v35 = vadd.f32 1e-05, %v3689_v33  ;;  %v3688_v36 = vsub.f32 %v3684_v34, %v3686_v32  ;;  %v4458_v34 = vld [vmem:[%s6767_s0 + $0x2] ss:$0 sm:$0xff]  ;;  %s5613_s0 = scalar_lea.vmem %s7277_s11, 256 }
0x1d68   : > { %p5614_p13 = scmp.ne.s32.totalorder %s7277_s11, %s5613_s0  ;;  %p5621_p11 = scmp.lt.s32.totalorder %s5619_s28, %s5613_s0 }
0x1d69   : > { %5101 = vrsqrt.f32 %v3693_v35  ;;  %v3692_v10 = vadd.f32 1e-05, %v3688_v36 }
0x1d6a   : > { %p5615_p2 = pnand %p5614_p13, %p7506_p5  ;;  %p5622_p6 = por %p5621_p11, %p5620_p1 }
0x1d6b   : > { %5103 = vrsqrt.f32 %v3692_v10 }
0x1d6c   : > { %p5616_p7 = pneg %p5615_p2 }
0x1d6e   : > { %p5623_p3 = pnand %p5622_p6, %p5616_p7 }
0x1d73   : > { %v5102_v37 = vpop.eup %5101 }
0x1d74   : > { %v3697_v39 = vmul.f32 %v5102_v37, %v3691_v22 }
0x1d75   : > { %v5104_v12 = vpop.eup %5103 }
0x1d76   : > { %v3696_v29 = vmul.f32 %v5104_v12, %v3690_v38  ;;  %v3703_v40 = vmul.f32 %v4445_v26, %v3697_v39 }
0x1d78   : > { %v3702_v42 = vmul.f32 %v4445_v26, %v3696_v29  ;;  %v3709_v43 = vadd.f32 %v4446_v41, %v3703_v40 }
0x1d7a   : > { %v3708_v54 = vadd.f32 %v4446_v41, %v3702_v42 }
0x1d7c   : > { %v3710_v63 = vpack.c.bf16 %v3709_v43, %v3708_v54 }
0x1d7e   : > { %4846 = vmatmul.mubr.msk.bf16.vlgmr.msra.gmra.mrb[88].mxu1 %vm1236_vm3, %v3710_v63 }
0x1e51   : > { %v3771_v48 = vpop.f32.mrb[88].mxu1 }
0x1e52   : > { %v3772_v49 = vadd.f32 %v4447_v45, %v3771_v48  ;;  %v4847_v50 = vpop.f32.mrb[89].mxu1 }
0x1e53   : > { %v3774_v56 = vpop.f32.mrb[90].mxu1 }
0x1e54   : > { %v3775_v51 = vadd.f32 %v4447_v45, %v3774_v56  ;;  %v4848_v52 = vpop.f32.mrb[91].mxu1  ;;  %v3778_v21 = vmax.f32 %v3772_v49, 0.0 }
0x1e56   : > { %v3779_v53 = vmax.f32 %v3775_v51, 0.0 }
0x1e58   : > { %v3780_v2 = vpack.c.bf16 %v3779_v53, %v3778_v21 }
0x1e5a   : > { %4858 = vmatmul.mubr.msk.bf16.vlgmr.msra.gmra.mrb[84].mxu0 %vm3820_vm6, %v3780_v2 }
0x1f2d   : > { %v3858_v57 = vpop.f32.mrb[84].mxu0 }
0x1f2e   : > { %v3859_v58 = vadd.f32 %v4451_v55, %v3858_v57  ;;  %v4859_v8 = vpop.f32.mrb[85].mxu0 }
0x1f2f   : > { %v3861_v59 = vpop.f32.mrb[86].mxu0 }
0x1f30   : > { %v3865_v60 = vadd.f32 %v3859_v58, %v3708_v54  ;;  %v3862_v61 = vadd.f32 %v4451_v55, %v3861_v59  ;;  %v4860_v62 = vpop.f32.mrb[87].mxu0 }
0x1f32   : > { %v3866_v0 = vadd.f32 %v3862_v61, %v3709_v43  ;;  %v3869_v1 = vsel %vm1236_vm3, %v3865_v60, 0.0  ;;  %v3877_v3 = vmul.f32 %v3865_v60, %v3865_v60 }
0x1f33   : > { %3870 = vadd.xlane.f32.xlu0 %v3869_v1 }
0x1f34   : > { %v3872_v5 = vsel %vm1236_vm3, %v3866_v0, 0.0  ;;  %v3878_v6 = vmul.f32 %v3866_v0, %v3866_v0  ;;  %v3879_v7 = vsel %vm1236_vm3, %v3877_v3, 0.0 }
0x1f35   : > { %3873 = vadd.xlane.f32.xlu1 %v3872_v5 }
0x1f36   : > { %v3882_v9 = vsel %vm1236_vm3, %v3878_v6, 0.0 }
0x1f37   : > { %3880 = vadd.xlane.f32.xlu0 %v3879_v7 }
0x1f39   : > { %3883 = vadd.xlane.f32.xlu1 %v3882_v9 }
0x1fc0   : > { %v3871_v13 = vpop.xlane.xlu0 %3870 }
0x1fc1   : > { %v3875_v14 = vmul.f32 0.03125, %v3871_v13 }
0x1fc2   : > { %v3874_v15 = vpop.xlane.xlu1 %3873 }
0x1fc3   : > { %v3876_v4 = vmul.f32 0.03125, %v3874_v15  ;;  %v3887_v17 = vmul.f32 %v3875_v14, %v3875_v14  ;;  %v3891_v27 = vsub.f32 %v3865_v60, %v3875_v14 }
0x1fc4   : > { %v3881_v16 = vpop.xlane.xlu0 %3880 }
0x1fc5   : > { %v3885_v46 = vmul.f32 0.03125, %v3881_v16  ;;  %v3888_v19 = vmul.f32 %v3876_v4, %v3876_v4  ;;  %v3892_v31 = vsub.f32 %v3866_v0, %v3876_v4 }
0x1fc6   : > { %v3884_v47 = vpop.xlane.xlu1 %3883 }
0x1fc7   : > { %v3889_v11 = vsub.f32 %v3885_v46, %v3887_v17  ;;  %v3886_v20 = vmul.f32 0.03125, %v3884_v47 }
0x1fc9   : > { %v3893_v23 = vadd.f32 1e-05, %v3889_v11  ;;  %v3890_v24 = vsub.f32 %v3886_v20, %v3888_v19 }
0x1fcb   : > { %5105 = vrsqrt.f32 %v3893_v23  ;;  %v3894_v25 = vadd.f32 1e-05, %v3890_v24 }
0x1fcd   : > { %5107 = vrsqrt.f32 %v3894_v25 }
0x1fd5   : > { %v5106_v28 = vpop.eup %5105 }
0x1fd6   : > { %v3897_v32 = vmul.f32 %v5106_v28, %v3891_v27 }
0x1fd7   : > { %v5108_v33 = vpop.eup %5107 }
0x1fd8   : > { %v3903_v35 = vmul.f32 %v4457_v30, %v3897_v32  ;;  %v3898_v36 = vmul.f32 %v5108_v33, %v3892_v31 }
0x1fda   : > { %v3904_v10 = vmul.f32 %v4457_v30, %v3898_v36  ;;  %v3909_v22 = vadd.f32 %v4458_v34, %v3903_v35 }
0x1fdc   : > { %v3910_v37 = vadd.f32 %v4458_v34, %v3904_v10  ;;  %3911 = vst.msk [vmem:[%s6777_s25] sm:$0xff] %vm1236_vm3, %v3909_v22 }
0x1fde   : > { %3912 = vst.msk [vmem:[%s6777_s25 + $0x8] sm:$0xff] %vm1236_vm3, %v3910_v37 }
0x1fdf   : > { %5626 = shalt.err (!%p5623_p3)
}
0x1fe0   : > { %s5627_s25 = scalar_lea.hbm %s7275_s23, 256  ;;  %s5631_s5 = scalar_lea.hbm %s7505_s13, 512 }
0x1fe1   : > { %p5628_p8 = scmp.ne.s32.totalorder %s7275_s23, %s5627_s25  ;;  %p5632_p10 = scmp.lt.u32.totalorder %s7275_s23, %s7505_s13 }
0x1fe2   : > { %p5633_p4 = scmp.lt.u32.totalorder %s5631_s5, %s5627_s25  ;;  %p5635_p13 = scmp.lt.u32.totalorder %s5627_s25, %s7275_s23 }
0x1fe3   : > { %p5629_p0 = pnand %p5628_p8, %p7506_p5 }
0x1fe4   : > { %p5634_p12 = por %p5633_p4, %p5632_p10 }
0x1fe5   : > { %p5630_p9 = pneg %p5629_p0 }
0x1fe6   : > { %p5636_p2 = por %p5635_p13, %p5634_p12 }
0x1fe8   : > { %p5637_p7 = pnand %p5636_p2, %p5630_p9 }
0x1fea   : > { %5640 = shalt.err (!%p5637_p7)
}
0x1feb   : > { %s5839_s30 = smov 128   ;;  %s5840_s1 = smov 8  }
0x1fec   : > { %4899 = dma.vmem_to_hbm [thread:$0]  (%p7506_p5), %s7277_s11, 256, %s7275_s23, %s3914_s20, %s5839_s30, %s5839_s30, %s5840_s1  }
0x1fed PF: > { %s7507_s0 = sld [smem:[#allocation46_spill]]  ;;  %s7508_s12 = sld [smem:[#allocation60_spill]] }
0x1fee   : > { %p4911_p1 = scmp.ge.s32.totalorder %s5799_s2, 2 }
0x1ff3   : > { %s3942_s22 = sand.u32 1, %s7507_s0   ;;  %p7509_p11 = scmp.ne.s32.totalorder %s7508_s12, 0 }
0x1ff4   : > { %s3943_s28 = scalar_lea.sflag [#allocation5], %s3942_s22 }
0x1ff5   : > { %p4906_p6 = pnand %p4911_p1, %p7509_p11 }
0x1ff7   : > { %5754 = dma.done.wait (!%p4906_p6), %s3943_s28, 256  }
0x1ff8   : > { %5756 = vsyncadd (!%p4906_p6), %s3943_s28, 4294967040  ;;  %s38_s2 = sadd.s32 1, %s5799_s2   ;;  %s7510_s27 = sld [smem:[#allocation44_spill]] }
0x1ff9   : > { %p35_p3 = scmp.ge.s32.totalorder %s38_s2, 6   ;;  %s7511_s28 = sld [smem:[#allocation45_spill]] }
0x1ffa   : > { %s7512_s29 = sld [smem:[#allocation56_spill]]  ;;  %s7513_s30 = sld [smem:[#allocation47_spill]] }
0x1ffb   : > { %s7514_s0 = sld [smem:[#allocation48_spill]]  ;;  %s7515_s19 = sld [smem:[#allocation57_spill]] }
0x1ffc   : > { %s7516_s20 = sld [smem:[#allocation51_spill]]  ;;  %s7517_s18 = sld [smem:[#allocation53_spill]] }
0x1ffd   : > { %s7518_s22 = sld [smem:[#allocation54_spill]]  ;;  %s7519_s1 = smov %s5791_s21 }
0x1ffe   :  { %37 = sbr.rel (!%p35_p3) target bundleno = 28 (0x1c), region = 323 }
0x2002   : > { %s7520_s21 = smov %s7517_s18 }
0x2005   :  { %3948 = vsyncpa [#allocation4], 1 }
0x2006   :  { %3950 = vsyncpa [#allocation4 + $0x1], 1 }
0x2007   :  { %3951 = vsyncpa [#allocation7], 1 }
0x2008   :  { %3953 = vsyncpa [#allocation7 + $0x1], 1 }
0x2009   :  { %3954 = vsyncpa [#allocation10], 1 }
0x200a   :  { %3955 = vsyncpa [#allocation5], 1 }
0x200b   :  { %3957 = vsyncpa [#allocation5 + $0x1], 1 }

</bundles_post_ra>
